<compile_context>
chip_gen: v6e
topology: v6e:2x2x1
jax: 0.10.0
libtpu: 0.0.40
codegen_flags: <defaults>
</compile_context>

<pallas_src>
import functools
import math

import jax
import jax.numpy as jnp
from jax import lax
from jax.experimental import pallas as pl
from jax.experimental.pallas import tpu as pltpu

K = 5                      # kernel size of every deconv layer
STRIDE = (2, 2)

CH_DIV = 16
LAYER_DIMS = [
    # (in_dims (C, H, W), out_dims (C, H, W), activation)   [GeneratorIMG_V]
    ((1024 // CH_DIV, 16, 2),  (512 // CH_DIV, 32, 4),   "relu"),
    ((512 // CH_DIV, 32, 4),   (256 // CH_DIV, 64, 8),   "relu"),
    ((256 // CH_DIV, 64, 8),   (128 // CH_DIV, 128, 16), "relu"),
    ((128 // CH_DIV, 128, 16), (64 // CH_DIV, 256, 32),  "relu"),
    ((64 // CH_DIV, 256, 32),  (3, 256, 32),             "relu"),
]
N_LAYERS = len(LAYER_DIMS)


def easy_deconv_padding(in_hw, out_hw, kernel, stride):
    """Same padding arithmetic as easy_deconv in the PyTorch module."""
    padding = [0, 0]
    output_padding = [0, 0]
    for d in range(2):
        lhs = -out_hw[d] + (in_hw[d] - 1) * stride[d] + kernel[d]
        if lhs % 2 == 0:
            padding[d] = lhs // 2
        else:
            padding[d] = lhs // 2 + 1
            output_padding[d] = 1
    return tuple(padding), tuple(output_padding)


# ------------------------- static per-layer plan ----------------------------

def _build_layer_plan():
    """Static geometry shared by the one-time weight prep and the forward."""
    plans = []
    cin_pad_prev = None
    for li, ((c_in, h_in, w_in), (c_out, h_out, w_out), act) in enumerate(LAYER_DIMS):
        (pad_h, pad_w), _ = easy_deconv_padding((h_in, w_in), (h_out, w_out),
                                                (K, K), STRIDE)
        lo_h = K - 1 - pad_h          # top offset of dilated input (may be < 0: crop)
        lo_w = K - 1 - pad_w
        assert lo_h % 2 == 0, "H parity decomposition assumes an even top offset"
        assert h_out % 2 == 0

        # zero-pad Cout so the output lane width (w_out * c_out_pad) is 128-dense
        need = 128 // math.gcd(w_out, 128)
        c_out_pad = ((c_out + need - 1) // need) * need
        c_in_pad = c_in if cin_pad_prev is None else cin_pad_prev

        f_in = w_in * c_in_pad
        f_out = w_out * c_out_pad
        m_rows = h_out // 2
        h_src = h_in + 2              # every layer input carries a 1-row zero border
        # src row for output-pair m, tap t is (m + t + base)
        base = 1 - lo_h // 2
        assert base >= 0 and base + m_rows + 1 < h_src

        plans.append(dict(
            c_in=c_in, c_in_pad=c_in_pad, c_out=c_out, c_out_pad=c_out_pad,
            h_in=h_in, w_in=w_in, h_out=h_out, w_out=w_out, lo_w=lo_w,
            f_in=f_in, f_out=f_out, m_rows=m_rows, base=base,
            h_src=h_src, final=(li == N_LAYERS - 1), act=act))
        cin_pad_prev = c_out_pad
    return plans


# ------------------- one-time parameter preprocessing -----------------------

def prepare_params(params):
    """Hoisted (once-per-model) banded-weight construction.

    Per layer returns (w_cat, b_cat):
      w_cat : (3*F_in, 2*F_out) bf16.  Columns [0:F_out) produce the EVEN output
              rows (kernel rows a=0,2,4 on src rows m, m+1, m+2), columns
              [F_out:2*F_out) the ODD rows (a=1,3 on src rows m+1, m+2).
      b_cat : (1, 2*F_out) f32 bias broadcast over the output width (x2 parity).
    """
    plans = _build_layer_plan()
    prepped = []
    for plan, (w_pt, bias) in zip(plans, params):
        c_in, c_out = plan["c_in"], plan["c_out"]
        c_in_pad, c_out_pad = plan["c_in_pad"], plan["c_out_pad"]
        w_in, w_out, lo_w = plan["w_in"], plan["w_out"], plan["lo_w"]
        f_in, f_out = plan["f_in"], plan["f_out"]

        w = jnp.asarray(w_pt, jnp.float32)
        w = jnp.pad(w, ((0, c_in_pad - c_in), (0, c_out_pad - c_out), (0, 0), (0, 0)))
        b = jnp.pad(jnp.asarray(bias, jnp.float32), (0, c_out_pad - c_out))

        # flipped kernel for the dilated-correlation view of ConvTranspose2d
        wf = jnp.transpose(w[:, :, ::-1, ::-1], (2, 3, 0, 1))   # (a, b, ci, co)

        # W-direction band on UNdilated source columns:
        #   sel[wi, ow, b] = 1  iff  lo_w + 2*wi - ow == b  (crop handled implicitly)
        wi = jnp.arange(w_in)[:, None, None]
        ow = jnp.arange(w_out)[None, :, None]
        bb = jnp.arange(K)[None, None, :]
        sel = (lo_w + 2 * wi - ow == bb).astype(jnp.float32)    # (Wi, Wo, K)

        band = jnp.einsum("wob,abic->awioc", sel, wf)           # (K, Wi, Ci, Wo, Co)
        band = band.reshape(K, f_in, f_out)

        zero = jnp.zeros((f_in, f_out), jnp.float32)
        even_cols = jnp.concatenate([band[0], band[2], band[4]], axis=0)  # (3F_in,F_out)
        odd_cols = jnp.concatenate([zero, band[1], band[3]], axis=0)      # (3F_in,F_out)
        w_cat = jnp.concatenate([even_cols, odd_cols], axis=1).astype(jnp.bfloat16)

        b_row = jnp.tile(b, w_out)                                        # (F_out,)
        b_cat = jnp.concatenate([b_row, b_row]).reshape(1, 2 * f_out)

        prepped.append((w_cat, b_cat))
    return prepped


# ----------------------------- Pallas kernel --------------------------------

def _deconv_pair_kernel(src_ref, w_ref, b_ref, out_ref, *, m_rows, base, f_out, final):
    """One ConvTranspose2d(k=5, s=2) + bias + ReLU layer for one batch element.

    src_ref : (h_src, F_in)      bf16  input rows (1-row zero border top & bottom)
    w_ref   : (3*F_in, 2*F_out)  bf16  parity-concatenated banded weights
    b_ref   : (1, 2*F_out)       f32
    out_ref : final : (M, 2*F_out)    row m = [even out row 2m | odd out row 2m+1]
              else  : (M+1, 2*F_out)  bordered pair layout; a free row-major reshape
                      to (2M+2, F_out) outside yields the next layer's zero-bordered
                      input rows.
    """
    r0 = src_ref[pl.ds(base + 0, m_rows), :]
    r1 = src_ref[pl.ds(base + 1, m_rows), :]
    r2 = src_ref[pl.ds(base + 2, m_rows), :]
    x = jnp.concatenate([r0, r1, r2], axis=1)                    # (M, 3*F_in)

    acc = jnp.dot(x, w_ref[...], preferred_element_type=jnp.float32)
    acc = jnp.maximum(acc + b_ref[...], 0.0)                     # bias + ReLU (spec)

    dt = out_ref.dtype
    if final:
        out_ref[...] = acc.astype(dt)
    else:
        even = acc[:, :f_out].astype(dt)
        odd = acc[:, f_out:].astype(dt)
        # bordered pair layout: pair q = [padded row 2q | padded row 2q+1]
        out_ref[pl.ds(1, m_rows), 0:f_out] = odd                 # rows 2,4,...,2M
        out_ref[pl.ds(0, m_rows), f_out:2 * f_out] = even        # rows 1,3,...,2M-1
        out_ref[pl.ds(0, 1), 0:f_out] = jnp.zeros((1, f_out), dt)          # top border
        out_ref[pl.ds(m_rows, 1), f_out:2 * f_out] = jnp.zeros((1, f_out), dt)  # bottom


def deconv_pair_layer(src, w_cat, b_cat, plan, out_dtype):
    n, h_src, f_in = src.shape
    assert h_src == plan["h_src"] and f_in == plan["f_in"]
    f_out = plan["f_out"]
    m_rows = plan["m_rows"]
    final = plan["final"]
    out_rows = m_rows if final else m_rows + 1

    flops = 2 * n * m_rows * (3 * f_in) * (2 * f_out)
    bytes_acc = (src.size * src.dtype.itemsize + w_cat.size * 2 + b_cat.size * 4
                 + n * out_rows * 2 * f_out * jnp.dtype(out_dtype).itemsize)

    kernel = functools.partial(_deconv_pair_kernel, m_rows=m_rows,
                               base=plan["base"], f_out=f_out, final=final)

    return pl.pallas_call(
        kernel,
        out_shape=jax.ShapeDtypeStruct((n, out_rows, 2 * f_out), out_dtype),
        grid=(n,),
        in_specs=[
            pl.BlockSpec((None, h_src, f_in), lambda b: (b, 0, 0)),     # per-batch rows
            pl.BlockSpec((3 * f_in, 2 * f_out), lambda b: (0, 0)),      # constant weights
            pl.BlockSpec((1, 2 * f_out), lambda b: (0, 0)),             # constant bias
        ],
        out_specs=pl.BlockSpec((None, out_rows, 2 * f_out), lambda b: (b, 0, 0)),
        compiler_params=pltpu.CompilerParams(dimension_semantics=("parallel",)),
        cost_estimate=pl.CostEstimate(flops=flops, transcendentals=0,
                                      bytes_accessed=bytes_acc),
    )(src, w_cat, b_cat)


# -------------------------------- forward -----------------------------------

def generator_img_v_forward(x_nchw, prepped):
    plans = _build_layer_plan()
    n = x_nchw.shape[0]

    # module preprocessing: x.permute(0, 1, 3, 2).flip(dims=[3]); then NHWC rows.
    x = jnp.flip(jnp.transpose(x_nchw, (0, 1, 3, 2)), axis=3)
    x = jnp.transpose(x, (0, 2, 3, 1))                           # (N, H, W, C)
    p0 = plans[0]
    if p0["c_in_pad"] != p0["c_in"]:
        x = jnp.pad(x, ((0, 0), (0, 0), (0, 0), (0, p0["c_in_pad"] - p0["c_in"])))
    rows = x.reshape(n, p0["h_in"], p0["f_in"]).astype(jnp.bfloat16)
    src = jnp.pad(rows, ((0, 0), (1, 1), (0, 0)))                # 1-row zero border

    out_pairs = None
    for plan, (w_cat, b_cat) in zip(plans, prepped):
        out_dtype = jnp.float32 if plan["final"] else jnp.bfloat16
        y = deconv_pair_layer(src, w_cat, b_cat, plan, out_dtype)
        if plan["final"]:
            out_pairs = y
        else:
            # free reshape: (N, M+1, 2*F_out) -> (N, 2M+2, F_out) bordered input rows
            src = y.reshape(n, 2 * plan["m_rows"] + 2, plan["f_out"])

    last = plans[-1]
    out = out_pairs.reshape(n, last["h_out"], last["w_out"], last["c_out_pad"])
    out = out[..., :last["c_out"]]                               # drop padded channel(s)
    return jnp.transpose(out, (0, 3, 1, 2))                      # NCHW, f32


# -------------------------- pure-JAX reference -------------------------------
# Mirrors the kernel path's precision choices: bf16 matmul operands, f32
# accumulation, bf16 inter-layer activations, f32 final output.

def _ref_deconv(x_nhwc, w_pt, bias, padding, out_padding):
    xb = x_nhwc.astype(jnp.bfloat16).astype(jnp.float32)
    wb = w_pt.astype(jnp.bfloat16).astype(jnp.float32)
    w_hwio = jnp.transpose(wb[:, :, ::-1, ::-1], (2, 3, 0, 1))
    full = lax.conv_general_dilated(
        xb, w_hwio, window_strides=(1, 1),
        padding=((K - 1, K - 1), (K - 1, K - 1)),
        lhs_dilation=STRIDE,
        dimension_numbers=("NHWC", "HWIO", "NHWC"),
        precision=jax.lax.Precision.HIGHEST)
    h_in, w_in = x_nhwc.shape[1], x_nhwc.shape[2]
    h_out = (h_in - 1) * STRIDE[0] - 2 * padding[0] + K + out_padding[0]
    w_out = (w_in - 1) * STRIDE[1] - 2 * padding[1] + K + out_padding[1]
    y = full[:, padding[0]:padding[0] + h_out,
             padding[1]:padding[1] + w_out, :]
    return y + bias


def ref_forward(x_nchw, params):
    x = jnp.flip(jnp.transpose(x_nchw, (0, 1, 3, 2)), axis=3)
    x = jnp.transpose(x, (0, 2, 3, 1)).astype(jnp.bfloat16)
    for idx, ((in_dims, out_dims, act), (w, b)) in enumerate(zip(LAYER_DIMS, params)):
        pad, opad = easy_deconv_padding(in_dims[1:], out_dims[1:], (K, K), STRIDE)
        y = _ref_deconv(x, w, b, pad, opad)
        y = jnp.maximum(y, 0.0) if act == "relu" else jnp.tanh(y)
        x = y.astype(jnp.float32 if idx == N_LAYERS - 1 else jnp.bfloat16)
    return jnp.transpose(x, (0, 3, 1, 2)).astype(jnp.float32)


# ---------------------------------- main -------------------------------------

def init_params(key):
    params = []
    for (c_in, _, _), (c_out, _, _), _ in LAYER_DIMS:
        key, kw, kb = jax.random.split(key, 3)
        bound = 1.0 / math.sqrt(c_in * K * K)   # PyTorch-style uniform fan-in init
        w = jax.random.uniform(kw, (c_in, c_out, K, K), jnp.float32, -bound, bound)
        b = jax.random.uniform(kb, (c_out,), jnp.float32, -bound, bound)
        params.append((w, b))
    return params


if __name__ == "__main__":
    root = jax.random.PRNGKey(0)
    kx, kp = jax.random.split(root)
    c0, h_after, w_after = LAYER_DIMS[0][0]            # dims the first deconv sees
    # raw module input is NCHW with (H, W) swapped (forward permutes (0,1,3,2))
    x = jax.random.normal(kx, (2, c0, w_after, h_after), jnp.float32)  # (2, 64, 2, 16)
    params = init_params(kp)

    prepped = prepare_params(params)                   # one-time weight preprocessing

    fwd = jax.jit(generator_img_v_forward)
    y = jax.block_until_ready(fwd(x, prepped))
    c_fin, h_fin, w_fin = LAYER_DIMS[-1][1]
    assert y.shape == (2, c_fin, h_fin, w_fin), y.shape

    y_ref = ref_forward(x, params)
    max_err = float(jnp.max(jnp.abs(y - y_ref)))
    mean_err = float(jnp.mean(jnp.abs(y - y_ref)))
    assert max_err < 1e-2 and mean_err < 1e-3, (max_err, mean_err)

    print("KERNEL_OK")
</pallas_src>

<mosaic_0001>
module attributes {stable_mosaic.version = 11 : i64} {
  func.func @_deconv_pair_kernel(%arg0: i32, %arg1: memref<1x34x128xbf16, #tpu.memory_space<vmem>>, %arg2: memref<384x256xbf16, #tpu.memory_space<vmem>>, %arg3: memref<1x256xf32, #tpu.memory_space<vmem>>, %arg4: memref<1x33x256xbf16, #tpu.memory_space<vmem>>) attributes {dimension_semantics = [#tpu.dimension_semantics<parallel>], iteration_bounds = array<i64: 2>, scalar_prefetch = 0 : i64, scratch_operands = 0 : i64, tpu.core_type = #tpu.core_type<tc>, window_params = [{transform_indices = @transform_0, window_bounds = array<i64: 1, 34, 128>}, {pipeline_mode = #tpu.pipeline_mode<synchronous>, transform_indices = @transform_1, window_bounds = array<i64: 384, 256>}, {pipeline_mode = #tpu.pipeline_mode<synchronous>, transform_indices = @transform_2, window_bounds = array<i64: 1, 256>}, {transform_indices = @transform_3, window_bounds = array<i64: 1, 33, 256>}]} {
    %c0 = arith.constant 0 : index
    %c0_0 = arith.constant 0 : index
    %c0_1 = arith.constant 0 : index
    %0 = vector.load %arg1[%c0, %c0_0, %c0_1] : memref<1x34x128xbf16, #tpu.memory_space<vmem>>, vector<1x32x128xbf16>
    %1 = vector.shape_cast %0 : vector<1x32x128xbf16> to vector<32x128xbf16>
    %c0_2 = arith.constant 0 : index
    %c1 = arith.constant 1 : index
    %c0_3 = arith.constant 0 : index
    %2 = vector.load %arg1[%c0_2, %c1, %c0_3] : memref<1x34x128xbf16, #tpu.memory_space<vmem>>, vector<1x32x128xbf16>
    %3 = vector.shape_cast %2 : vector<1x32x128xbf16> to vector<32x128xbf16>
    %c0_4 = arith.constant 0 : index
    %c2 = arith.constant 2 : index
    %c0_5 = arith.constant 0 : index
    %4 = vector.load %arg1[%c0_4, %c2, %c0_5] : memref<1x34x128xbf16, #tpu.memory_space<vmem>>, vector<1x32x128xbf16>
    %5 = vector.shape_cast %4 : vector<1x32x128xbf16> to vector<32x128xbf16>
    %6 = tpu.concatenate %1, %3, %5 in 1 : vector<32x128xbf16>, vector<32x128xbf16>, vector<32x128xbf16> -> vector<32x384xbf16>
    %c0_6 = arith.constant 0 : index
    %c0_7 = arith.constant 0 : index
    %7 = vector.load %arg2[%c0_6, %c0_7] : memref<384x256xbf16, #tpu.memory_space<vmem>>, vector<384x256xbf16>
    %cst = arith.constant dense<0.000000e+00> : vector<32x256xf32>
    %8 = tpu.matmul %6, %7, %cst {dimension_numbers = #tpu.dot_dimension_numbers<[1], [0], [0], [1], [0, 0, 1, 1], [], []>} : vector<32x384xbf16>, vector<384x256xbf16>, vector<32x256xf32> -> vector<32x256xf32>
    %c0_8 = arith.constant 0 : index
    %c0_9 = arith.constant 0 : index
    %9 = vector.load %arg3[%c0_8, %c0_9] : memref<1x256xf32, #tpu.memory_space<vmem>>, vector<1x256xf32>
    %10 = vector.broadcast %9 : vector<1x256xf32> to vector<32x256xf32>
    %11 = arith.addf %8, %10 : vector<32x256xf32>
    %cst_10 = arith.constant 0.000000e+00 : f32
    %12 = vector.broadcast %cst_10 : f32 to vector<32x256xf32>
    %13 = arith.maximumf %11, %12 : vector<32x256xf32>
    %14 = vector.extract_strided_slice %13 {offsets = [0, 0], sizes = [32, 128], strides = [1, 1]} : vector<32x256xf32> to vector<32x128xf32>
    %15 = arith.truncf %14 : vector<32x128xf32> to vector<32x128xbf16>
    %16 = vector.extract_strided_slice %13 {offsets = [0, 128], sizes = [32, 128], strides = [1, 1]} : vector<32x256xf32> to vector<32x128xf32>
    %17 = arith.truncf %16 : vector<32x128xf32> to vector<32x128xbf16>
    %c0_11 = arith.constant 0 : index
    %c1_12 = arith.constant 1 : index
    %c0_13 = arith.constant 0 : index
    %18 = vector.load %arg4[%c0_11, %c1_12, %c0_13] : memref<1x33x256xbf16, #tpu.memory_space<vmem>>, vector<1x32x128xbf16>
    %19 = vector.shape_cast %18 : vector<1x32x128xbf16> to vector<32x128xbf16>
    %20 = vector.shape_cast %17 : vector<32x128xbf16> to vector<1x32x128xbf16>
    tpu.vector_store %arg4[%c0_11, %c1_12, %c0_13], %20 {strides = array<i32>} : memref<1x33x256xbf16, #tpu.memory_space<vmem>>, vector<1x32x128xbf16>,
    %c0_14 = arith.constant 0 : index
    %c0_15 = arith.constant 0 : index
    %c128 = arith.constant 128 : index
    %21 = vector.load %arg4[%c0_14, %c0_15, %c128] : memref<1x33x256xbf16, #tpu.memory_space<vmem>>, vector<1x32x128xbf16>
    %22 = vector.shape_cast %21 : vector<1x32x128xbf16> to vector<32x128xbf16>
    %23 = vector.shape_cast %15 : vector<32x128xbf16> to vector<1x32x128xbf16>
    tpu.vector_store %arg4[%c0_14, %c0_15, %c128], %23 {strides = array<i32>} : memref<1x33x256xbf16, #tpu.memory_space<vmem>>, vector<1x32x128xbf16>,
    %cst_16 = arith.constant 0.000000e+00 : bf16
    %24 = vector.broadcast %cst_16 : bf16 to vector<1x128xbf16>
    %c0_17 = arith.constant 0 : index
    %c0_18 = arith.constant 0 : index
    %c0_19 = arith.constant 0 : index
    %25 = vector.load %arg4[%c0_17, %c0_18, %c0_19] : memref<1x33x256xbf16, #tpu.memory_space<vmem>>, vector<1x1x128xbf16>
    %26 = vector.shape_cast %25 : vector<1x1x128xbf16> to vector<1x128xbf16>
    %27 = vector.shape_cast %24 : vector<1x128xbf16> to vector<1x1x128xbf16>
    tpu.vector_store %arg4[%c0_17, %c0_18, %c0_19], %27 {strides = array<i32>} : memref<1x33x256xbf16, #tpu.memory_space<vmem>>, vector<1x1x128xbf16>,
    %cst_20 = arith.constant 0.000000e+00 : bf16
    %28 = vector.broadcast %cst_20 : bf16 to vector<1x128xbf16>
    %c0_21 = arith.constant 0 : index
    %c32 = arith.constant 32 : index
    %c128_22 = arith.constant 128 : index
    %29 = vector.load %arg4[%c0_21, %c32, %c128_22] : memref<1x33x256xbf16, #tpu.memory_space<vmem>>, vector<1x1x128xbf16>
    %30 = vector.shape_cast %29 : vector<1x1x128xbf16> to vector<1x128xbf16>
    %31 = vector.shape_cast %28 : vector<1x128xbf16> to vector<1x1x128xbf16>
    tpu.vector_store %arg4[%c0_21, %c32, %c128_22], %31 {strides = array<i32>} : memref<1x33x256xbf16, #tpu.memory_space<vmem>>, vector<1x1x128xbf16>,
    return
  }
  func.func @transform_0(%arg0: i32) -> (i32, i32, i32) {
    %c0_i32 = arith.constant 0 : i32
    %c0_i32_0 = arith.constant 0 : i32
    %c0_i32_1 = arith.constant 0 : i32
    return %arg0, %c0_i32, %c0_i32_0 : i32, i32, i32
  }
  func.func @transform_1(%arg0: i32) -> (i32, i32) {
    %c0_i32 = arith.constant 0 : i32
    %c0_i32_0 = arith.constant 0 : i32
    %c0_i32_1 = arith.constant 0 : i32
    return %c0_i32, %c0_i32_0 : i32, i32
  }
  func.func @transform_2(%arg0: i32) -> (i32, i32) {
    %c0_i32 = arith.constant 0 : i32
    %c0_i32_0 = arith.constant 0 : i32
    %c0_i32_1 = arith.constant 0 : i32
    return %c0_i32, %c0_i32_0 : i32, i32
  }
  func.func @transform_3(%arg0: i32) -> (i32, i32, i32) {
    %c0_i32 = arith.constant 0 : i32
    %c0_i32_0 = arith.constant 0 : i32
    %c0_i32_1 = arith.constant 0 : i32
    return %arg0, %c0_i32, %c0_i32_0 : i32, i32, i32
  }
}

module attributes {stable_mosaic.version = 11 : i64} {
  func.func @_deconv_pair_kernel(%arg0: i32, %arg1: memref<1x18x128xbf16, #tpu.memory_space<vmem>>, %arg2: memref<384x256xbf16, #tpu.memory_space<vmem>>, %arg3: memref<1x256xf32, #tpu.memory_space<vmem>>, %arg4: memref<1x17x256xbf16, #tpu.memory_space<vmem>>) attributes {dimension_semantics = [#tpu.dimension_semantics<parallel>], iteration_bounds = array<i64: 2>, scalar_prefetch = 0 : i64, scratch_operands = 0 : i64, tpu.core_type = #tpu.core_type<tc>, window_params = [{transform_indices = @transform_0, window_bounds = array<i64: 1, 18, 128>}, {pipeline_mode = #tpu.pipeline_mode<synchronous>, transform_indices = @transform_1, window_bounds = array<i64: 384, 256>}, {pipeline_mode = #tpu.pipeline_mode<synchronous>, transform_indices = @transform_2, window_bounds = array<i64: 1, 256>}, {transform_indices = @transform_3, window_bounds = array<i64: 1, 17, 256>}]} {
    %c0 = arith.constant 0 : index
    %c0_0 = arith.constant 0 : index
    %c0_1 = arith.constant 0 : index
    %0 = vector.load %arg1[%c0, %c0_0, %c0_1] : memref<1x18x128xbf16, #tpu.memory_space<vmem>>, vector<1x16x128xbf16>
    %1 = vector.shape_cast %0 : vector<1x16x128xbf16> to vector<16x128xbf16>
    %c0_2 = arith.constant 0 : index
    %c1 = arith.constant 1 : index
    %c0_3 = arith.constant 0 : index
    %2 = vector.load %arg1[%c0_2, %c1, %c0_3] : memref<1x18x128xbf16, #tpu.memory_space<vmem>>, vector<1x16x128xbf16>
    %3 = vector.shape_cast %2 : vector<1x16x128xbf16> to vector<16x128xbf16>
    %c0_4 = arith.constant 0 : index
    %c2 = arith.constant 2 : index
    %c0_5 = arith.constant 0 : index
    %4 = vector.load %arg1[%c0_4, %c2, %c0_5] : memref<1x18x128xbf16, #tpu.memory_space<vmem>>, vector<1x16x128xbf16>
    %5 = vector.shape_cast %4 : vector<1x16x128xbf16> to vector<16x128xbf16>
    %6 = tpu.concatenate %1, %3, %5 in 1 : vector<16x128xbf16>, vector<16x128xbf16>, vector<16x128xbf16> -> vector<16x384xbf16>
    %c0_6 = arith.constant 0 : index
    %c0_7 = arith.constant 0 : index
    %7 = vector.load %arg2[%c0_6, %c0_7] : memref<384x256xbf16, #tpu.memory_space<vmem>>, vector<384x256xbf16>
    %cst = arith.constant dense<0.000000e+00> : vector<16x256xf32>
    %8 = tpu.matmul %6, %7, %cst {dimension_numbers = #tpu.dot_dimension_numbers<[1], [0], [0], [1], [0, 0, 1, 1], [], []>} : vector<16x384xbf16>, vector<384x256xbf16>, vector<16x256xf32> -> vector<16x256xf32>
    %c0_8 = arith.constant 0 : index
    %c0_9 = arith.constant 0 : index
    %9 = vector.load %arg3[%c0_8, %c0_9] : memref<1x256xf32, #tpu.memory_space<vmem>>, vector<1x256xf32>
    %10 = vector.broadcast %9 : vector<1x256xf32> to vector<16x256xf32>
    %11 = arith.addf %8, %10 : vector<16x256xf32>
    %cst_10 = arith.constant 0.000000e+00 : f32
    %12 = vector.broadcast %cst_10 : f32 to vector<16x256xf32>
    %13 = arith.maximumf %11, %12 : vector<16x256xf32>
    %14 = vector.extract_strided_slice %13 {offsets = [0, 0], sizes = [16, 128], strides = [1, 1]} : vector<16x256xf32> to vector<16x128xf32>
    %15 = arith.truncf %14 : vector<16x128xf32> to vector<16x128xbf16>
    %16 = vector.extract_strided_slice %13 {offsets = [0, 128], sizes = [16, 128], strides = [1, 1]} : vector<16x256xf32> to vector<16x128xf32>
    %17 = arith.truncf %16 : vector<16x128xf32> to vector<16x128xbf16>
    %c0_11 = arith.constant 0 : index
    %c1_12 = arith.constant 1 : index
    %c0_13 = arith.constant 0 : index
    %18 = vector.load %arg4[%c0_11, %c1_12, %c0_13] : memref<1x17x256xbf16, #tpu.memory_space<vmem>>, vector<1x16x128xbf16>
    %19 = vector.shape_cast %18 : vector<1x16x128xbf16> to vector<16x128xbf16>
    %20 = vector.shape_cast %17 : vector<16x128xbf16> to vector<1x16x128xbf16>
    tpu.vector_store %arg4[%c0_11, %c1_12, %c0_13], %20 {strides = array<i32>} : memref<1x17x256xbf16, #tpu.memory_space<vmem>>, vector<1x16x128xbf16>,
    %c0_14 = arith.constant 0 : index
    %c0_15 = arith.constant 0 : index
    %c128 = arith.constant 128 : index
    %21 = vector.load %arg4[%c0_14, %c0_15, %c128] : memref<1x17x256xbf16, #tpu.memory_space<vmem>>, vector<1x16x128xbf16>
    %22 = vector.shape_cast %21 : vector<1x16x128xbf16> to vector<16x128xbf16>
    %23 = vector.shape_cast %15 : vector<16x128xbf16> to vector<1x16x128xbf16>
    tpu.vector_store %arg4[%c0_14, %c0_15, %c128], %23 {strides = array<i32>} : memref<1x17x256xbf16, #tpu.memory_space<vmem>>, vector<1x16x128xbf16>,
    %cst_16 = arith.constant 0.000000e+00 : bf16
    %24 = vector.broadcast %cst_16 : bf16 to vector<1x128xbf16>
    %c0_17 = arith.constant 0 : index
    %c0_18 = arith.constant 0 : index
    %c0_19 = arith.constant 0 : index
    %25 = vector.load %arg4[%c0_17, %c0_18, %c0_19] : memref<1x17x256xbf16, #tpu.memory_space<vmem>>, vector<1x1x128xbf16>
    %26 = vector.shape_cast %25 : vector<1x1x128xbf16> to vector<1x128xbf16>
    %27 = vector.shape_cast %24 : vector<1x128xbf16> to vector<1x1x128xbf16>
    tpu.vector_store %arg4[%c0_17, %c0_18, %c0_19], %27 {strides = array<i32>} : memref<1x17x256xbf16, #tpu.memory_space<vmem>>, vector<1x1x128xbf16>,
    %cst_20 = arith.constant 0.000000e+00 : bf16
    %28 = vector.broadcast %cst_20 : bf16 to vector<1x128xbf16>
    %c0_21 = arith.constant 0 : index
    %c16 = arith.constant 16 : index
    %c128_22 = arith.constant 128 : index
    %29 = vector.load %arg4[%c0_21, %c16, %c128_22] : memref<1x17x256xbf16, #tpu.memory_space<vmem>>, vector<1x1x128xbf16>
    %30 = vector.shape_cast %29 : vector<1x1x128xbf16> to vector<1x128xbf16>
    %31 = vector.shape_cast %28 : vector<1x128xbf16> to vector<1x1x128xbf16>
    tpu.vector_store %arg4[%c0_21, %c16, %c128_22], %31 {strides = array<i32>} : memref<1x17x256xbf16, #tpu.memory_space<vmem>>, vector<1x1x128xbf16>,
    return
  }
  func.func @transform_0(%arg0: i32) -> (i32, i32, i32) {
    %c0_i32 = arith.constant 0 : i32
    %c0_i32_0 = arith.constant 0 : i32
    %c0_i32_1 = arith.constant 0 : i32
    return %arg0, %c0_i32, %c0_i32_0 : i32, i32, i32
  }
  func.func @transform_1(%arg0: i32) -> (i32, i32) {
    %c0_i32 = arith.constant 0 : i32
    %c0_i32_0 = arith.constant 0 : i32
    %c0_i32_1 = arith.constant 0 : i32
    return %c0_i32, %c0_i32_0 : i32, i32
  }
  func.func @transform_2(%arg0: i32) -> (i32, i32) {
    %c0_i32 = arith.constant 0 : i32
    %c0_i32_0 = arith.constant 0 : i32
    %c0_i32_1 = arith.constant 0 : i32
    return %c0_i32, %c0_i32_0 : i32, i32
  }
  func.func @transform_3(%arg0: i32) -> (i32, i32, i32) {
    %c0_i32 = arith.constant 0 : i32
    %c0_i32_0 = arith.constant 0 : i32
    %c0_i32_1 = arith.constant 0 : i32
    return %arg0, %c0_i32, %c0_i32_0 : i32, i32, i32
  }
}

module attributes {stable_mosaic.version = 11 : i64} {
  func.func @_deconv_pair_kernel(%arg0: i32, %arg1: memref<1x66x128xbf16, #tpu.memory_space<vmem>>, %arg2: memref<384x256xbf16, #tpu.memory_space<vmem>>, %arg3: memref<1x256xf32, #tpu.memory_space<vmem>>, %arg4: memref<1x65x256xbf16, #tpu.memory_space<vmem>>) attributes {dimension_semantics = [#tpu.dimension_semantics<parallel>], iteration_bounds = array<i64: 2>, scalar_prefetch = 0 : i64, scratch_operands = 0 : i64, tpu.core_type = #tpu.core_type<tc>, window_params = [{transform_indices = @transform_0, window_bounds = array<i64: 1, 66, 128>}, {pipeline_mode = #tpu.pipeline_mode<synchronous>, transform_indices = @transform_1, window_bounds = array<i64: 384, 256>}, {pipeline_mode = #tpu.pipeline_mode<synchronous>, transform_indices = @transform_2, window_bounds = array<i64: 1, 256>}, {transform_indices = @transform_3, window_bounds = array<i64: 1, 65, 256>}]} {
    %c0 = arith.constant 0 : index
    %c0_0 = arith.constant 0 : index
    %c0_1 = arith.constant 0 : index
    %0 = vector.load %arg1[%c0, %c0_0, %c0_1] : memref<1x66x128xbf16, #tpu.memory_space<vmem>>, vector<1x64x128xbf16>
    %1 = vector.shape_cast %0 : vector<1x64x128xbf16> to vector<64x128xbf16>
    %c0_2 = arith.constant 0 : index
    %c1 = arith.constant 1 : index
    %c0_3 = arith.constant 0 : index
    %2 = vector.load %arg1[%c0_2, %c1, %c0_3] : memref<1x66x128xbf16, #tpu.memory_space<vmem>>, vector<1x64x128xbf16>
    %3 = vector.shape_cast %2 : vector<1x64x128xbf16> to vector<64x128xbf16>
    %c0_4 = arith.constant 0 : index
    %c2 = arith.constant 2 : index
    %c0_5 = arith.constant 0 : index
    %4 = vector.load %arg1[%c0_4, %c2, %c0_5] : memref<1x66x128xbf16, #tpu.memory_space<vmem>>, vector<1x64x128xbf16>
    %5 = vector.shape_cast %4 : vector<1x64x128xbf16> to vector<64x128xbf16>
    %6 = tpu.concatenate %1, %3, %5 in 1 : vector<64x128xbf16>, vector<64x128xbf16>, vector<64x128xbf16> -> vector<64x384xbf16>
    %c0_6 = arith.constant 0 : index
    %c0_7 = arith.constant 0 : index
    %7 = vector.load %arg2[%c0_6, %c0_7] : memref<384x256xbf16, #tpu.memory_space<vmem>>, vector<384x256xbf16>
    %cst = arith.constant dense<0.000000e+00> : vector<64x256xf32>
    %8 = tpu.matmul %6, %7, %cst {dimension_numbers = #tpu.dot_dimension_numbers<[1], [0], [0], [1], [0, 0, 1, 1], [], []>} : vector<64x384xbf16>, vector<384x256xbf16>, vector<64x256xf32> -> vector<64x256xf32>
    %c0_8 = arith.constant 0 : index
    %c0_9 = arith.constant 0 : index
    %9 = vector.load %arg3[%c0_8, %c0_9] : memref<1x256xf32, #tpu.memory_space<vmem>>, vector<1x256xf32>
    %10 = vector.broadcast %9 : vector<1x256xf32> to vector<64x256xf32>
    %11 = arith.addf %8, %10 : vector<64x256xf32>
    %cst_10 = arith.constant 0.000000e+00 : f32
    %12 = vector.broadcast %cst_10 : f32 to vector<64x256xf32>
    %13 = arith.maximumf %11, %12 : vector<64x256xf32>
    %14 = vector.extract_strided_slice %13 {offsets = [0, 0], sizes = [64, 128], strides = [1, 1]} : vector<64x256xf32> to vector<64x128xf32>
    %15 = arith.truncf %14 : vector<64x128xf32> to vector<64x128xbf16>
    %16 = vector.extract_strided_slice %13 {offsets = [0, 128], sizes = [64, 128], strides = [1, 1]} : vector<64x256xf32> to vector<64x128xf32>
    %17 = arith.truncf %16 : vector<64x128xf32> to vector<64x128xbf16>
    %c0_11 = arith.constant 0 : index
    %c1_12 = arith.constant 1 : index
    %c0_13 = arith.constant 0 : index
    %18 = vector.load %arg4[%c0_11, %c1_12, %c0_13] : memref<1x65x256xbf16, #tpu.memory_space<vmem>>, vector<1x64x128xbf16>
    %19 = vector.shape_cast %18 : vector<1x64x128xbf16> to vector<64x128xbf16>
    %20 = vector.shape_cast %17 : vector<64x128xbf16> to vector<1x64x128xbf16>
    tpu.vector_store %arg4[%c0_11, %c1_12, %c0_13], %20 {strides = array<i32>} : memref<1x65x256xbf16, #tpu.memory_space<vmem>>, vector<1x64x128xbf16>,
    %c0_14 = arith.constant 0 : index
    %c0_15 = arith.constant 0 : index
    %c128 = arith.constant 128 : index
    %21 = vector.load %arg4[%c0_14, %c0_15, %c128] : memref<1x65x256xbf16, #tpu.memory_space<vmem>>, vector<1x64x128xbf16>
    %22 = vector.shape_cast %21 : vector<1x64x128xbf16> to vector<64x128xbf16>
    %23 = vector.shape_cast %15 : vector<64x128xbf16> to vector<1x64x128xbf16>
    tpu.vector_store %arg4[%c0_14, %c0_15, %c128], %23 {strides = array<i32>} : memref<1x65x256xbf16, #tpu.memory_space<vmem>>, vector<1x64x128xbf16>,
    %cst_16 = arith.constant 0.000000e+00 : bf16
    %24 = vector.broadcast %cst_16 : bf16 to vector<1x128xbf16>
    %c0_17 = arith.constant 0 : index
    %c0_18 = arith.constant 0 : index
    %c0_19 = arith.constant 0 : index
    %25 = vector.load %arg4[%c0_17, %c0_18, %c0_19] : memref<1x65x256xbf16, #tpu.memory_space<vmem>>, vector<1x1x128xbf16>
    %26 = vector.shape_cast %25 : vector<1x1x128xbf16> to vector<1x128xbf16>
    %27 = vector.shape_cast %24 : vector<1x128xbf16> to vector<1x1x128xbf16>
    tpu.vector_store %arg4[%c0_17, %c0_18, %c0_19], %27 {strides = array<i32>} : memref<1x65x256xbf16, #tpu.memory_space<vmem>>, vector<1x1x128xbf16>,
    %cst_20 = arith.constant 0.000000e+00 : bf16
    %28 = vector.broadcast %cst_20 : bf16 to vector<1x128xbf16>
    %c0_21 = arith.constant 0 : index
    %c64 = arith.constant 64 : index
    %c128_22 = arith.constant 128 : index
    %29 = vector.load %arg4[%c0_21, %c64, %c128_22] : memref<1x65x256xbf16, #tpu.memory_space<vmem>>, vector<1x1x128xbf16>
    %30 = vector.shape_cast %29 : vector<1x1x128xbf16> to vector<1x128xbf16>
    %31 = vector.shape_cast %28 : vector<1x128xbf16> to vector<1x1x128xbf16>
    tpu.vector_store %arg4[%c0_21, %c64, %c128_22], %31 {strides = array<i32>} : memref<1x65x256xbf16, #tpu.memory_space<vmem>>, vector<1x1x128xbf16>,
    return
  }
  func.func @transform_0(%arg0: i32) -> (i32, i32, i32) {
    %c0_i32 = arith.constant 0 : i32
    %c0_i32_0 = arith.constant 0 : i32
    %c0_i32_1 = arith.constant 0 : i32
    return %arg0, %c0_i32, %c0_i32_0 : i32, i32, i32
  }
  func.func @transform_1(%arg0: i32) -> (i32, i32) {
    %c0_i32 = arith.constant 0 : i32
    %c0_i32_0 = arith.constant 0 : i32
    %c0_i32_1 = arith.constant 0 : i32
    return %c0_i32, %c0_i32_0 : i32, i32
  }
  func.func @transform_2(%arg0: i32) -> (i32, i32) {
    %c0_i32 = arith.constant 0 : i32
    %c0_i32_0 = arith.constant 0 : i32
    %c0_i32_1 = arith.constant 0 : i32
    return %c0_i32, %c0_i32_0 : i32, i32
  }
  func.func @transform_3(%arg0: i32) -> (i32, i32, i32) {
    %c0_i32 = arith.constant 0 : i32
    %c0_i32_0 = arith.constant 0 : i32
    %c0_i32_1 = arith.constant 0 : i32
    return %arg0, %c0_i32, %c0_i32_0 : i32, i32, i32
  }
}

module attributes {stable_mosaic.version = 11 : i64} {
  func.func @_deconv_pair_kernel(%arg0: i32, %arg1: memref<1x130x128xbf16, #tpu.memory_space<vmem>>, %arg2: memref<384x256xbf16, #tpu.memory_space<vmem>>, %arg3: memref<1x256xf32, #tpu.memory_space<vmem>>, %arg4: memref<1x129x256xbf16, #tpu.memory_space<vmem>>) attributes {dimension_semantics = [#tpu.dimension_semantics<parallel>], iteration_bounds = array<i64: 2>, scalar_prefetch = 0 : i64, scratch_operands = 0 : i64, tpu.core_type = #tpu.core_type<tc>, window_params = [{transform_indices = @transform_0, window_bounds = array<i64: 1, 130, 128>}, {pipeline_mode = #tpu.pipeline_mode<synchronous>, transform_indices = @transform_1, window_bounds = array<i64: 384, 256>}, {pipeline_mode = #tpu.pipeline_mode<synchronous>, transform_indices = @transform_2, window_bounds = array<i64: 1, 256>}, {transform_indices = @transform_3, window_bounds = array<i64: 1, 129, 256>}]} {
    %c0 = arith.constant 0 : index
    %c0_0 = arith.constant 0 : index
    %c0_1 = arith.constant 0 : index
    %0 = vector.load %arg1[%c0, %c0_0, %c0_1] : memref<1x130x128xbf16, #tpu.memory_space<vmem>>, vector<1x128x128xbf16>
    %1 = vector.shape_cast %0 : vector<1x128x128xbf16> to vector<128x128xbf16>
    %c0_2 = arith.constant 0 : index
    %c1 = arith.constant 1 : index
    %c0_3 = arith.constant 0 : index
    %2 = vector.load %arg1[%c0_2, %c1, %c0_3] : memref<1x130x128xbf16, #tpu.memory_space<vmem>>, vector<1x128x128xbf16>
    %3 = vector.shape_cast %2 : vector<1x128x128xbf16> to vector<128x128xbf16>
    %c0_4 = arith.constant 0 : index
    %c2 = arith.constant 2 : index
    %c0_5 = arith.constant 0 : index
    %4 = vector.load %arg1[%c0_4, %c2, %c0_5] : memref<1x130x128xbf16, #tpu.memory_space<vmem>>, vector<1x128x128xbf16>
    %5 = vector.shape_cast %4 : vector<1x128x128xbf16> to vector<128x128xbf16>
    %6 = tpu.concatenate %1, %3, %5 in 1 : vector<128x128xbf16>, vector<128x128xbf16>, vector<128x128xbf16> -> vector<128x384xbf16>
    %c0_6 = arith.constant 0 : index
    %c0_7 = arith.constant 0 : index
    %7 = vector.load %arg2[%c0_6, %c0_7] : memref<384x256xbf16, #tpu.memory_space<vmem>>, vector<384x256xbf16>
    %cst = arith.constant dense<0.000000e+00> : vector<128x256xf32>
    %8 = tpu.matmul %6, %7, %cst {dimension_numbers = #tpu.dot_dimension_numbers<[1], [0], [0], [1], [0, 0, 1, 1], [], []>} : vector<128x384xbf16>, vector<384x256xbf16>, vector<128x256xf32> -> vector<128x256xf32>
    %c0_8 = arith.constant 0 : index
    %c0_9 = arith.constant 0 : index
    %9 = vector.load %arg3[%c0_8, %c0_9] : memref<1x256xf32, #tpu.memory_space<vmem>>, vector<1x256xf32>
    %10 = vector.broadcast %9 : vector<1x256xf32> to vector<128x256xf32>
    %11 = arith.addf %8, %10 : vector<128x256xf32>
    %cst_10 = arith.constant 0.000000e+00 : f32
    %12 = vector.broadcast %cst_10 : f32 to vector<128x256xf32>
    %13 = arith.maximumf %11, %12 : vector<128x256xf32>
    %14 = vector.extract_strided_slice %13 {offsets = [0, 0], sizes = [128, 128], strides = [1, 1]} : vector<128x256xf32> to vector<128x128xf32>
    %15 = arith.truncf %14 : vector<128x128xf32> to vector<128x128xbf16>
    %16 = vector.extract_strided_slice %13 {offsets = [0, 128], sizes = [128, 128], strides = [1, 1]} : vector<128x256xf32> to vector<128x128xf32>
    %17 = arith.truncf %16 : vector<128x128xf32> to vector<128x128xbf16>
    %c0_11 = arith.constant 0 : index
    %c1_12 = arith.constant 1 : index
    %c0_13 = arith.constant 0 : index
    %18 = vector.load %arg4[%c0_11, %c1_12, %c0_13] : memref<1x129x256xbf16, #tpu.memory_space<vmem>>, vector<1x128x128xbf16>
    %19 = vector.shape_cast %18 : vector<1x128x128xbf16> to vector<128x128xbf16>
    %20 = vector.shape_cast %17 : vector<128x128xbf16> to vector<1x128x128xbf16>
    tpu.vector_store %arg4[%c0_11, %c1_12, %c0_13], %20 {strides = array<i32>} : memref<1x129x256xbf16, #tpu.memory_space<vmem>>, vector<1x128x128xbf16>,
    %c0_14 = arith.constant 0 : index
    %c0_15 = arith.constant 0 : index
    %c128 = arith.constant 128 : index
    %21 = vector.load %arg4[%c0_14, %c0_15, %c128] : memref<1x129x256xbf16, #tpu.memory_space<vmem>>, vector<1x128x128xbf16>
    %22 = vector.shape_cast %21 : vector<1x128x128xbf16> to vector<128x128xbf16>
    %23 = vector.shape_cast %15 : vector<128x128xbf16> to vector<1x128x128xbf16>
    tpu.vector_store %arg4[%c0_14, %c0_15, %c128], %23 {strides = array<i32>} : memref<1x129x256xbf16, #tpu.memory_space<vmem>>, vector<1x128x128xbf16>,
    %cst_16 = arith.constant 0.000000e+00 : bf16
    %24 = vector.broadcast %cst_16 : bf16 to vector<1x128xbf16>
    %c0_17 = arith.constant 0 : index
    %c0_18 = arith.constant 0 : index
    %c0_19 = arith.constant 0 : index
    %25 = vector.load %arg4[%c0_17, %c0_18, %c0_19] : memref<1x129x256xbf16, #tpu.memory_space<vmem>>, vector<1x1x128xbf16>
    %26 = vector.shape_cast %25 : vector<1x1x128xbf16> to vector<1x128xbf16>
    %27 = vector.shape_cast %24 : vector<1x128xbf16> to vector<1x1x128xbf16>
    tpu.vector_store %arg4[%c0_17, %c0_18, %c0_19], %27 {strides = array<i32>} : memref<1x129x256xbf16, #tpu.memory_space<vmem>>, vector<1x1x128xbf16>,
    %cst_20 = arith.constant 0.000000e+00 : bf16
    %28 = vector.broadcast %cst_20 : bf16 to vector<1x128xbf16>
    %c0_21 = arith.constant 0 : index
    %c128_22 = arith.constant 128 : index
    %c128_23 = arith.constant 128 : index
    %29 = vector.load %arg4[%c0_21, %c128_22, %c128_23] : memref<1x129x256xbf16, #tpu.memory_space<vmem>>, vector<1x1x128xbf16>
    %30 = vector.shape_cast %29 : vector<1x1x128xbf16> to vector<1x128xbf16>
    %31 = vector.shape_cast %28 : vector<1x128xbf16> to vector<1x1x128xbf16>
    tpu.vector_store %arg4[%c0_21, %c128_22, %c128_23], %31 {strides = array<i32>} : memref<1x129x256xbf16, #tpu.memory_space<vmem>>, vector<1x1x128xbf16>,
    return
  }
  func.func @transform_0(%arg0: i32) -> (i32, i32, i32) {
    %c0_i32 = arith.constant 0 : i32
    %c0_i32_0 = arith.constant 0 : i32
    %c0_i32_1 = arith.constant 0 : i32
    return %arg0, %c0_i32, %c0_i32_0 : i32, i32, i32
  }
  func.func @transform_1(%arg0: i32) -> (i32, i32) {
    %c0_i32 = arith.constant 0 : i32
    %c0_i32_0 = arith.constant 0 : i32
    %c0_i32_1 = arith.constant 0 : i32
    return %c0_i32, %c0_i32_0 : i32, i32
  }
  func.func @transform_2(%arg0: i32) -> (i32, i32) {
    %c0_i32 = arith.constant 0 : i32
    %c0_i32_0 = arith.constant 0 : i32
    %c0_i32_1 = arith.constant 0 : i32
    return %c0_i32, %c0_i32_0 : i32, i32
  }
  func.func @transform_3(%arg0: i32) -> (i32, i32, i32) {
    %c0_i32 = arith.constant 0 : i32
    %c0_i32_0 = arith.constant 0 : i32
    %c0_i32_1 = arith.constant 0 : i32
    return %arg0, %c0_i32, %c0_i32_0 : i32, i32, i32
  }
}

module attributes {stable_mosaic.version = 11 : i64} {
  func.func @_deconv_pair_kernel(%arg0: i32, %arg1: memref<1x258x128xbf16, #tpu.memory_space<vmem>>, %arg2: memref<384x256xbf16, #tpu.memory_space<vmem>>, %arg3: memref<1x256xf32, #tpu.memory_space<vmem>>, %arg4: memref<1x128x256xf32, #tpu.memory_space<vmem>>) attributes {dimension_semantics = [#tpu.dimension_semantics<parallel>], iteration_bounds = array<i64: 2>, scalar_prefetch = 0 : i64, scratch_operands = 0 : i64, tpu.core_type = #tpu.core_type<tc>, window_params = [{transform_indices = @transform_0, window_bounds = array<i64: 1, 258, 128>}, {pipeline_mode = #tpu.pipeline_mode<synchronous>, transform_indices = @transform_1, window_bounds = array<i64: 384, 256>}, {pipeline_mode = #tpu.pipeline_mode<synchronous>, transform_indices = @transform_2, window_bounds = array<i64: 1, 256>}, {transform_indices = @transform_3, window_bounds = array<i64: 1, 128, 256>}]} {
    %c0 = arith.constant 0 : index
    %c64 = arith.constant 64 : index
    %c0_0 = arith.constant 0 : index
    %0 = vector.load %arg1[%c0, %c64, %c0_0] : memref<1x258x128xbf16, #tpu.memory_space<vmem>>, vector<1x128x128xbf16>
    %1 = vector.shape_cast %0 : vector<1x128x128xbf16> to vector<128x128xbf16>
    %c0_1 = arith.constant 0 : index
    %c65 = arith.constant 65 : index
    %c0_2 = arith.constant 0 : index
    %2 = vector.load %arg1[%c0_1, %c65, %c0_2] : memref<1x258x128xbf16, #tpu.memory_space<vmem>>, vector<1x128x128xbf16>
    %3 = vector.shape_cast %2 : vector<1x128x128xbf16> to vector<128x128xbf16>
    %c0_3 = arith.constant 0 : index
    %c66 = arith.constant 66 : index
    %c0_4 = arith.constant 0 : index
    %4 = vector.load %arg1[%c0_3, %c66, %c0_4] : memref<1x258x128xbf16, #tpu.memory_space<vmem>>, vector<1x128x128xbf16>
    %5 = vector.shape_cast %4 : vector<1x128x128xbf16> to vector<128x128xbf16>
    %6 = tpu.concatenate %1, %3, %5 in 1 : vector<128x128xbf16>, vector<128x128xbf16>, vector<128x128xbf16> -> vector<128x384xbf16>
    %c0_5 = arith.constant 0 : index
    %c0_6 = arith.constant 0 : index
    %7 = vector.load %arg2[%c0_5, %c0_6] : memref<384x256xbf16, #tpu.memory_space<vmem>>, vector<384x256xbf16>
    %cst = arith.constant dense<0.000000e+00> : vector<128x256xf32>
    %8 = tpu.matmul %6, %7, %cst {dimension_numbers = #tpu.dot_dimension_numbers<[1], [0], [0], [1], [0, 0, 1, 1], [], []>} : vector<128x384xbf16>, vector<384x256xbf16>, vector<128x256xf32> -> vector<128x256xf32>
    %c0_7 = arith.constant 0 : index
    %c0_8 = arith.constant 0 : index
    %9 = vector.load %arg3[%c0_7, %c0_8] : memref<1x256xf32, #tpu.memory_space<vmem>>, vector<1x256xf32>
    %10 = vector.broadcast %9 : vector<1x256xf32> to vector<128x256xf32>
    %11 = arith.addf %8, %10 : vector<128x256xf32>
    %cst_9 = arith.constant 0.000000e+00 : f32
    %12 = vector.broadcast %cst_9 : f32 to vector<128x256xf32>
    %13 = arith.maximumf %11, %12 : vector<128x256xf32>
    %c0_10 = arith.constant 0 : index
    %c0_11 = arith.constant 0 : index
    %c0_12 = arith.constant 0 : index
    %14 = vector.load %arg4[%c0_10, %c0_11, %c0_12] : memref<1x128x256xf32, #tpu.memory_space<vmem>>, vector<1x128x256xf32>
    %15 = vector.shape_cast %14 : vector<1x128x256xf32> to vector<128x256xf32>
    %16 = vector.shape_cast %13 : vector<128x256xf32> to vector<1x128x256xf32>
    tpu.vector_store %arg4[%c0_10, %c0_11, %c0_12], %16 {strides = array<i32>} : memref<1x128x256xf32, #tpu.memory_space<vmem>>, vector<1x128x256xf32>,
    return
  }
  func.func @transform_0(%arg0: i32) -> (i32, i32, i32) {
    %c0_i32 = arith.constant 0 : i32
    %c0_i32_0 = arith.constant 0 : i32
    %c0_i32_1 = arith.constant 0 : i32
    return %arg0, %c0_i32, %c0_i32_0 : i32, i32, i32
  }
  func.func @transform_1(%arg0: i32) -> (i32, i32) {
    %c0_i32 = arith.constant 0 : i32
    %c0_i32_0 = arith.constant 0 : i32
    %c0_i32_1 = arith.constant 0 : i32
    return %c0_i32, %c0_i32_0 : i32, i32
  }
  func.func @transform_2(%arg0: i32) -> (i32, i32) {
    %c0_i32 = arith.constant 0 : i32
    %c0_i32_0 = arith.constant 0 : i32
    %c0_i32_1 = arith.constant 0 : i32
    return %c0_i32, %c0_i32_0 : i32, i32
  }
  func.func @transform_3(%arg0: i32) -> (i32, i32, i32) {
    %c0_i32 = arith.constant 0 : i32
    %c0_i32_0 = arith.constant 0 : i32
    %c0_i32_1 = arith.constant 0 : i32
    return %arg0, %c0_i32, %c0_i32_0 : i32, i32, i32
  }
}

</mosaic_0001>

<bundles_post_ra>
// kernel: generator_img_v_forward.5
= control target key start
LH: loop header
LB: loop body
LE: loop exit
PB: predicated region body
PF: predicated region fallthrough
CT: control target
= control target key end

     0   :  { %8 = vsyncpa [#allocation3], 0  ;;  %s1124_s0 = inlined_call_operand.vmem [shape: bf16[2,18,128], index: 0, kind: input, shape index: {}]   ;;  %s1125_s1 = inlined_call_operand.hbm [shape: bf16[384,256], index: 1, kind: input, shape index: {}]   ;;  %s1126_s2 = inlined_call_operand.hbm [shape: f32[1,256], index: 2, kind: input, shape index: {}]   ;;  %s1127_s3 = inlined_call_operand.vmem [shape: bf16[2,17,256], index: 3, kind: output, shape index: {}]  }
   0x1   :  { %9 = vsyncpa [#allocation5], 0  ;;  %s1033_s12 = smov 0  }
   0x2 LB: > { %s1039_s13 = sadd.s32 4294967295, %s1006_s12   ;;  %p761_p0 = scmp.ge.s32.totalorder %s1006_s12, 1  ;;  %s1006_s12 = sphi %s1033_s12, %s15_s12  }
   0x3   : > { %p114_p1 = scmp.lt.s32.totalorder %s1006_s12, 3  ;;  %s1008_s14 = smov [#allocation2]  }
   0x4   : > { %s126_s15 = sshll.u32 %s1008_s14, 4  ;;  %p848_p3 = scmp.eq.s32.totalorder %s1039_s13, 0  ;;  %s127_s15 = int_to_ptr.vmem [resolvable:$true] %s126_s15 }
   0x5   : > { %p1043_p2 = pnand %p761_p0, %p114_p1  ;;  %s1009_s17 = smov [#allocation4]  }
   0x6   : > { %s140_s18 = sshll.u32 %s1009_s17, 4  ;;  %s951_s20 = scalar_lea.vmem %s127_s15, 6144  ;;  %s141_s18 = int_to_ptr.vmem [resolvable:$true] %s140_s18 }
   0x7   : > { %p841_p4 = pneg %p1043_p2  ;;  %p952_p7 = scmp.ne.s32.totalorder %s127_s15, %s951_s20 }
   0x8   : > { %p959_p10 = scmp.lt.s32.totalorder %s127_s15, %s127_s15  ;;  %p960_p11 = scmp.lt.s32.totalorder %s951_s20, %s951_s20 }
   0x9   : > { %p1052_p5 = pnand %p848_p3, %p841_p4 }
   0xa   : > { %p961_p12 = por %p960_p11, %p959_p10 }
   0xb   : > { %p942_p6 = pneg %p1052_p5 }
   0xd   : > { %p954_p8 = pnand %p952_p7, %p942_p6 }
   0xf   : > { %p955_p9 = pneg %p954_p8 }
  0x11   : > { %p962_p13 = pnand %p961_p12, %p955_p9 }
  0x13   : > { %965 = shalt.err (!%p962_p13)
}
  0x14   : > { %s1010_s21 = smov 128   ;;  %s1011_s22 = smov 8  }
  0x15   : > { %844 = dma.hbm_to_vmem [thread:$0]  (!%p1052_p5), %s1125_s1, 6144, %s127_s15, [#allocation3], %s1010_s21, %s1010_s21, %s1011_s22  }
  0x16   : > { %s977_s25 = scalar_lea.vmem %s141_s18, 32  ;;  %p985_p7 = scmp.lt.s32.totalorder %s141_s18, %s141_s18 }
  0x17   : > { %p978_p0 = scmp.ne.s32.totalorder %s141_s18, %s977_s25  ;;  %p986_p8 = scmp.lt.s32.totalorder %s977_s25, %s977_s25 }
  0x19   : > { %p980_p1 = pnand %p978_p0, %p942_p6  ;;  %p987_p10 = por %p986_p8, %p985_p7 }
  0x1b   : > { %p981_p4 = pneg %p980_p1 }
  0x1d   : > { %p988_p9 = pnand %p987_p10, %p981_p4 }
  0x1f   : > { %991 = shalt.err (!%p988_p9)
}
  0x20   : > { %847 = dma.hbm_to_vmem [thread:$0]  (!%p1052_p5), %s1126_s2, 32, %s141_s18, [#allocation5]  }
  0x21   : > { %161 = sbr.rel (%p1043_p2) target bundleno = 326 (0x146), region = 32 }
  0x26   : > { %997 = dma.done.wait (%p848_p3), [#allocation3], 6144  }
  0x27   : > { %999 = vsyncadd (%p848_p3), [#allocation3], 4294961152 }
  0x28   : > { %1001 = dma.done.wait (%p848_p3), [#allocation5], 32  }
  0x29   : > { %1003 = vsyncadd (%p848_p3), [#allocation5], 4294967264  ;;  %v1012_v0 = vmov 0   ;;  %v865_v1 = vld [vmem:[#allocation2 + $0x74] ss:$8 sps:$4 sm:$0xff]   ;;  %p189_p2 = scmp.lt.s32.totalorder %s1039_s13, 1 }
  0x2a   : > { %610 = vmatprep.mubr.bf16.mxu1 %v1012_v0  ;;  %v867_v2 = vld [vmem:[#allocation2 + $0x70] ss:$8 sps:$4 sm:$0xff]   ;;  %535 = vmatprep.subr.bf16.mxu0 %v865_v1  ;;  %v868_v3 = vld [vmem:[#allocation2 + $0x64] ss:$8 sps:$4 sm:$0xff]   ;;  %v870_v4 = vld [vmem:[#allocation2 + $0x60] ss:$8 sps:$4 sm:$0xff]  }
  0x2b   : > { %536 = vmatpush1.bf16.msra.mxu0 %v867_v2  ;;  %v871_v5 = vld [vmem:[#allocation2 + $0x54] ss:$8 sps:$4 sm:$0xff]   ;;  %v873_v6 = vld [vmem:[#allocation2 + $0x50] ss:$8 sps:$4 sm:$0xff]   ;;  %v874_v7 = vld [vmem:[#allocation2 + $0x44] ss:$8 sps:$4 sm:$0xff]  }
  0x2c   : > { %537 = vmatprep.subr.bf16.mxu0 %v868_v3  ;;  %v876_v8 = vld [vmem:[#allocation2 + $0x40] ss:$8 sps:$4 sm:$0xff]   ;;  %v888_v9 = vld [vmem:[#allocation2 + $0x174] ss:$8 sps:$4 sm:$0xff]   ;;  %v891_v10 = vld [vmem:[#allocation2 + $0x170] ss:$8 sps:$4 sm:$0xff]  }
  0x2d   : > { %v877_v11 = vld [vmem:[#allocation2 + $0x34] ss:$8 sps:$4 sm:$0xff]   ;;  %578 = vmatprep.subr.bf16.mxu1 %v888_v9  ;;  %v894_v12 = vld [vmem:[#allocation2 + $0x164] ss:$8 sps:$4 sm:$0xff]   ;;  %v897_v13 = vld [vmem:[#allocation2 + $0x160] ss:$8 sps:$4 sm:$0xff]  }
  0x2e   : > { %579 = vmatpush1.bf16.msra.mxu1 %v891_v10  ;;  %v879_v14 = vld [vmem:[#allocation2 + $0x30] ss:$8 sps:$4 sm:$0xff]   ;;  %v880_v15 = vld [vmem:[#allocation2 + $0x24] ss:$8 sps:$4 sm:$0xff]   ;;  %v900_v16 = vld [vmem:[#allocation2 + $0x154] ss:$8 sps:$4 sm:$0xff]  }
  0x2f   : > { %538 = vmatpush1.bf16.msra.mxu0 %v870_v4  ;;  %580 = vmatprep.subr.bf16.mxu1 %v894_v12  ;;  %v903_v17 = vld [vmem:[#allocation2 + $0x150] ss:$8 sps:$4 sm:$0xff]   ;;  %v882_v18 = vld [vmem:[#allocation2 + $0x20] ss:$8 sps:$4 sm:$0xff]   ;;  %v906_v19 = vld [vmem:[#allocation2 + $0x144] ss:$8 sps:$4 sm:$0xff]   ;;  %v285_v4 = vlaneseq }
  0x30   : > { %539 = vmatprep.subr.bf16.mxu0 %v871_v5  ;;  %v883_v20 = vld [vmem:[#allocation2 + $0x14] ss:$8 sps:$4 sm:$0xff]   ;;  %s1133_s13 = smov (!%p189_p2, %s1039_s13), 1  ;;  %v885_v21 = vld [vmem:[#allocation2 + $0x10] ss:$8 sps:$4 sm:$0xff]   ;;  %vm230_vm1 = vcmask 1046528  }
  0x31   : > { %v909_v22 = vld [vmem:[#allocation2 + $0x140] ss:$8 sps:$4 sm:$0xff]   ;;  %v912_v23 = vld [vmem:[#allocation2 + $0x134] ss:$8 sps:$4 sm:$0xff]   ;;  %v886_v24 = vld [vmem:[#allocation2 + $0x4] ss:$8 sps:$4 sm:$0xff]  }
  0x32   : > { %581 = vmatpush1.bf16.msra.mxu1 %v897_v13  ;;  %s831_s28 = smul.u32 12, %s1133_s13  ;;  %v915_v25 = vld [vmem:[#allocation2 + $0x130] ss:$8 sps:$4 sm:$0xff]   ;;  %v890_v26 = vld [vmem:[#allocation2] ss:$8 sps:$4 sm:$0xff]   ;;  %vm662_vm3 = vcmask 1040384  }
  0x33   : > { %540 = vmatpush1.bf16.msra.mxu0 %v873_v6  ;;  %582 = vmatprep.subr.bf16.mxu1 %v900_v16  ;;  %v918_v27 = vld [vmem:[#allocation2 + $0x124] ss:$8 sps:$4 sm:$0xff]   ;;  %v892_v28 = vld [vmem:[#allocation2 + $0xf4] ss:$8 sps:$4 sm:$0xff]   ;;  %v896_v29 = vld [vmem:[#allocation2 + $0xf0] ss:$8 sps:$4 sm:$0xff]  }
  0x34   : > { %541 = vmatprep.subr.bf16.mxu0 %v874_v7  ;;  %s193_s4 = scalar_lea.vmem %s1124_s0, %s831_s28  ;;  %v898_v30 = vld [vmem:[#allocation2 + $0xe4] ss:$8 sps:$4 sm:$0xff]   ;;  %v921_v31 = vld [vmem:[#allocation2 + $0x120] ss:$8 sps:$4 sm:$0xff]   ;;  %v924_v32 = vld [vmem:[#allocation2 + $0x114] ss:$8 sps:$4 sm:$0xff]  }
  0x35   : > { %v200_v33 = vld [vmem:[%s193_s4] sm:$0xf]  ;;  %v201_v34 = vld [vmem:[%s193_s4 + $0x4] sm:$0xf]  ;;  %v927_v38 = vld [vmem:[#allocation2 + $0x110] ss:$8 sps:$4 sm:$0xff]  }
  0x36   : > { %583 = vmatpush1.bf16.msra.mxu1 %v903_v17  ;;  %v203_v35 = vld [vmem:[%s193_s4] sm:$0xe]  ;;  %v770_v36 = vcombine.low %v200_v33, %v201_v34  ;;  %v937_v37 = vld [vmem:[%s193_s4 + $0x8] ss:$0 sps:$4 sm:$0x11]   ;;  %s832_s5 = smul.u32 24, %s1133_s13 }
  0x37   : > { %542 = vmatpush1.bf16.msra.mxu0 %v876_v8  ;;  %584 = vmatprep.subr.bf16.mxu1 %v906_v19  ;;  %v772_v39 = vcombine.low %v203_v35, %v201_v34  ;;  %v902_v40 = vld [vmem:[#allocation2 + $0xe0] ss:$8 sps:$4 sm:$0xff]   ;;  %v930_v41 = vld [vmem:[#allocation2 + $0x104] ss:$8 sps:$4 sm:$0xff]   ;;  %v904_v44 = vld [vmem:[#allocation2 + $0xd4] ss:$8 sps:$4 sm:$0xff]  }
  0x38   : > { %543 = vmatprep.subr.bf16.mxu0 %v877_v11  ;;  %v215_v42 = vshrl.u32 %v770_v36, 16  ;;  %v217_v43 = vshll.u32 %v770_v36, 16  ;;  %v222_v45 = vshll.u32 %v937_v37, 16  ;;  %vm213_vm0 = vsmask.f32 7424  ;;  %s1096_s8 = scalar_lea.vmem %s1127_s3, %s832_s5 }
  0x39   : > { %v933_v47 = vld [vmem:[#allocation2 + $0x100] ss:$8 sps:$4 sm:$0xff]   ;;  %v231_v48 = vrot.slane %v772_v39, 1  ;;  %v232_v49 = vrot.slane %v937_v37, 1  ;;  %v908_v51 = vld [vmem:[#allocation2 + $0xd0] ss:$8 sps:$4 sm:$0xff]  }
  0x3a   : > { %585 = vmatpush1.bf16.msra.mxu1 %v909_v22  ;;  %v219_v46 = vrot.slane %v217_v43, 1  ;;  %v224_v50 = vrot.slane %v222_v45, 1  ;;  %v910_v53 = vld [vmem:[#allocation2 + $0xc4] ss:$8 sps:$4 sm:$0xff]   ;;  %v914_v56 = vld [vmem:[#allocation2 + $0xc0] ss:$8 sps:$4 sm:$0xff]  }
  0x3b   : > { %544 = vmatpush1.bf16.msra.mxu0 %v879_v14  ;;  %586 = vmatprep.subr.bf16.mxu1 %v912_v23  ;;  %v233_v55 = vsel %vm230_vm1, %v231_v48, %v232_v49  ;;  %v916_v57 = vld [vmem:[#allocation2 + $0xb4] ss:$8 sps:$4 sm:$0xff]   ;;  %v920_v58 = vld [vmem:[#allocation2 + $0xb0] ss:$8 sps:$4 sm:$0xff]   ;;  %v922_v59 = vld [vmem:[#allocation2 + $0xa4] ss:$8 sps:$4 sm:$0xff]  }
  0x3c   : > { %545 = vmatprep.subr.bf16.mxu0 %v880_v15  ;;  %v220_v52 = vor.u32 %v219_v46, %v215_v42  ;;  %v926_v60 = vld [vmem:[#allocation2 + $0xa0] ss:$8 sps:$4 sm:$0xff]   ;;  %v928_v61 = vld [vmem:[#allocation2 + $0x94] ss:$8 sps:$4 sm:$0xff]   ;;  %v932_v62 = vld [vmem:[#allocation2 + $0x90] ss:$8 sps:$4 sm:$0xff]  }
  0x3d   : > { %v934_v63 = vld [vmem:[#allocation2 + $0x84] ss:$8 sps:$4 sm:$0xff]   ;;  %v939_v0 = vld [vmem:[#allocation2 + $0x80] ss:$8 sps:$4 sm:$0xff]   ;;  %vm632_vm2 = vsmask.f32 256 }
  0x3e   : > { %587 = vmatpush1.bf16.msra.mxu1 %v915_v25  ;;  %v225_v54 = vsel %vm213_vm0, %v220_v52, %v224_v50  ;;  %vm1099_vm4 = vmand %vm662_vm3, %vm632_vm2  ;;  %v679_v2 = vld [vmem:[%s1096_s8 + $0x14] sm:$0x1]  ;;  %v286_v5 = vshrl.u32 %v285_v4, 7  ;;  %v283_v7 = vld [vmem:[#allocation4] sm:$0x3]  ;;  %vm655_vm5 = vcmask 1043456  }
  0x3f   : > { %546 = vmatpush1.bf16.msra.mxu0 %v882_v18  ;;  %588 = vmatprep.subr.bf16.mxu1 %v918_v27  ;;  %v680_v3 = vsel %vm1099_vm4, 0, %v679_v2  ;;  %vm656_vm6 = vsmask.f32 7938  ;;  %vm633_vm8 = vsmask.f32 4368 }
  0x40   : > { %547 = vmatprep.subr.bf16.mxu0 %v883_v20  ;;  %567 = vmatprep.mubr.bf16.mxu0 %v225_v54  ;;  %681 = vst [vmem:[%s1096_s8 + $0x14] sm:$0x1] %v680_v3  ;;  %v287_v6 = vsub.s32 0, %v286_v5  ;;  %v291_v8 = vsub.s32 1, %v286_v5  ;;  %vm657_vm7 = vmand %vm655_vm5, %vm656_vm6 }
  0x41   : > { %vm634_vm9 = vmor %vm632_vm2, %vm633_vm8 }
  0x42   : > { %589 = vmatpush1.bf16.msra.mxu1 %v921_v31  ;;  %v288_v10 = vrot.slane %v283_v7, %v287_v6  ;;  %v292_v11 = vrot.slane %v283_v7, %v291_v8 }
  0x43   : > { %548 = vmatpush1.bf16.msra.mxu0 %v885_v21  ;;  %590 = vmatprep.subr.bf16.mxu1 %v924_v32 }
  0x44   : > { %549 = vmatprep.subr.bf16.mxu0 %v886_v24 }
  0x46   : > { %591 = vmatpush1.bf16.msra.mxu1 %v927_v38  ;;  %v658_v38 = vld [vmem:[%s1096_s8] sm:$0xf] }
  0x47   : > { %550 = vmatpush1.bf16.msra.mxu0 %v890_v26  ;;  %592 = vmatprep.subr.bf16.mxu1 %v930_v41 }
  0x48   : > { %551 = vmatprep.subr.bf16.mxu0 %v892_v28 }
  0x4a   : > { %593 = vmatpush1.bf16.msra.mxu1 %v933_v47 }
  0x4b   : > { %552 = vmatpush2.bf16.msra.mxu0 %v896_v29 }
  0x4c   : > { %553 = vmatprep.subr.bf16.mxu0 %v898_v30 }
  0x4d   : > { %611 = vmatmul.mubr.bf16.vlgmr.msra.gmra.mxu1 %v233_v55 }
  0x4f   : > { %554 = vmatpush2.bf16.msra.mxu0 %v902_v40 }
  0x50   : > { %555 = vmatprep.subr.bf16.mxu0 %v904_v44  ;;  %v664_v44 = vld [vmem:[%s1096_s8 + $0x10] sm:$0x1] }
  0x53   : > { %556 = vmatpush2.bf16.msra.mxu0 %v908_v51 }
  0x54   : > { %557 = vmatprep.subr.bf16.mxu0 %v910_v53 }
  0x57   : > { %558 = vmatpush2.bf16.msra.mxu0 %v914_v56 }
  0x58   : > { %559 = vmatprep.subr.bf16.mxu0 %v916_v57 }
  0x5b   : > { %560 = vmatpush2.bf16.msra.mxu0 %v920_v58 }
  0x5c   : > { %561 = vmatprep.subr.bf16.mxu0 %v922_v59 }
  0x5f   : > { %562 = vmatpush2.bf16.msra.mxu0 %v926_v60 }
  0x60   : > { %563 = vmatprep.subr.bf16.mxu0 %v928_v61 }
  0x63   : > { %564 = vmatpush2.bf16.msra.mxu0 %v932_v62 }
  0x64   : > { %565 = vmatprep.subr.bf16.mxu0 %v934_v63 }
  0x67   : > { %566 = vmatpush2.bf16.msra.mxu0 %v939_v0 }
  0x6a   : > { %568 = vmatmul.mubr.bf16.vlgmr.msra.gmra.mxu0 %v770_v36 }
 0x10d   : > { %v612_v9 = vpop.f32.mrf.mxu1 }
 0x10f   : > { %v614_v12 = vpop.f32.mrf.mxu1 }
 0x111   : > { %v616_v18 = vpop.f32.mrf.mxu1 }
 0x113   : > { %v618_v28 = vpop.f32.mrf.mxu1 }
 0x12a   : > { %v569_v13 = vpop.f32.mrf.mxu0 }
 0x12b   : > { %v570_v14 = vadd.f32 %v569_v13, %v288_v10 }
 0x12c   : > { %v571_v15 = vpop.f32.mrf.mxu0 }
 0x12d   : > { %v613_v16 = vadd.f32 %v612_v9, %v570_v14  ;;  %v572_v17 = vadd.f32 %v571_v15, %v292_v11 }
 0x12e   : > { %v573_v19 = vpop.f32.mrf.mxu0 }
 0x12f   : > { %v621_v20 = vmax.f32 %v613_v16, 0.0  ;;  %v615_v21 = vadd.f32 %v614_v12, %v572_v17  ;;  %v574_v22 = vadd.f32 %v573_v19, %v288_v10 }
 0x130   : > { %v575_v23 = vpop.f32.mrf.mxu0 }
 0x131   : > { %v829_v24 = vpack.c.bf16 %v621_v20, %v621_v20  ;;  %v622_v25 = vmax.f32 %v615_v21, 0.0  ;;  %v617_v26 = vadd.f32 %v616_v18, %v574_v22  ;;  %v576_v27 = vadd.f32 %v575_v23, %v292_v11 }
 0x133   : > { %674 = vst [vmem:[%s1096_s8 + $0x4] sm:$0xf] %v829_v24  ;;  %v827_v29 = vpack.c.bf16 %v622_v25, %v622_v25  ;;  %v623_v30 = vmax.f32 %v617_v26, 0.0  ;;  %v619_v31 = vadd.f32 %v618_v28, %v576_v27 }
 0x135   : > { %v636_v32 = vshrl.u32 %v827_v29, 16  ;;  %v830_v33 = vpack.c.bf16 %v623_v30, %v623_v30  ;;  %v624_v34 = vmax.f32 %v619_v31, 0.0  ;;  %v639_v36 = vshll.u32 %v827_v29, 16 }
 0x137   : > { %v638_v35 = vrot.slane %v636_v32, 7  ;;  %675 = vst [vmem:[%s1096_s8 + $0xc] sm:$0xf] %v830_v33  ;;  %v828_v37 = vpack.c.bf16 %v624_v34, %v624_v34 }
 0x139   : > { %v641_v39 = vor.u32 %v639_v36, %v638_v35  ;;  %v644_v40 = vshrl.u32 %v828_v37, 16  ;;  %v647_v43 = vshll.u32 %v828_v37, 16  ;;  %v642_v45 = vrot.slane %v638_v35, 4 }
 0x13b   : > { %v659_v41 = vsel %vm657_vm7, %v641_v39, %v658_v38  ;;  %v646_v42 = vrot.slane %v644_v40, 7 }
 0x13c   : > { %660 = vst [vmem:[%s1096_s8] sm:$0xf] %v659_v41 }
 0x13d   : > { %v649_v46 = vor.u32 %v647_v43, %v646_v42  ;;  %v651_v47 = vrot.slane %v646_v42, 4 }
 0x13f   : > { %v650_v48 = vsel %vm634_vm9, %v642_v45, %v649_v46  ;;  %v665_v49 = vsel %vm1099_vm4, %v651_v47, %v664_v44 }
 0x140   : > { %661 = vst [vmem:[%s1096_s8 + $0x8] sm:$0xf] %v650_v48  ;;  %666 = vst [vmem:[%s1096_s8 + $0x10] sm:$0x1] %v665_v49 }
 0x143   : > { %v676_v50 = vld [vmem:[%s1096_s8] sm:$0x1] }
 0x144   : > { %v677_v51 = vsel %vm1099_vm4, 0, %v676_v50 }
 0x145   : > { %678 = vst [vmem:[%s1096_s8] sm:$0x1] %v677_v51 }
 0x146 PF: > { %s15_s12 = sadd.s32 1, %s1006_s12  }
 0x147   : > { %p12_p3 = scmp.ge.s32.totalorder %s15_s12, 4  }
 0x149   :  { %14 = sbr.rel (!%p12_p3) target bundleno = 2 (0x2), region = 71 }
 0x14e   :  { %703 = vsyncpa [#allocation3], 1 }
 0x14f   :  { %705 = vsyncpa [#allocation3 + $0x1], 1 }
 0x150   :  { %706 = vsyncpa [#allocation5], 1 }

// kernel: generator_img_v_forward.7
= control target key start
LH: loop header
LB: loop body
LE: loop exit
PB: predicated region body
PF: predicated region fallthrough
CT: control target
= control target key end

     0   :  { %8 = vsyncpa [#allocation3], 0  ;;  %s1489_s0 = inlined_call_operand.vmem [shape: bf16[2,66,128], index: 0, kind: input, shape index: {}]   ;;  %s1490_s1 = inlined_call_operand.hbm [shape: bf16[384,256], index: 1, kind: input, shape index: {}]   ;;  %s1491_s2 = inlined_call_operand.hbm [shape: f32[1,256], index: 2, kind: input, shape index: {}]   ;;  %s1492_s3 = inlined_call_operand.vmem [shape: bf16[2,65,256], index: 3, kind: output, shape index: {}]  }
   0x1   :  { %9 = vsyncpa [#allocation5], 0  ;;  %s1309_s12 = smov 0  }
   0x2 LB: > { %s1315_s13 = sadd.s32 4294967295, %s1282_s12   ;;  %p1007_p0 = scmp.ge.s32.totalorder %s1282_s12, 1  ;;  %s1282_s12 = sphi %s1309_s12, %s15_s12  }
   0x3   : > { %p114_p1 = scmp.lt.s32.totalorder %s1282_s12, 3  ;;  %s1284_s14 = smov [#allocation2]  }
   0x4   : > { %s126_s15 = sshll.u32 %s1284_s14, 4  ;;  %p1121_p3 = scmp.eq.s32.totalorder %s1315_s13, 0  ;;  %s127_s15 = int_to_ptr.vmem [resolvable:$true] %s126_s15 }
   0x5   : > { %p1319_p2 = pnand %p1007_p0, %p114_p1  ;;  %s1285_s17 = smov [#allocation4]  }
   0x6   : > { %s140_s18 = sshll.u32 %s1285_s17, 4  ;;  %s1227_s20 = scalar_lea.vmem %s127_s15, 6144  ;;  %s141_s18 = int_to_ptr.vmem [resolvable:$true] %s140_s18 }
   0x7   : > { %p1114_p4 = pneg %p1319_p2  ;;  %p1228_p7 = scmp.ne.s32.totalorder %s127_s15, %s1227_s20 }
   0x8   : > { %p1235_p10 = scmp.lt.s32.totalorder %s127_s15, %s127_s15  ;;  %p1236_p11 = scmp.lt.s32.totalorder %s1227_s20, %s1227_s20 }
   0x9   : > { %p1328_p5 = pnand %p1121_p3, %p1114_p4 }
   0xa   : > { %p1237_p12 = por %p1236_p11, %p1235_p10 }
   0xb   : > { %p1218_p6 = pneg %p1328_p5 }
   0xd   : > { %p1230_p8 = pnand %p1228_p7, %p1218_p6 }
   0xf   : > { %p1231_p9 = pneg %p1230_p8 }
  0x11   : > { %p1238_p13 = pnand %p1237_p12, %p1231_p9 }
  0x13   : > { %1241 = shalt.err (!%p1238_p13)
}
  0x14   : > { %s1286_s21 = smov 128   ;;  %s1287_s22 = smov 8  }
  0x15   : > { %1117 = dma.hbm_to_vmem [thread:$0]  (!%p1328_p5), %s1490_s1, 6144, %s127_s15, [#allocation3], %s1286_s21, %s1286_s21, %s1287_s22  }
  0x16   : > { %s1253_s25 = scalar_lea.vmem %s141_s18, 32  ;;  %p1261_p7 = scmp.lt.s32.totalorder %s141_s18, %s141_s18 }
  0x17   : > { %p1254_p0 = scmp.ne.s32.totalorder %s141_s18, %s1253_s25  ;;  %p1262_p8 = scmp.lt.s32.totalorder %s1253_s25, %s1253_s25 }
  0x19   : > { %p1256_p1 = pnand %p1254_p0, %p1218_p6  ;;  %p1263_p10 = por %p1262_p8, %p1261_p7 }
  0x1b   : > { %p1257_p4 = pneg %p1256_p1 }
  0x1d   : > { %p1264_p9 = pnand %p1263_p10, %p1257_p4 }
  0x1f   : > { %1267 = shalt.err (!%p1264_p9)
}
  0x20   : > { %1120 = dma.hbm_to_vmem [thread:$0]  (!%p1328_p5), %s1491_s2, 32, %s141_s18, [#allocation5]  }
  0x21   : > { %161 = sbr.rel (%p1319_p2) target bundleno = 346 (0x15a), region = 32 }
  0x26   : > { %1273 = dma.done.wait (%p1121_p3), [#allocation3], 6144  }
  0x27   : > { %1275 = vsyncadd (%p1121_p3), [#allocation3], 4294961152 }
  0x28   : > { %1277 = dma.done.wait (%p1121_p3), [#allocation5], 32  }
  0x29   : > { %1279 = vsyncadd (%p1121_p3), [#allocation5], 4294967264  ;;  %v1288_v0 = vmov 0   ;;  %v1138_v1 = vld [vmem:[#allocation2 + $0x74] ss:$8 sps:$4 sm:$0xff]   ;;  %p189_p2 = scmp.lt.s32.totalorder %s1315_s13, 1 }
  0x2a   : > { %700 = vmatprep.mubr.bf16.mxu1 %v1288_v0  ;;  %v1140_v2 = vld [vmem:[#allocation2 + $0x70] ss:$8 sps:$4 sm:$0xff]   ;;  %595 = vmatprep.subr.bf16.mxu0 %v1138_v1  ;;  %v1141_v3 = vld [vmem:[#allocation2 + $0x64] ss:$8 sps:$4 sm:$0xff]   ;;  %v1143_v4 = vld [vmem:[#allocation2 + $0x60] ss:$8 sps:$4 sm:$0xff]  }
  0x2b   : > { %596 = vmatpush1.bf16.msra.mxu0 %v1140_v2  ;;  %v1144_v5 = vld [vmem:[#allocation2 + $0x54] ss:$8 sps:$4 sm:$0xff]   ;;  %v1146_v6 = vld [vmem:[#allocation2 + $0x50] ss:$8 sps:$4 sm:$0xff]   ;;  %v1147_v7 = vld [vmem:[#allocation2 + $0x44] ss:$8 sps:$4 sm:$0xff]  }
  0x2c   : > { %597 = vmatprep.subr.bf16.mxu0 %v1141_v3  ;;  %v1149_v8 = vld [vmem:[#allocation2 + $0x40] ss:$8 sps:$4 sm:$0xff]   ;;  %v1161_v9 = vld [vmem:[#allocation2 + $0x174] ss:$8 sps:$4 sm:$0xff]   ;;  %v1164_v10 = vld [vmem:[#allocation2 + $0x170] ss:$8 sps:$4 sm:$0xff]  }
  0x2d   : > { %v1150_v11 = vld [vmem:[#allocation2 + $0x34] ss:$8 sps:$4 sm:$0xff]   ;;  %668 = vmatprep.subr.bf16.mxu1 %v1161_v9  ;;  %v1167_v12 = vld [vmem:[#allocation2 + $0x164] ss:$8 sps:$4 sm:$0xff]   ;;  %v1170_v13 = vld [vmem:[#allocation2 + $0x160] ss:$8 sps:$4 sm:$0xff]  }
  0x2e   : > { %669 = vmatpush1.bf16.msra.mxu1 %v1164_v10  ;;  %v1152_v14 = vld [vmem:[#allocation2 + $0x30] ss:$8 sps:$4 sm:$0xff]   ;;  %v1153_v15 = vld [vmem:[#allocation2 + $0x24] ss:$8 sps:$4 sm:$0xff]   ;;  %v1173_v16 = vld [vmem:[#allocation2 + $0x154] ss:$8 sps:$4 sm:$0xff]  }
  0x2f   : > { %598 = vmatpush1.bf16.msra.mxu0 %v1143_v4  ;;  %670 = vmatprep.subr.bf16.mxu1 %v1167_v12  ;;  %v1176_v17 = vld [vmem:[#allocation2 + $0x150] ss:$8 sps:$4 sm:$0xff]   ;;  %v1155_v18 = vld [vmem:[#allocation2 + $0x20] ss:$8 sps:$4 sm:$0xff]   ;;  %v1179_v19 = vld [vmem:[#allocation2 + $0x144] ss:$8 sps:$4 sm:$0xff]  }
  0x30   : > { %599 = vmatprep.subr.bf16.mxu0 %v1144_v5  ;;  %v1156_v20 = vld [vmem:[#allocation2 + $0x14] ss:$8 sps:$4 sm:$0xff]   ;;  %s1502_s13 = smov (!%p189_p2, %s1315_s13), 1  ;;  %v1158_v21 = vld [vmem:[#allocation2 + $0x10] ss:$8 sps:$4 sm:$0xff]   ;;  %vm281_vm1 = vcmask 1046528  }
  0x31   : > { %v1182_v22 = vld [vmem:[#allocation2 + $0x140] ss:$8 sps:$4 sm:$0xff]   ;;  %v1185_v23 = vld [vmem:[#allocation2 + $0x134] ss:$8 sps:$4 sm:$0xff]   ;;  %v1159_v24 = vld [vmem:[#allocation2 + $0x4] ss:$8 sps:$4 sm:$0xff]  }
  0x32   : > { %671 = vmatpush1.bf16.msra.mxu1 %v1170_v13  ;;  %s1104_s28 = smul.u32 36, %s1502_s13  ;;  %v1188_v25 = vld [vmem:[#allocation2 + $0x130] ss:$8 sps:$4 sm:$0xff]   ;;  %v1163_v26 = vld [vmem:[#allocation2] ss:$8 sps:$4 sm:$0xff]   ;;  %vm881_vm2 = vcmask 1040384  }
  0x33   : > { %600 = vmatpush1.bf16.msra.mxu0 %v1146_v6  ;;  %672 = vmatprep.subr.bf16.mxu1 %v1173_v16  ;;  %v1191_v27 = vld [vmem:[#allocation2 + $0x124] ss:$8 sps:$4 sm:$0xff]   ;;  %v1165_v28 = vld [vmem:[#allocation2 + $0xf4] ss:$8 sps:$4 sm:$0xff]   ;;  %v1169_v29 = vld [vmem:[#allocation2 + $0xf0] ss:$8 sps:$4 sm:$0xff]  }
  0x34   : > { %601 = vmatprep.subr.bf16.mxu0 %v1147_v7  ;;  %s1369_s4 = scalar_lea.vmem %s1489_s0, %s1104_s28  ;;  %v1171_v30 = vld [vmem:[#allocation2 + $0xe4] ss:$8 sps:$4 sm:$0xff]   ;;  %v1194_v31 = vld [vmem:[#allocation2 + $0x120] ss:$8 sps:$4 sm:$0xff]   ;;  %v1197_v32 = vld [vmem:[#allocation2 + $0x114] ss:$8 sps:$4 sm:$0xff]  }
  0x35   : > { %v200_v33 = vld [vmem:[%s1369_s4] sm:$0xf]  ;;  %v201_v34 = vld [vmem:[%s1369_s4 + $0x4] sm:$0xf]  ;;  %v1200_v36 = vld [vmem:[#allocation2 + $0x110] ss:$8 sps:$4 sm:$0xff]  }
  0x36   : > { %673 = vmatpush1.bf16.msra.mxu1 %v1176_v17  ;;  %v1175_v35 = vld [vmem:[#allocation2 + $0xe0] ss:$8 sps:$4 sm:$0xff]   ;;  %v1374_v38 = vcombine.low %v200_v33, %v201_v34  ;;  %v1203_v40 = vld [vmem:[#allocation2 + $0x104] ss:$8 sps:$4 sm:$0xff]   ;;  %v1177_v45 = vld [vmem:[#allocation2 + $0xd4] ss:$8 sps:$4 sm:$0xff]  }
  0x37   : > { %602 = vmatpush1.bf16.msra.mxu0 %v1149_v8  ;;  %674 = vmatprep.subr.bf16.mxu1 %v1179_v19  ;;  %v209_v37 = vld [vmem:[%s1369_s4] sm:$0xe]  ;;  %v1377_v39 = vld [vmem:[%s1369_s4 + $0x8] sm:$0xff]   ;;  %vm237_vm0 = vsmask.f32 7424  ;;  %v1213_v56 = vld [vmem:[%s1369_s4 + $0x10] sm:$0xff]  }
  0x38   : > { %603 = vmatprep.subr.bf16.mxu0 %v1150_v11  ;;  %v1021_v41 = vcombine.low %v209_v37, %v201_v34  ;;  %v239_v42 = vshrl.u32 %v1374_v38, 16  ;;  %v241_v43 = vshll.u32 %v1374_v38, 16  ;;  %v246_v44 = vshll.u32 %v1377_v39, 16  ;;  %v1206_v48 = vld [vmem:[#allocation2 + $0x100] ss:$8 sps:$4 sm:$0xff]   ;;  %v1214_v63 = vld [vmem:[%s1369_s4 + $0x18] sm:$0xff]  }
  0x39   : > { %v283_v50 = vrot.slane %v1377_v39, 1  ;;  %v1181_v51 = vld [vmem:[#allocation2 + $0xd0] ss:$8 sps:$4 sm:$0xff]   ;;  %v1183_v53 = vld [vmem:[#allocation2 + $0xc4] ss:$8 sps:$4 sm:$0xff]   ;;  %v285_v59 = vrot.slane %v1213_v56, 1 }
  0x3a   : > { %675 = vmatpush1.bf16.msra.mxu1 %v1182_v22  ;;  %v243_v46 = vrot.slane %v241_v43, 1  ;;  %v248_v47 = vrot.slane %v246_v44, 1  ;;  %v282_v49 = vrot.slane %v1021_v41, 1  ;;  %v1187_v57 = vld [vmem:[#allocation2 + $0xc0] ss:$8 sps:$4 sm:$0xff]   ;;  %v287_v3 = vrot.slane %v1214_v63, 1 }
  0x3b   : > { %604 = vmatpush1.bf16.msra.mxu0 %v1152_v14  ;;  %676 = vmatprep.subr.bf16.mxu1 %v1185_v23  ;;  %v1189_v58 = vld [vmem:[#allocation2 + $0xb4] ss:$8 sps:$4 sm:$0xff]   ;;  %v1193_v60 = vld [vmem:[#allocation2 + $0xb0] ss:$8 sps:$4 sm:$0xff]   ;;  %v1195_v61 = vld [vmem:[#allocation2 + $0xa4] ss:$8 sps:$4 sm:$0xff]   ;;  %v286_v62 = vsel %vm281_vm1, %v283_v50, %v285_v59 }
  0x3c   : > { %605 = vmatprep.subr.bf16.mxu0 %v1153_v15  ;;  %v244_v52 = vor.u32 %v243_v46, %v239_v42  ;;  %v284_v55 = vsel %vm281_vm1, %v282_v49, %v283_v50  ;;  %v1199_v1 = vld [vmem:[#allocation2 + $0xa0] ss:$8 sps:$4 sm:$0xff]   ;;  %v1201_v2 = vld [vmem:[#allocation2 + $0x94] ss:$8 sps:$4 sm:$0xff]   ;;  %v1205_v4 = vld [vmem:[#allocation2 + $0x90] ss:$8 sps:$4 sm:$0xff]   ;;  %v288_v8 = vsel %vm281_vm1, %v285_v59, %v287_v3 }
  0x3d   : > { %v1207_v5 = vld [vmem:[#allocation2 + $0x84] ss:$8 sps:$4 sm:$0xff]   ;;  %v250_v6 = vshrl.u32 %v1377_v39, 16  ;;  %v254_v7 = vshll.u32 %v1213_v56, 16  ;;  %v1212_v10 = vld [vmem:[#allocation2 + $0x80] ss:$8 sps:$4 sm:$0xff]  }
  0x3e   : > { %677 = vmatpush1.bf16.msra.mxu1 %v1188_v25  ;;  %v249_v54 = vsel %vm237_vm0, %v244_v52, %v248_v47  ;;  %v1215_v9 = vld [vmem:[%s1369_s4 + $0x20] ss:$0 sps:$4 sm:$0x11]   ;;  %v258_v15 = vshrl.u32 %v1213_v56, 16  ;;  %v262_v16 = vshll.u32 %v1214_v63, 16  ;;  %s1105_s5 = smul.u32 72, %s1502_s13 }
  0x3f   : > { %606 = vmatpush1.bf16.msra.mxu0 %v1155_v18  ;;  %678 = vmatprep.subr.bf16.mxu1 %v1191_v27  ;;  %v252_v11 = vor.u32 %v250_v6, %v248_v47  ;;  %v256_v12 = vrot.slane %v254_v7, 1  ;;  %v289_v13 = vrot.slane %v1215_v9, 1  ;;  %v270_v22 = vshll.u32 %v1215_v9, 16  ;;  %v343_v37 = vld [vmem:[#allocation4] sm:$0x3] }
  0x40   : > { %607 = vmatprep.subr.bf16.mxu0 %v1156_v20  ;;  %627 = vmatprep.mubr.bf16.mxu0 %v249_v54  ;;  %v264_v19 = vrot.slane %v262_v16, 1  ;;  %s1404_s8 = scalar_lea.vmem %s1492_s3, %s1105_s5  ;;  %vm785_vm3 = vsmask.f32 256  ;;  %vm868_vm5 = vcmask 1043456   ;;  %vm869_vm6 = vsmask.f32 7938 }
  0x41   : > { %v257_v14 = vsel %vm237_vm0, %v252_v11, %v256_v12  ;;  %v290_v17 = vsel %vm281_vm1, %v287_v3, %v289_v13  ;;  %v260_v18 = vor.u32 %v258_v15, %v256_v12  ;;  %v272_v23 = vrot.slane %v270_v22, 1  ;;  %vm1407_vm4 = vmand %vm881_vm2, %vm785_vm3 }
  0x42   : > { %679 = vmatpush1.bf16.msra.mxu1 %v1194_v31  ;;  %v345_v31 = vlaneseq  ;;  %vm1429_vm7 = vmand %vm868_vm5, %vm869_vm6  ;;  %vm786_vm8 = vsmask.f32 4368 }
  0x43   : > { %608 = vmatpush1.bf16.msra.mxu0 %v1158_v21  ;;  %680 = vmatprep.subr.bf16.mxu1 %v1197_v32  ;;  %v265_v20 = vsel %vm237_vm0, %v260_v18, %v264_v19  ;;  %v266_v21 = vshrl.u32 %v1214_v63, 16  ;;  %vm1440_vm9 = vmor %vm785_vm3, %vm786_vm8 }
  0x44   : > { %609 = vmatprep.subr.bf16.mxu0 %v1159_v24  ;;  %v346_v33 = vshrl.u32 %v345_v31, 7 }
  0x46   : > { %681 = vmatpush1.bf16.msra.mxu1 %v1200_v36 }
  0x47   : > { %610 = vmatpush1.bf16.msra.mxu0 %v1163_v26  ;;  %682 = vmatprep.subr.bf16.mxu1 %v1203_v40  ;;  %v925_v26 = vld [vmem:[%s1404_s8 + $0x44] sm:$0x1] }
  0x48   : > { %611 = vmatprep.subr.bf16.mxu0 %v1165_v28  ;;  %v926_v27 = vsel %vm1407_vm4, 0, %v925_v26 }
  0x49   : > { %927 = vst [vmem:[%s1404_s8 + $0x44] sm:$0x1] %v926_v27 }
  0x4a   : > { %683 = vmatpush1.bf16.msra.mxu1 %v1206_v48 }
  0x4b   : > { %612 = vmatpush2.bf16.msra.mxu0 %v1169_v29 }
  0x4c   : > { %613 = vmatprep.subr.bf16.mxu0 %v1171_v30 }
  0x4d   : > { %701 = vmatmul.mubr.bf16.vlgmr.msra.gmra.mxu1 %v284_v55 }
  0x4e   : > { %710 = vmatprep.mubr.bf16.mxu1 %v1288_v0 }
  0x4f   : > { %614 = vmatpush2.bf16.msra.mxu0 %v1175_v35  ;;  %v347_v35 = vsub.s32 0, %v346_v33 }
  0x50   : > { %615 = vmatprep.subr.bf16.mxu0 %v1177_v45 }
  0x53   : > { %616 = vmatpush2.bf16.msra.mxu0 %v1181_v51 }
  0x54   : > { %617 = vmatprep.subr.bf16.mxu0 %v1183_v53 }
  0x55   : > { %711 = vmatmul.mubr.bf16.gmra.mxu1 %v286_v62 }
  0x56   : > { %720 = vmatprep.mubr.bf16.mxu1 %v1288_v0 }
  0x57   : > { %618 = vmatpush2.bf16.msra.mxu0 %v1187_v57 }
  0x58   : > { %619 = vmatprep.subr.bf16.mxu0 %v1189_v58 }
  0x5b   : > { %620 = vmatpush2.bf16.msra.mxu0 %v1193_v60 }
  0x5c   : > { %621 = vmatprep.subr.bf16.mxu0 %v1195_v61 }
  0x5d   : > { %721 = vmatmul.mubr.bf16.gmra.mxu1 %v288_v8 }
  0x5e   : > { %730 = vmatprep.mubr.bf16.mxu1 %v1288_v0  ;;  %v268_v0 = vor.u32 %v266_v21, %v264_v19 }
  0x5f   : > { %622 = vmatpush2.bf16.msra.mxu0 %v1199_v1 }
  0x60   : > { %623 = vmatprep.subr.bf16.mxu0 %v1201_v2  ;;  %v273_v24 = vsel %vm237_vm0, %v268_v0, %v272_v23 }
  0x63   : > { %624 = vmatpush2.bf16.msra.mxu0 %v1205_v4 }
  0x64   : > { %625 = vmatprep.subr.bf16.mxu0 %v1207_v5 }
  0x65   : > { %731 = vmatmul.mubr.bf16.gmra.mxu1 %v290_v17 }
  0x67   : > { %626 = vmatpush2.bf16.msra.mxu0 %v1212_v10 }
  0x6a   : > { %628 = vmatmul.mubr.bf16.vlgmr.msra.gmra.mxu0 %v1374_v38  ;;  %v351_v38 = vsub.s32 1, %v346_v33 }
  0x6b   : > { %637 = vmatprep.mubr.bf16.mxu0 %v257_v14  ;;  %v871_v14 = vld [vmem:[%s1404_s8] sm:$0xf] }
  0x6c   : > { %v1417_v41 = vrot.slane %v343_v37, %v351_v38 }
  0x72   : > { %638 = vmatmul.mubr.bf16.gmra.mxu0 %v1377_v39  ;;  %v1415_v39 = vrot.slane %v343_v37, %v347_v35 }
  0x73   : > { %647 = vmatprep.mubr.bf16.mxu0 %v265_v20 }
  0x7a   : > { %648 = vmatmul.mubr.bf16.gmra.mxu0 %v1213_v56 }
  0x7b   : > { %657 = vmatprep.mubr.bf16.mxu0 %v273_v24 }
  0x82   : > { %658 = vmatmul.mubr.bf16.gmra.mxu0 %v1214_v63 }
 0x10d   : > { %v702_v28 = vpop.f32.mrf.mxu1 }
 0x10f   : > { %v704_v29 = vpop.f32.mrf.mxu1 }
 0x111   : > { %v706_v30 = vpop.f32.mrf.mxu1 }
 0x113   : > { %v708_v32 = vpop.f32.mrf.mxu1 }
 0x115   : > { %v712_v34 = vpop.f32.mrf.mxu1 }
 0x117   : > { %v714_v36 = vpop.f32.mrf.mxu1 }
 0x119   : > { %v716_v40 = vpop.f32.mrf.mxu1 }
 0x11b   : > { %v718_v44 = vpop.f32.mrf.mxu1 }
 0x11d   : > { %v722_v52 = vpop.f32.mrf.mxu1 }
 0x11f   : > { %v724_v63 = vpop.f32.mrf.mxu1 }
 0x121   : > { %v726_v12 = vpop.f32.mrf.mxu1 }
 0x12a   : > { %v629_v42 = vpop.f32.mrf.mxu0 }
 0x12b   : > { %v630_v43 = vadd.f32 %v629_v42, %v1415_v39 }
 0x12c   : > { %v631_v45 = vpop.f32.mrf.mxu0 }
 0x12d   : > { %v703_v46 = vadd.f32 %v702_v28, %v630_v43  ;;  %v632_v47 = vadd.f32 %v631_v45, %v1417_v41 }
 0x12e   : > { %v633_v48 = vpop.f32.mrf.mxu0 }
 0x12f   : > { %v741_v49 = vmax.f32 %v703_v46, 0.0  ;;  %v705_v50 = vadd.f32 %v704_v29, %v632_v47  ;;  %v634_v51 = vadd.f32 %v633_v48, %v1415_v39  ;;  %v728_v29 = vpop.f32.mrf.mxu1 }
 0x130   : > { %v635_v53 = vpop.f32.mrf.mxu0 }
 0x131   : > { %v1096_v54 = vpack.c.bf16 %v741_v49, %v741_v49  ;;  %v742_v55 = vmax.f32 %v705_v50, 0.0  ;;  %v707_v56 = vadd.f32 %v706_v30, %v634_v51  ;;  %v636_v57 = vadd.f32 %v635_v53, %v1417_v41 }
 0x132   : > { %v639_v58 = vpop.f32.mrf.mxu0 }
 0x133   : > { %914 = vst [vmem:[%s1404_s8 + $0x4] sm:$0xf] %v1096_v54  ;;  %v1088_v59 = vpack.c.bf16 %v742_v55, %v742_v55  ;;  %v743_v60 = vmax.f32 %v707_v56, 0.0  ;;  %v709_v61 = vadd.f32 %v708_v32, %v636_v57  ;;  %v640_v62 = vadd.f32 %v639_v58, %v1415_v39 }
 0x134   : > { %v641_v1 = vpop.f32.mrf.mxu0 }
 0x135   : > { %v789_v2 = vshrl.u32 %v1088_v59, 16  ;;  %v1097_v3 = vpack.c.bf16 %v743_v60, %v743_v60  ;;  %v744_v4 = vmax.f32 %v709_v61, 0.0  ;;  %v713_v5 = vadd.f32 %v712_v34, %v640_v62 }
 0x136   : > { %v642_v6 = vadd.f32 %v641_v1, %v1417_v41  ;;  %v643_v7 = vpop.f32.mrf.mxu0  ;;  %v792_v9 = vshll.u32 %v1088_v59, 16 }
 0x137   : > { %v791_v8 = vrot.slane %v789_v2, 7  ;;  %915 = vst [vmem:[%s1404_s8 + $0xc] sm:$0xf] %v1097_v3  ;;  %v1089_v10 = vpack.c.bf16 %v744_v4, %v744_v4  ;;  %v644_v11 = vadd.f32 %v643_v7, %v1415_v39  ;;  %v745_v15 = vmax.f32 %v713_v5, 0.0 }
 0x138   : > { %v715_v16 = vadd.f32 %v714_v36, %v642_v6  ;;  %v645_v17 = vpop.f32.mrf.mxu0 }
 0x139   : > { %v794_v18 = vor.u32 %v792_v9, %v791_v8  ;;  %v797_v19 = vshrl.u32 %v1089_v10, 16  ;;  %v1098_v20 = vpack.c.bf16 %v745_v15, %v745_v15  ;;  %v717_v22 = vadd.f32 %v716_v40, %v644_v11 }
 0x13a   : > { %v746_v21 = vmax.f32 %v715_v16, 0.0  ;;  %v646_v0 = vadd.f32 %v645_v17, %v1417_v41  ;;  %v649_v23 = vpop.f32.mrf.mxu0  ;;  %v800_v27 = vshll.u32 %v1089_v10, 16  ;;  %v795_v35 = vrot.slane %v791_v8, 4 }
 0x13b   : > { %v872_v24 = vsel %vm1429_vm7, %v794_v18, %v871_v14  ;;  %v799_v26 = vrot.slane %v797_v19, 7  ;;  %v650_v28 = vadd.f32 %v649_v23, %v1415_v39  ;;  %916 = vst [vmem:[%s1404_s8 + $0x14] sm:$0xf] %v1098_v20  ;;  %v747_v32 = vmax.f32 %v717_v22, 0.0 }
 0x13c   : > { %873 = vst [vmem:[%s1404_s8] sm:$0xf] %v872_v24  ;;  %v1090_v31 = vpack.c.bf16 %v746_v21, %v746_v21  ;;  %v719_v33 = vadd.f32 %v718_v44, %v646_v0  ;;  %v651_v34 = vpop.f32.mrf.mxu0  ;;  %v732_v44 = vpop.f32.mrf.mxu1 }
 0x13d   : > { %v802_v36 = vor.u32 %v800_v27, %v799_v26  ;;  %v723_v37 = vadd.f32 %v722_v52, %v650_v28  ;;  %v652_v38 = vadd.f32 %v651_v34, %v1417_v41  ;;  %v1099_v42 = vpack.c.bf16 %v747_v32, %v747_v32 }
 0x13e   : > { %v806_v40 = vshrl.u32 %v1090_v31, 16  ;;  %v748_v43 = vmax.f32 %v719_v33, 0.0  ;;  %v653_v45 = vpop.f32.mrf.mxu0  ;;  %v809_v51 = vshll.u32 %v1090_v31, 16  ;;  %v804_v58 = vrot.slane %v799_v26, 4  ;;  %v734_v2 = vpop.f32.mrf.mxu1 }
 0x13f   : > { %v803_v46 = vsel %vm1440_vm9, %v795_v35, %v802_v36  ;;  %v749_v47 = vmax.f32 %v723_v37, 0.0  ;;  %v725_v48 = vadd.f32 %v724_v63, %v652_v38  ;;  %v654_v49 = vadd.f32 %v653_v45, %v1415_v39  ;;  %917 = vst [vmem:[%s1404_s8 + $0x1c] sm:$0xf] %v1099_v42 }
 0x140   : > { %874 = vst [vmem:[%s1404_s8 + $0x8] sm:$0xf] %v803_v46  ;;  %v808_v50 = vrot.slane %v806_v40, 7  ;;  %v1091_v52 = vpack.c.bf16 %v748_v43, %v748_v43  ;;  %v655_v53 = vpop.f32.mrf.mxu0  ;;  %v736_v21 = vpop.f32.mrf.mxu1 }
 0x141   : > { %v1100_v54 = vpack.c.bf16 %v749_v47, %v749_v47  ;;  %v750_v55 = vmax.f32 %v725_v48, 0.0  ;;  %v727_v56 = vadd.f32 %v726_v12, %v654_v49  ;;  %v656_v57 = vadd.f32 %v655_v53, %v1417_v41 }
 0x142   : > { %v811_v59 = vor.u32 %v809_v51, %v808_v50  ;;  %v815_v60 = vshrl.u32 %v1091_v52, 16  ;;  %v659_v61 = vpop.f32.mrf.mxu0  ;;  %v818_v7 = vshll.u32 %v1091_v52, 16  ;;  %v813_v13 = vrot.slane %v808_v50, 4  ;;  %v738_v37 = vpop.f32.mrf.mxu1 }
 0x143   : > { %918 = vst [vmem:[%s1404_s8 + $0x24] sm:$0xf] %v1100_v54  ;;  %v1092_v62 = vpack.c.bf16 %v750_v55, %v750_v55  ;;  %v751_v63 = vmax.f32 %v727_v56, 0.0  ;;  %v729_v1 = vadd.f32 %v728_v29, %v656_v57  ;;  %v660_v3 = vadd.f32 %v659_v61, %v1415_v39  ;;  %v922_v4 = vld [vmem:[%s1404_s8] sm:$0x1] }
 0x144   : > { %v812_v5 = vsel %vm1440_vm9, %v804_v58, %v811_v59  ;;  %v817_v6 = vrot.slane %v815_v60, 7  ;;  %v661_v8 = vpop.f32.mrf.mxu0  ;;  %v923_v9 = vsel %vm1407_vm4, 0, %v922_v4  ;;  %v883_v57 = vld [vmem:[%s1404_s8 + $0x40] sm:$0x1] }
 0x145   : > { %875 = vst [vmem:[%s1404_s8 + $0x10] sm:$0xf] %v812_v5  ;;  %v824_v10 = vshrl.u32 %v1092_v62, 16  ;;  %v1101_v11 = vpack.c.bf16 %v751_v63, %v751_v63  ;;  %v752_v12 = vmax.f32 %v729_v1, 0.0  ;;  %924 = vst [vmem:[%s1404_s8] sm:$0x1] %v923_v9  ;;  %v733_v15 = vadd.f32 %v732_v44, %v660_v3 }
 0x146   : > { %v820_v14 = vor.u32 %v818_v7, %v817_v6  ;;  %v662_v16 = vadd.f32 %v661_v8, %v1417_v41  ;;  %v663_v17 = vpop.f32.mrf.mxu0  ;;  %v827_v19 = vshll.u32 %v1092_v62, 16  ;;  %v822_v27 = vrot.slane %v817_v6, 4 }
 0x147   : > { %v826_v18 = vrot.slane %v824_v10, 7  ;;  %919 = vst [vmem:[%s1404_s8 + $0x2c] sm:$0xf] %v1101_v11  ;;  %v1093_v20 = vpack.c.bf16 %v752_v12, %v752_v12  ;;  %v664_v22 = vadd.f32 %v663_v17, %v1415_v39  ;;  %v753_v23 = vmax.f32 %v733_v15, 0.0 }
 0x148   : > { %v821_v0 = vsel %vm1440_vm9, %v813_v13, %v820_v14  ;;  %v735_v24 = vadd.f32 %v734_v2, %v662_v16  ;;  %v665_v26 = vpop.f32.mrf.mxu0 }
 0x149   : > { %876 = vst [vmem:[%s1404_s8 + $0x18] sm:$0xf] %v821_v0  ;;  %v829_v28 = vor.u32 %v827_v19, %v826_v18  ;;  %v833_v29 = vshrl.u32 %v1093_v20, 16  ;;  %v1102_v31 = vpack.c.bf16 %v753_v23, %v753_v23  ;;  %v737_v33 = vadd.f32 %v736_v21, %v664_v22 }
 0x14a   : > { %v754_v32 = vmax.f32 %v735_v24, 0.0  ;;  %v666_v34 = vadd.f32 %v665_v26, %v1417_v41  ;;  %v836_v36 = vshll.u32 %v1093_v20, 16  ;;  %v831_v43 = vrot.slane %v826_v18, 4 }
 0x14b   : > { %v830_v39 = vsel %vm1440_vm9, %v822_v27, %v829_v28  ;;  %v835_v35 = vrot.slane %v833_v29, 7  ;;  %920 = vst [vmem:[%s1404_s8 + $0x34] sm:$0xf] %v1102_v31  ;;  %v755_v40 = vmax.f32 %v737_v33, 0.0 }
 0x14c   : > { %877 = vst [vmem:[%s1404_s8 + $0x20] sm:$0xf] %v830_v39  ;;  %v1094_v38 = vpack.c.bf16 %v754_v32, %v754_v32  ;;  %v739_v42 = vadd.f32 %v738_v37, %v666_v34 }
 0x14d   : > { %v838_v45 = vor.u32 %v836_v36, %v835_v35  ;;  %v1103_v47 = vpack.c.bf16 %v755_v40, %v755_v40  ;;  %v840_v51 = vrot.slane %v835_v35, 4 }
 0x14e   : > { %v842_v46 = vshrl.u32 %v1094_v38, 16  ;;  %v756_v41 = vmax.f32 %v739_v42, 0.0  ;;  %v845_v44 = vshll.u32 %v1094_v38, 16 }
 0x14f   : > { %v839_v48 = vsel %vm1440_vm9, %v831_v43, %v838_v45  ;;  %921 = vst [vmem:[%s1404_s8 + $0x3c] sm:$0xf] %v1103_v47 }
 0x150   : > { %878 = vst [vmem:[%s1404_s8 + $0x28] sm:$0xf] %v839_v48  ;;  %v844_v49 = vrot.slane %v842_v46, 7  ;;  %v1095_v50 = vpack.c.bf16 %v756_v41, %v756_v41 }
 0x152   : > { %v847_v52 = vor.u32 %v845_v44, %v844_v49  ;;  %v851_v53 = vshrl.u32 %v1095_v50, 16  ;;  %v854_v56 = vshll.u32 %v1095_v50, 16  ;;  %v849_v58 = vrot.slane %v844_v49, 4 }
 0x154   : > { %v848_v54 = vsel %vm1440_vm9, %v840_v51, %v847_v52  ;;  %v853_v55 = vrot.slane %v851_v53, 7 }
 0x155   : > { %879 = vst [vmem:[%s1404_s8 + $0x30] sm:$0xf] %v848_v54 }
 0x156   : > { %v856_v59 = vor.u32 %v854_v56, %v853_v55  ;;  %v858_v60 = vrot.slane %v853_v55, 4 }
 0x158   : > { %v857_v61 = vsel %vm1440_vm9, %v849_v58, %v856_v59  ;;  %v884_v62 = vsel %vm1407_vm4, %v858_v60, %v883_v57 }
 0x159   : > { %880 = vst [vmem:[%s1404_s8 + $0x38] sm:$0xf] %v857_v61  ;;  %885 = vst [vmem:[%s1404_s8 + $0x40] sm:$0x1] %v884_v62 }
 0x15a PF: > { %s15_s12 = sadd.s32 1, %s1282_s12  }
 0x15b   : > { %p12_p3 = scmp.ge.s32.totalorder %s15_s12, 4  }
 0x15d   :  { %14 = sbr.rel (!%p12_p3) target bundleno = 2 (0x2), region = 71 }
 0x162   :  { %949 = vsyncpa [#allocation3], 1 }
 0x163   :  { %951 = vsyncpa [#allocation3 + $0x1], 1 }
 0x164   :  { %952 = vsyncpa [#allocation5], 1 }

// kernel: generator_img_v_forward.6
= control target key start
LH: loop header
LB: loop body
LE: loop exit
PB: predicated region body
PF: predicated region fallthrough
CT: control target
= control target key end

     0   :  { %8 = vsyncpa [#allocation3], 0  ;;  %s1261_s0 = inlined_call_operand.vmem [shape: bf16[2,34,128], index: 0, kind: input, shape index: {}]   ;;  %s1262_s1 = inlined_call_operand.hbm [shape: bf16[384,256], index: 1, kind: input, shape index: {}]   ;;  %s1263_s2 = inlined_call_operand.hbm [shape: f32[1,256], index: 2, kind: input, shape index: {}]   ;;  %s1264_s3 = inlined_call_operand.vmem [shape: bf16[2,33,256], index: 3, kind: output, shape index: {}]  }
   0x1   :  { %9 = vsyncpa [#allocation5], 0  ;;  %s1125_s12 = smov 0  }
   0x2 LB: > { %s1131_s13 = sadd.s32 4294967295, %s1098_s12   ;;  %p843_p0 = scmp.ge.s32.totalorder %s1098_s12, 1  ;;  %s1098_s12 = sphi %s1125_s12, %s15_s12  }
   0x3   : > { %p114_p1 = scmp.lt.s32.totalorder %s1098_s12, 3  ;;  %s1100_s14 = smov [#allocation2]  }
   0x4   : > { %s126_s15 = sshll.u32 %s1100_s14, 4  ;;  %p939_p3 = scmp.eq.s32.totalorder %s1131_s13, 0  ;;  %s127_s15 = int_to_ptr.vmem [resolvable:$true] %s126_s15 }
   0x5   : > { %p1135_p2 = pnand %p843_p0, %p114_p1  ;;  %s1101_s17 = smov [#allocation4]  }
   0x6   : > { %s140_s18 = sshll.u32 %s1101_s17, 4  ;;  %s1043_s20 = scalar_lea.vmem %s127_s15, 6144  ;;  %s141_s18 = int_to_ptr.vmem [resolvable:$true] %s140_s18 }
   0x7   : > { %p932_p4 = pneg %p1135_p2  ;;  %p1044_p7 = scmp.ne.s32.totalorder %s127_s15, %s1043_s20 }
   0x8   : > { %p1051_p10 = scmp.lt.s32.totalorder %s127_s15, %s127_s15  ;;  %p1052_p11 = scmp.lt.s32.totalorder %s1043_s20, %s1043_s20 }
   0x9   : > { %p1144_p5 = pnand %p939_p3, %p932_p4 }
   0xa   : > { %p1053_p12 = por %p1052_p11, %p1051_p10 }
   0xb   : > { %p1034_p6 = pneg %p1144_p5 }
   0xd   : > { %p1046_p8 = pnand %p1044_p7, %p1034_p6 }
   0xf   : > { %p1047_p9 = pneg %p1046_p8 }
  0x11   : > { %p1054_p13 = pnand %p1053_p12, %p1047_p9 }
  0x13   : > { %1057 = shalt.err (!%p1054_p13)
}
  0x14   : > { %s1102_s21 = smov 128   ;;  %s1103_s22 = smov 8  }
  0x15   : > { %935 = dma.hbm_to_vmem [thread:$0]  (!%p1144_p5), %s1262_s1, 6144, %s127_s15, [#allocation3], %s1102_s21, %s1102_s21, %s1103_s22  }
  0x16   : > { %s1069_s25 = scalar_lea.vmem %s141_s18, 32  ;;  %p1077_p7 = scmp.lt.s32.totalorder %s141_s18, %s141_s18 }
  0x17   : > { %p1070_p0 = scmp.ne.s32.totalorder %s141_s18, %s1069_s25  ;;  %p1078_p8 = scmp.lt.s32.totalorder %s1069_s25, %s1069_s25 }
  0x19   : > { %p1072_p1 = pnand %p1070_p0, %p1034_p6  ;;  %p1079_p10 = por %p1078_p8, %p1077_p7 }
  0x1b   : > { %p1073_p4 = pneg %p1072_p1 }
  0x1d   : > { %p1080_p9 = pnand %p1079_p10, %p1073_p4 }
  0x1f   : > { %1083 = shalt.err (!%p1080_p9)
}
  0x20   : > { %938 = dma.hbm_to_vmem [thread:$0]  (!%p1144_p5), %s1263_s2, 32, %s141_s18, [#allocation5]  }
  0x21   : > { %161 = sbr.rel (%p1135_p2) target bundleno = 330 (0x14a), region = 32 }
  0x26   : > { %1089 = dma.done.wait (%p939_p3), [#allocation3], 6144  }
  0x27   : > { %1091 = vsyncadd (%p939_p3), [#allocation3], 4294961152 }
  0x28   : > { %1093 = dma.done.wait (%p939_p3), [#allocation5], 32  }
  0x29   : > { %1095 = vsyncadd (%p939_p3), [#allocation5], 4294967264  ;;  %v1104_v0 = vmov 0   ;;  %v956_v1 = vld [vmem:[#allocation2 + $0x74] ss:$8 sps:$4 sm:$0xff]   ;;  %p189_p2 = scmp.lt.s32.totalorder %s1131_s13, 1 }
  0x2a   : > { %640 = vmatprep.mubr.bf16.mxu1 %v1104_v0  ;;  %v958_v2 = vld [vmem:[#allocation2 + $0x70] ss:$8 sps:$4 sm:$0xff]   ;;  %555 = vmatprep.subr.bf16.mxu0 %v956_v1  ;;  %v959_v3 = vld [vmem:[#allocation2 + $0x64] ss:$8 sps:$4 sm:$0xff]   ;;  %v961_v4 = vld [vmem:[#allocation2 + $0x60] ss:$8 sps:$4 sm:$0xff]  }
  0x2b   : > { %556 = vmatpush1.bf16.msra.mxu0 %v958_v2  ;;  %v962_v5 = vld [vmem:[#allocation2 + $0x54] ss:$8 sps:$4 sm:$0xff]   ;;  %v964_v6 = vld [vmem:[#allocation2 + $0x50] ss:$8 sps:$4 sm:$0xff]   ;;  %v965_v7 = vld [vmem:[#allocation2 + $0x44] ss:$8 sps:$4 sm:$0xff]  }
  0x2c   : > { %557 = vmatprep.subr.bf16.mxu0 %v959_v3  ;;  %v967_v8 = vld [vmem:[#allocation2 + $0x40] ss:$8 sps:$4 sm:$0xff]   ;;  %v979_v9 = vld [vmem:[#allocation2 + $0x174] ss:$8 sps:$4 sm:$0xff]   ;;  %v982_v10 = vld [vmem:[#allocation2 + $0x170] ss:$8 sps:$4 sm:$0xff]  }
  0x2d   : > { %v968_v11 = vld [vmem:[#allocation2 + $0x34] ss:$8 sps:$4 sm:$0xff]   ;;  %608 = vmatprep.subr.bf16.mxu1 %v979_v9  ;;  %v985_v12 = vld [vmem:[#allocation2 + $0x164] ss:$8 sps:$4 sm:$0xff]   ;;  %v988_v13 = vld [vmem:[#allocation2 + $0x160] ss:$8 sps:$4 sm:$0xff]  }
  0x2e   : > { %609 = vmatpush1.bf16.msra.mxu1 %v982_v10  ;;  %v970_v14 = vld [vmem:[#allocation2 + $0x30] ss:$8 sps:$4 sm:$0xff]   ;;  %v971_v15 = vld [vmem:[#allocation2 + $0x24] ss:$8 sps:$4 sm:$0xff]   ;;  %v991_v16 = vld [vmem:[#allocation2 + $0x154] ss:$8 sps:$4 sm:$0xff]  }
  0x2f   : > { %558 = vmatpush1.bf16.msra.mxu0 %v961_v4  ;;  %610 = vmatprep.subr.bf16.mxu1 %v985_v12  ;;  %v994_v17 = vld [vmem:[#allocation2 + $0x150] ss:$8 sps:$4 sm:$0xff]   ;;  %v973_v18 = vld [vmem:[#allocation2 + $0x20] ss:$8 sps:$4 sm:$0xff]   ;;  %v997_v19 = vld [vmem:[#allocation2 + $0x144] ss:$8 sps:$4 sm:$0xff]   ;;  %v305_v12 = vlaneseq }
  0x30   : > { %559 = vmatprep.subr.bf16.mxu0 %v962_v5  ;;  %v974_v20 = vld [vmem:[#allocation2 + $0x14] ss:$8 sps:$4 sm:$0xff]   ;;  %s1274_s13 = smov (!%p189_p2, %s1131_s13), 1  ;;  %v976_v21 = vld [vmem:[#allocation2 + $0x10] ss:$8 sps:$4 sm:$0xff]   ;;  %vm247_vm1 = vcmask 1046528  }
  0x31   : > { %v1000_v22 = vld [vmem:[#allocation2 + $0x140] ss:$8 sps:$4 sm:$0xff]   ;;  %v1003_v23 = vld [vmem:[#allocation2 + $0x134] ss:$8 sps:$4 sm:$0xff]   ;;  %v977_v24 = vld [vmem:[#allocation2 + $0x4] ss:$8 sps:$4 sm:$0xff]  }
  0x32   : > { %611 = vmatpush1.bf16.msra.mxu1 %v988_v13  ;;  %s922_s28 = smul.u32 20, %s1274_s13  ;;  %v1006_v25 = vld [vmem:[#allocation2 + $0x130] ss:$8 sps:$4 sm:$0xff]   ;;  %v981_v26 = vld [vmem:[#allocation2] ss:$8 sps:$4 sm:$0xff]   ;;  %vm735_vm2 = vcmask 1040384  }
  0x33   : > { %560 = vmatpush1.bf16.msra.mxu0 %v964_v6  ;;  %612 = vmatprep.subr.bf16.mxu1 %v991_v16  ;;  %v1009_v27 = vld [vmem:[#allocation2 + $0x124] ss:$8 sps:$4 sm:$0xff]   ;;  %v983_v28 = vld [vmem:[#allocation2 + $0xf4] ss:$8 sps:$4 sm:$0xff]   ;;  %v987_v29 = vld [vmem:[#allocation2 + $0xf0] ss:$8 sps:$4 sm:$0xff]  }
  0x34   : > { %561 = vmatprep.subr.bf16.mxu0 %v965_v7  ;;  %s1185_s4 = scalar_lea.vmem %s1261_s0, %s922_s28  ;;  %v989_v30 = vld [vmem:[#allocation2 + $0xe4] ss:$8 sps:$4 sm:$0xff]   ;;  %v1012_v31 = vld [vmem:[#allocation2 + $0x120] ss:$8 sps:$4 sm:$0xff]   ;;  %v1015_v32 = vld [vmem:[#allocation2 + $0x114] ss:$8 sps:$4 sm:$0xff]  }
  0x35   : > { %v200_v33 = vld [vmem:[%s1185_s4] sm:$0xf]  ;;  %v201_v34 = vld [vmem:[%s1185_s4 + $0x4] sm:$0xf]  ;;  %v1193_v37 = vld [vmem:[%s1185_s4 + $0x8] sm:$0xff]   ;;  %s923_s5 = smul.u32 40, %s1274_s13 }
  0x36   : > { %613 = vmatpush1.bf16.msra.mxu1 %v994_v17  ;;  %v205_v35 = vld [vmem:[%s1185_s4] sm:$0xe]  ;;  %v1190_v36 = vcombine.low %v200_v33, %v201_v34  ;;  %v1018_v39 = vld [vmem:[#allocation2 + $0x110] ss:$8 sps:$4 sm:$0xff]   ;;  %v1021_v41 = vld [vmem:[#allocation2 + $0x104] ss:$8 sps:$4 sm:$0xff]  }
  0x37   : > { %562 = vmatpush1.bf16.msra.mxu0 %v967_v8  ;;  %614 = vmatprep.subr.bf16.mxu1 %v997_v19  ;;  %v993_v38 = vld [vmem:[#allocation2 + $0xe0] ss:$8 sps:$4 sm:$0xff]   ;;  %v855_v40 = vcombine.low %v205_v35, %v201_v34  ;;  %v230_v44 = vshll.u32 %v1193_v37, 16  ;;  %v995_v45 = vld [vmem:[#allocation2 + $0xd4] ss:$8 sps:$4 sm:$0xff]   ;;  %v249_v50 = vrot.slane %v1193_v37, 1  ;;  %s1212_s8 = scalar_lea.vmem %s1264_s3, %s923_s5 }
  0x38   : > { %563 = vmatprep.subr.bf16.mxu0 %v968_v11  ;;  %v223_v42 = vshrl.u32 %v1190_v36, 16  ;;  %v225_v43 = vshll.u32 %v1190_v36, 16  ;;  %v1024_v48 = vld [vmem:[#allocation2 + $0x100] ss:$8 sps:$4 sm:$0xff]   ;;  %vm221_vm0 = vsmask.f32 7424 }
  0x39   : > { %v232_v47 = vrot.slane %v230_v44, 1  ;;  %v248_v49 = vrot.slane %v855_v40, 1  ;;  %v999_v51 = vld [vmem:[#allocation2 + $0xd0] ss:$8 sps:$4 sm:$0xff]   ;;  %v1001_v53 = vld [vmem:[#allocation2 + $0xc4] ss:$8 sps:$4 sm:$0xff]  }
  0x3a   : > { %615 = vmatpush1.bf16.msra.mxu1 %v1000_v22  ;;  %v227_v46 = vrot.slane %v225_v43, 1  ;;  %v1031_v56 = vld [vmem:[%s1185_s4 + $0x10] ss:$0 sps:$4 sm:$0x11]   ;;  %v1005_v57 = vld [vmem:[#allocation2 + $0xc0] ss:$8 sps:$4 sm:$0xff]  }
  0x3b   : > { %564 = vmatpush1.bf16.msra.mxu0 %v970_v14  ;;  %616 = vmatprep.subr.bf16.mxu1 %v1003_v23  ;;  %v250_v55 = vsel %vm247_vm1, %v248_v49, %v249_v50  ;;  %v1007_v58 = vld [vmem:[#allocation2 + $0xb4] ss:$8 sps:$4 sm:$0xff]   ;;  %v251_v59 = vrot.slane %v1031_v56, 1  ;;  %v1011_v60 = vld [vmem:[#allocation2 + $0xb0] ss:$8 sps:$4 sm:$0xff]   ;;  %v234_v4 = vshrl.u32 %v1193_v37, 16 }
  0x3c   : > { %565 = vmatprep.subr.bf16.mxu0 %v971_v15  ;;  %v228_v52 = vor.u32 %v227_v46, %v223_v42  ;;  %v1013_v61 = vld [vmem:[#allocation2 + $0xa4] ss:$8 sps:$4 sm:$0xff]   ;;  %v1017_v63 = vld [vmem:[#allocation2 + $0xa0] ss:$8 sps:$4 sm:$0xff]   ;;  %v1019_v1 = vld [vmem:[#allocation2 + $0x94] ss:$8 sps:$4 sm:$0xff]  }
  0x3d   : > { %v252_v62 = vsel %vm247_vm1, %v249_v50, %v251_v59  ;;  %v1023_v2 = vld [vmem:[#allocation2 + $0x90] ss:$8 sps:$4 sm:$0xff]   ;;  %v1025_v3 = vld [vmem:[#allocation2 + $0x84] ss:$8 sps:$4 sm:$0xff]   ;;  %v1030_v5 = vld [vmem:[#allocation2 + $0x80] ss:$8 sps:$4 sm:$0xff]   ;;  %v236_v6 = vor.u32 %v234_v4, %v232_v47 }
  0x3e   : > { %617 = vmatpush1.bf16.msra.mxu1 %v1006_v25  ;;  %v233_v54 = vsel %vm221_vm0, %v228_v52, %v232_v47  ;;  %vm683_vm3 = vsmask.f32 256  ;;  %v761_v10 = vld [vmem:[%s1212_s8 + $0x24] sm:$0x1]  ;;  %v306_v14 = vshrl.u32 %v305_v12, 7  ;;  %vm726_vm5 = vcmask 1043456  }
  0x3f   : > { %566 = vmatpush1.bf16.msra.mxu0 %v973_v18  ;;  %618 = vmatprep.subr.bf16.mxu1 %v1009_v27  ;;  %vm1215_vm4 = vmand %vm735_vm2, %vm683_vm3  ;;  %v303_v17 = vld [vmem:[#allocation4] sm:$0x3]  ;;  %vm727_vm6 = vsmask.f32 7938  ;;  %vm684_vm8 = vsmask.f32 4368 }
  0x40   : > { %567 = vmatprep.subr.bf16.mxu0 %v974_v20  ;;  %587 = vmatprep.mubr.bf16.mxu0 %v233_v54  ;;  %v762_v11 = vsel %vm1215_vm4, 0, %v761_v10  ;;  %v307_v16 = vsub.s32 0, %v306_v14  ;;  %v311_v18 = vsub.s32 1, %v306_v14  ;;  %vm1226_vm7 = vmand %vm726_vm5, %vm727_vm6 }
  0x41   : > { %763 = vst [vmem:[%s1212_s8 + $0x24] sm:$0x1] %v762_v11  ;;  %vm1235_vm9 = vmor %vm683_vm3, %vm684_vm8 }
  0x42   : > { %619 = vmatpush1.bf16.msra.mxu1 %v1012_v31  ;;  %v308_v19 = vrot.slane %v303_v17, %v307_v16 }
  0x43   : > { %568 = vmatpush1.bf16.msra.mxu0 %v976_v21  ;;  %620 = vmatprep.subr.bf16.mxu1 %v1015_v32  ;;  %v312_v21 = vrot.slane %v303_v17, %v311_v18 }
  0x44   : > { %569 = vmatprep.subr.bf16.mxu0 %v977_v24 }
  0x46   : > { %621 = vmatpush1.bf16.msra.mxu1 %v1018_v39 }
  0x47   : > { %570 = vmatpush1.bf16.msra.mxu0 %v981_v26  ;;  %622 = vmatprep.subr.bf16.mxu1 %v1021_v41 }
  0x48   : > { %571 = vmatprep.subr.bf16.mxu0 %v983_v28 }
  0x4a   : > { %623 = vmatpush1.bf16.msra.mxu1 %v1024_v48 }
  0x4b   : > { %572 = vmatpush2.bf16.msra.mxu0 %v987_v29 }
  0x4c   : > { %573 = vmatprep.subr.bf16.mxu0 %v989_v30 }
  0x4d   : > { %641 = vmatmul.mubr.bf16.vlgmr.msra.gmra.mxu1 %v250_v55 }
  0x4e   : > { %650 = vmatprep.mubr.bf16.mxu1 %v1104_v0  ;;  %v238_v0 = vshll.u32 %v1031_v56, 16 }
  0x4f   : > { %574 = vmatpush2.bf16.msra.mxu0 %v993_v38 }
  0x50   : > { %575 = vmatprep.subr.bf16.mxu0 %v995_v45  ;;  %v240_v7 = vrot.slane %v238_v0, 1 }
  0x52   : > { %v241_v8 = vsel %vm221_vm0, %v236_v6, %v240_v7 }
  0x53   : > { %576 = vmatpush2.bf16.msra.mxu0 %v999_v51 }
  0x54   : > { %577 = vmatprep.subr.bf16.mxu0 %v1001_v53 }
  0x55   : > { %651 = vmatmul.mubr.bf16.gmra.mxu1 %v252_v62 }
  0x57   : > { %578 = vmatpush2.bf16.msra.mxu0 %v1005_v57  ;;  %v729_v57 = vld [vmem:[%s1212_s8] sm:$0xf] }
  0x58   : > { %579 = vmatprep.subr.bf16.mxu0 %v1007_v58 }
  0x5b   : > { %580 = vmatpush2.bf16.msra.mxu0 %v1011_v60 }
  0x5c   : > { %581 = vmatprep.subr.bf16.mxu0 %v1013_v61 }
  0x5f   : > { %582 = vmatpush2.bf16.msra.mxu0 %v1017_v63 }
  0x60   : > { %583 = vmatprep.subr.bf16.mxu0 %v1019_v1 }
  0x63   : > { %584 = vmatpush2.bf16.msra.mxu0 %v1023_v2 }
  0x64   : > { %585 = vmatprep.subr.bf16.mxu0 %v1025_v3 }
  0x67   : > { %586 = vmatpush2.bf16.msra.mxu0 %v1030_v5 }
  0x6a   : > { %588 = vmatmul.mubr.bf16.vlgmr.msra.gmra.mxu0 %v1190_v36 }
  0x6b   : > { %597 = vmatprep.mubr.bf16.mxu0 %v241_v8 }
  0x72   : > { %598 = vmatmul.mubr.bf16.gmra.mxu0 %v1193_v37 }
 0x10d   : > { %v642_v13 = vpop.f32.mrf.mxu1 }
 0x10f   : > { %v644_v15 = vpop.f32.mrf.mxu1 }
 0x111   : > { %v646_v20 = vpop.f32.mrf.mxu1 }
 0x113   : > { %v648_v24 = vpop.f32.mrf.mxu1 }
 0x115   : > { %v652_v32 = vpop.f32.mrf.mxu1 }
 0x117   : > { %v654_v42 = vpop.f32.mrf.mxu1 }
 0x119   : > { %v656_v54 = vpop.f32.mrf.mxu1 }
 0x11b   : > { %v658_v6 = vpop.f32.mrf.mxu1 }
 0x12a   : > { %v589_v22 = vpop.f32.mrf.mxu0 }
 0x12b   : > { %v590_v23 = vadd.f32 %v589_v22, %v308_v19 }
 0x12c   : > { %v591_v25 = vpop.f32.mrf.mxu0 }
 0x12d   : > { %v643_v26 = vadd.f32 %v642_v13, %v590_v23  ;;  %v592_v27 = vadd.f32 %v591_v25, %v312_v21 }
 0x12e   : > { %v593_v28 = vpop.f32.mrf.mxu0 }
 0x12f   : > { %v661_v29 = vmax.f32 %v643_v26, 0.0  ;;  %v645_v30 = vadd.f32 %v644_v15, %v592_v27  ;;  %v594_v31 = vadd.f32 %v593_v28, %v308_v19 }
 0x130   : > { %v595_v33 = vpop.f32.mrf.mxu0 }
 0x131   : > { %v918_v34 = vpack.c.bf16 %v661_v29, %v661_v29  ;;  %v662_v35 = vmax.f32 %v645_v30, 0.0  ;;  %v647_v36 = vadd.f32 %v646_v20, %v594_v31  ;;  %v596_v37 = vadd.f32 %v595_v33, %v312_v21  ;;  %v737_v29 = vld [vmem:[%s1212_s8 + $0x20] sm:$0x1] }
 0x132   : > { %v599_v38 = vpop.f32.mrf.mxu0 }
 0x133   : > { %754 = vst [vmem:[%s1212_s8 + $0x4] sm:$0xf] %v918_v34  ;;  %v914_v39 = vpack.c.bf16 %v662_v35, %v662_v35  ;;  %v663_v40 = vmax.f32 %v647_v36, 0.0  ;;  %v649_v41 = vadd.f32 %v648_v24, %v596_v37  ;;  %v600_v43 = vadd.f32 %v599_v38, %v308_v19 }
 0x134   : > { %v601_v44 = vpop.f32.mrf.mxu0 }
 0x135   : > { %v687_v45 = vshrl.u32 %v914_v39, 16  ;;  %v919_v46 = vpack.c.bf16 %v663_v40, %v663_v40  ;;  %v664_v47 = vmax.f32 %v649_v41, 0.0  ;;  %v653_v48 = vadd.f32 %v652_v32, %v600_v43 }
 0x136   : > { %v602_v49 = vadd.f32 %v601_v44, %v312_v21  ;;  %v603_v50 = vpop.f32.mrf.mxu0  ;;  %v690_v52 = vshll.u32 %v914_v39, 16 }
 0x137   : > { %v689_v51 = vrot.slane %v687_v45, 7  ;;  %755 = vst [vmem:[%s1212_s8 + $0xc] sm:$0xf] %v919_v46  ;;  %v915_v53 = vpack.c.bf16 %v664_v47, %v664_v47  ;;  %v604_v55 = vadd.f32 %v603_v50, %v308_v19  ;;  %v665_v58 = vmax.f32 %v653_v48, 0.0 }
 0x138   : > { %v655_v59 = vadd.f32 %v654_v42, %v602_v49  ;;  %v605_v60 = vpop.f32.mrf.mxu0 }
 0x139   : > { %v692_v61 = vor.u32 %v690_v52, %v689_v51  ;;  %v695_v62 = vshrl.u32 %v915_v53, 16  ;;  %v920_v63 = vpack.c.bf16 %v665_v58, %v665_v58  ;;  %v657_v2 = vadd.f32 %v656_v54, %v604_v55 }
 0x13a   : > { %v666_v1 = vmax.f32 %v655_v59, 0.0  ;;  %v606_v3 = vadd.f32 %v605_v60, %v312_v21  ;;  %v698_v5 = vshll.u32 %v915_v53, 16  ;;  %v693_v12 = vrot.slane %v689_v51, 4 }
 0x13b   : > { %v730_v4 = vsel %vm1226_vm7, %v692_v61, %v729_v57  ;;  %v697_v0 = vrot.slane %v695_v62, 7  ;;  %756 = vst [vmem:[%s1212_s8 + $0x14] sm:$0xf] %v920_v63  ;;  %v667_v10 = vmax.f32 %v657_v2, 0.0 }
 0x13c   : > { %731 = vst [vmem:[%s1212_s8] sm:$0xf] %v730_v4  ;;  %v916_v8 = vpack.c.bf16 %v666_v1, %v666_v1  ;;  %v659_v11 = vadd.f32 %v658_v6, %v606_v3 }
 0x13d   : > { %v700_v13 = vor.u32 %v698_v5, %v697_v0  ;;  %v921_v15 = vpack.c.bf16 %v667_v10, %v667_v10  ;;  %v702_v21 = vrot.slane %v697_v0, 4 }
 0x13e   : > { %v704_v14 = vshrl.u32 %v916_v8, 16  ;;  %v668_v16 = vmax.f32 %v659_v11, 0.0  ;;  %v707_v19 = vshll.u32 %v916_v8, 16 }
 0x13f   : > { %v701_v17 = vsel %vm1235_vm9, %v693_v12, %v700_v13  ;;  %757 = vst [vmem:[%s1212_s8 + $0x1c] sm:$0xf] %v921_v15 }
 0x140   : > { %732 = vst [vmem:[%s1212_s8 + $0x8] sm:$0xf] %v701_v17  ;;  %v706_v18 = vrot.slane %v704_v14, 7  ;;  %v917_v20 = vpack.c.bf16 %v668_v16, %v668_v16 }
 0x142   : > { %v709_v22 = vor.u32 %v707_v19, %v706_v18  ;;  %v713_v23 = vshrl.u32 %v917_v20, 16  ;;  %v716_v27 = vshll.u32 %v917_v20, 16  ;;  %v711_v30 = vrot.slane %v706_v18, 4 }
 0x143   : > { %v758_v24 = vld [vmem:[%s1212_s8] sm:$0x1] }
 0x144   : > { %v710_v25 = vsel %vm1235_vm9, %v702_v21, %v709_v22  ;;  %v715_v26 = vrot.slane %v713_v23, 7  ;;  %v759_v28 = vsel %vm1215_vm4, 0, %v758_v24 }
 0x145   : > { %733 = vst [vmem:[%s1212_s8 + $0x10] sm:$0xf] %v710_v25  ;;  %760 = vst [vmem:[%s1212_s8] sm:$0x1] %v759_v28 }
 0x146   : > { %v718_v31 = vor.u32 %v716_v27, %v715_v26  ;;  %v720_v32 = vrot.slane %v715_v26, 4 }
 0x148   : > { %v719_v33 = vsel %vm1235_vm9, %v711_v30, %v718_v31  ;;  %v738_v34 = vsel %vm1215_vm4, %v720_v32, %v737_v29 }
 0x149   : > { %734 = vst [vmem:[%s1212_s8 + $0x18] sm:$0xf] %v719_v33  ;;  %739 = vst [vmem:[%s1212_s8 + $0x20] sm:$0x1] %v738_v34 }
 0x14a PF: > { %s15_s12 = sadd.s32 1, %s1098_s12  }
 0x14b   : > { %p12_p3 = scmp.ge.s32.totalorder %s15_s12, 4  }
 0x14d   :  { %14 = sbr.rel (!%p12_p3) target bundleno = 2 (0x2), region = 71 }
 0x152   :  { %785 = vsyncpa [#allocation3], 1 }
 0x153   :  { %787 = vsyncpa [#allocation3 + $0x1], 1 }
 0x154   :  { %788 = vsyncpa [#allocation5], 1 }

// kernel: generator_img_v_forward.8
= control target key start
LH: loop header
LB: loop body
LE: loop exit
PB: predicated region body
PF: predicated region fallthrough
CT: control target
= control target key end

     0   :  { %8 = vsyncpa [#allocation3], 0  ;;  %s2004_s0 = inlined_call_operand.vmem [shape: bf16[2,130,128], index: 0, kind: input, shape index: {}]   ;;  %s2005_s1 = inlined_call_operand.hbm [shape: bf16[384,256], index: 1, kind: input, shape index: {}]   ;;  %s2006_s2 = inlined_call_operand.hbm [shape: f32[1,256], index: 2, kind: input, shape index: {}]   ;;  %s2007_s3 = inlined_call_operand.vmem [shape: bf16[2,129,256], index: 3, kind: output, shape index: {}]  }
   0x1   :  { %9 = vsyncpa [#allocation5], 0  ;;  %s1677_s12 = smov 0  }
   0x2 LB: > { %s1683_s13 = sadd.s32 4294967295, %s1650_s12   ;;  %p1335_p0 = scmp.ge.s32.totalorder %s1650_s12, 1  ;;  %s1650_s12 = sphi %s1677_s12, %s15_s12  }
   0x3   : > { %p114_p1 = scmp.lt.s32.totalorder %s1650_s12, 3  ;;  %s1652_s14 = smov [#allocation2]  }
   0x4   : > { %s126_s15 = sshll.u32 %s1652_s14, 4  ;;  %p1485_p3 = scmp.eq.s32.totalorder %s1683_s13, 0  ;;  %s127_s15 = int_to_ptr.vmem [resolvable:$true] %s126_s15 }
   0x5   : > { %p1687_p2 = pnand %p1335_p0, %p114_p1  ;;  %s1653_s17 = smov [#allocation4]  }
   0x6   : > { %s140_s18 = sshll.u32 %s1653_s17, 4  ;;  %s1595_s20 = scalar_lea.vmem %s127_s15, 6144  ;;  %s141_s18 = int_to_ptr.vmem [resolvable:$true] %s140_s18 }
   0x7   : > { %p1478_p4 = pneg %p1687_p2  ;;  %p1596_p7 = scmp.ne.s32.totalorder %s127_s15, %s1595_s20 }
   0x8   : > { %p1603_p10 = scmp.lt.s32.totalorder %s127_s15, %s127_s15  ;;  %p1604_p11 = scmp.lt.s32.totalorder %s1595_s20, %s1595_s20 }
   0x9   : > { %p1696_p5 = pnand %p1485_p3, %p1478_p4 }
   0xa   : > { %p1605_p12 = por %p1604_p11, %p1603_p10 }
   0xb   : > { %p1586_p6 = pneg %p1696_p5 }
   0xd   : > { %p1598_p8 = pnand %p1596_p7, %p1586_p6 }
   0xf   : > { %p1599_p9 = pneg %p1598_p8 }
  0x11   : > { %p1606_p13 = pnand %p1605_p12, %p1599_p9 }
  0x13   : > { %1609 = shalt.err (!%p1606_p13)
}
  0x14   : > { %s1654_s21 = smov 128   ;;  %s1655_s22 = smov 8  }
  0x15   : > { %1481 = dma.hbm_to_vmem [thread:$0]  (!%p1696_p5), %s2005_s1, 6144, %s127_s15, [#allocation3], %s1654_s21, %s1654_s21, %s1655_s22  }
  0x16   : > { %s1621_s25 = scalar_lea.vmem %s141_s18, 32  ;;  %p1629_p7 = scmp.lt.s32.totalorder %s141_s18, %s141_s18 }
  0x17   : > { %p1622_p0 = scmp.ne.s32.totalorder %s141_s18, %s1621_s25  ;;  %p1630_p8 = scmp.lt.s32.totalorder %s1621_s25, %s1621_s25 }
  0x19   : > { %p1624_p1 = pnand %p1622_p0, %p1586_p6  ;;  %p1631_p10 = por %p1630_p8, %p1629_p7 }
  0x1b   : > { %p1625_p4 = pneg %p1624_p1 }
  0x1d   : > { %p1632_p9 = pnand %p1631_p10, %p1625_p4 }
  0x1f   : > { %1635 = shalt.err (!%p1632_p9)
}
  0x20   : > { %1484 = dma.hbm_to_vmem [thread:$0]  (!%p1696_p5), %s2006_s2, 32, %s141_s18, [#allocation5]  }
  0x21   : > { %161 = sbr.rel (%p1687_p2) target bundleno = 378 (0x17a), region = 32 }
  0x26   : > { %1641 = dma.done.wait (%p1485_p3), [#allocation3], 6144  }
  0x27   : > { %1643 = vsyncadd (%p1485_p3), [#allocation3], 4294961152 }
  0x28   : > { %1645 = dma.done.wait (%p1485_p3), [#allocation5], 32  }
  0x29   : > { %1647 = vsyncadd (%p1485_p3), [#allocation5], 4294967264  ;;  %v1656_v0 = vmov 0   ;;  %v1502_v1 = vld [vmem:[#allocation2 + $0x74] ss:$8 sps:$4 sm:$0xff]   ;;  %p189_p2 = scmp.lt.s32.totalorder %s1683_s13, 1 }
  0x2a   : > { %820 = vmatprep.mubr.bf16.mxu1 %v1656_v0  ;;  %v1504_v2 = vld [vmem:[#allocation2 + $0x70] ss:$8 sps:$4 sm:$0xff]   ;;  %675 = vmatprep.subr.bf16.mxu0 %v1502_v1  ;;  %v1505_v3 = vld [vmem:[#allocation2 + $0x64] ss:$8 sps:$4 sm:$0xff]   ;;  %v1507_v4 = vld [vmem:[#allocation2 + $0x60] ss:$8 sps:$4 sm:$0xff]  }
  0x2b   : > { %676 = vmatpush1.bf16.msra.mxu0 %v1504_v2  ;;  %v1508_v5 = vld [vmem:[#allocation2 + $0x54] ss:$8 sps:$4 sm:$0xff]   ;;  %v1510_v6 = vld [vmem:[#allocation2 + $0x50] ss:$8 sps:$4 sm:$0xff]   ;;  %v1511_v7 = vld [vmem:[#allocation2 + $0x44] ss:$8 sps:$4 sm:$0xff]  }
  0x2c   : > { %677 = vmatprep.subr.bf16.mxu0 %v1505_v3  ;;  %v1513_v8 = vld [vmem:[#allocation2 + $0x40] ss:$8 sps:$4 sm:$0xff]   ;;  %v1525_v9 = vld [vmem:[#allocation2 + $0x174] ss:$8 sps:$4 sm:$0xff]   ;;  %v1528_v10 = vld [vmem:[#allocation2 + $0x170] ss:$8 sps:$4 sm:$0xff]  }
  0x2d   : > { %v1514_v11 = vld [vmem:[#allocation2 + $0x34] ss:$8 sps:$4 sm:$0xff]   ;;  %788 = vmatprep.subr.bf16.mxu1 %v1525_v9  ;;  %v1531_v12 = vld [vmem:[#allocation2 + $0x164] ss:$8 sps:$4 sm:$0xff]   ;;  %v1534_v13 = vld [vmem:[#allocation2 + $0x160] ss:$8 sps:$4 sm:$0xff]  }
  0x2e   : > { %789 = vmatpush1.bf16.msra.mxu1 %v1528_v10  ;;  %v1516_v14 = vld [vmem:[#allocation2 + $0x30] ss:$8 sps:$4 sm:$0xff]   ;;  %v1517_v15 = vld [vmem:[#allocation2 + $0x24] ss:$8 sps:$4 sm:$0xff]   ;;  %v1537_v16 = vld [vmem:[#allocation2 + $0x154] ss:$8 sps:$4 sm:$0xff]  }
  0x2f   : > { %678 = vmatpush1.bf16.msra.mxu0 %v1507_v4  ;;  %790 = vmatprep.subr.bf16.mxu1 %v1531_v12  ;;  %v1540_v17 = vld [vmem:[#allocation2 + $0x150] ss:$8 sps:$4 sm:$0xff]   ;;  %v1519_v18 = vld [vmem:[#allocation2 + $0x20] ss:$8 sps:$4 sm:$0xff]   ;;  %v1543_v19 = vld [vmem:[#allocation2 + $0x144] ss:$8 sps:$4 sm:$0xff]  }
  0x30   : > { %679 = vmatprep.subr.bf16.mxu0 %v1508_v5  ;;  %v1520_v20 = vld [vmem:[#allocation2 + $0x14] ss:$8 sps:$4 sm:$0xff]   ;;  %s2017_s13 = smov (!%p189_p2, %s1683_s13), 1  ;;  %v1522_v21 = vld [vmem:[#allocation2 + $0x10] ss:$8 sps:$4 sm:$0xff]   ;;  %vm349_vm1 = vcmask 1046528  }
  0x31   : > { %v1546_v22 = vld [vmem:[#allocation2 + $0x140] ss:$8 sps:$4 sm:$0xff]   ;;  %v1549_v23 = vld [vmem:[#allocation2 + $0x134] ss:$8 sps:$4 sm:$0xff]   ;;  %v1523_v24 = vld [vmem:[#allocation2 + $0x4] ss:$8 sps:$4 sm:$0xff]  }
  0x32   : > { %791 = vmatpush1.bf16.msra.mxu1 %v1534_v13  ;;  %s1468_s28 = smul.u32 68, %s2017_s13  ;;  %v1552_v25 = vld [vmem:[#allocation2 + $0x130] ss:$8 sps:$4 sm:$0xff]   ;;  %v1527_v26 = vld [vmem:[#allocation2] ss:$8 sps:$4 sm:$0xff]   ;;  %vm1173_vm2 = vcmask 1040384  }
  0x33   : > { %680 = vmatpush1.bf16.msra.mxu0 %v1510_v6  ;;  %792 = vmatprep.subr.bf16.mxu1 %v1537_v16  ;;  %v1555_v27 = vld [vmem:[#allocation2 + $0x124] ss:$8 sps:$4 sm:$0xff]   ;;  %v1529_v28 = vld [vmem:[#allocation2 + $0xf4] ss:$8 sps:$4 sm:$0xff]   ;;  %v1533_v29 = vld [vmem:[#allocation2 + $0xf0] ss:$8 sps:$4 sm:$0xff]  }
  0x34   : > { %681 = vmatprep.subr.bf16.mxu0 %v1511_v7  ;;  %s1737_s4 = scalar_lea.vmem %s2004_s0, %s1468_s28  ;;  %v1535_v30 = vld [vmem:[#allocation2 + $0xe4] ss:$8 sps:$4 sm:$0xff]   ;;  %v1558_v31 = vld [vmem:[#allocation2 + $0x120] ss:$8 sps:$4 sm:$0xff]   ;;  %v1561_v32 = vld [vmem:[#allocation2 + $0x114] ss:$8 sps:$4 sm:$0xff]  }
  0x35   : > { %v200_v33 = vld [vmem:[%s1737_s4] sm:$0xf]  ;;  %v201_v34 = vld [vmem:[%s1737_s4 + $0x4] sm:$0xf]  ;;  %v1564_v36 = vld [vmem:[#allocation2 + $0x110] ss:$8 sps:$4 sm:$0xff]  }
  0x36   : > { %793 = vmatpush1.bf16.msra.mxu1 %v1540_v17  ;;  %v1539_v35 = vld [vmem:[#allocation2 + $0xe0] ss:$8 sps:$4 sm:$0xff]   ;;  %v1742_v38 = vcombine.low %v200_v33, %v201_v34  ;;  %v1567_v40 = vld [vmem:[#allocation2 + $0x104] ss:$8 sps:$4 sm:$0xff]   ;;  %v1541_v45 = vld [vmem:[#allocation2 + $0xd4] ss:$8 sps:$4 sm:$0xff]  }
  0x37   : > { %682 = vmatpush1.bf16.msra.mxu0 %v1513_v8  ;;  %794 = vmatprep.subr.bf16.mxu1 %v1543_v19  ;;  %v217_v37 = vld [vmem:[%s1737_s4] sm:$0xe]  ;;  %v1745_v39 = vld [vmem:[%s1737_s4 + $0x8] sm:$0xff]   ;;  %vm269_vm0 = vsmask.f32 7424  ;;  %v1754_v56 = vld [vmem:[%s1737_s4 + $0x10] sm:$0xff]  }
  0x38   : > { %683 = vmatprep.subr.bf16.mxu0 %v1514_v11  ;;  %v1353_v41 = vcombine.low %v217_v37, %v201_v34  ;;  %v271_v42 = vshrl.u32 %v1742_v38, 16  ;;  %v273_v43 = vshll.u32 %v1742_v38, 16  ;;  %v278_v44 = vshll.u32 %v1745_v39, 16  ;;  %v1570_v46 = vld [vmem:[#allocation2 + $0x100] ss:$8 sps:$4 sm:$0xff]   ;;  %v1757_v57 = vld [vmem:[%s1737_s4 + $0x38] sm:$0xff]  }
  0x39   : > { %v351_v50 = vrot.slane %v1745_v39, 1  ;;  %v1545_v51 = vld [vmem:[#allocation2 + $0xd0] ss:$8 sps:$4 sm:$0xff]   ;;  %v1547_v53 = vld [vmem:[#allocation2 + $0xc4] ss:$8 sps:$4 sm:$0xff]   ;;  %v353_v61 = vrot.slane %v1754_v56, 1 }
  0x3a   : > { %795 = vmatpush1.bf16.msra.mxu1 %v1546_v22  ;;  %v275_v47 = vrot.slane %v273_v43, 1  ;;  %v280_v48 = vrot.slane %v278_v44, 1  ;;  %v350_v49 = vrot.slane %v1353_v41, 1  ;;  %v1551_v58 = vld [vmem:[#allocation2 + $0xc0] ss:$8 sps:$4 sm:$0xff]   ;;  %v326_v62 = vshll.u32 %v1757_v57, 16 }
  0x3b   : > { %684 = vmatpush1.bf16.msra.mxu0 %v1516_v14  ;;  %796 = vmatprep.subr.bf16.mxu1 %v1549_v23  ;;  %v1553_v59 = vld [vmem:[#allocation2 + $0xb4] ss:$8 sps:$4 sm:$0xff]   ;;  %v1760_v60 = vld [vmem:[%s1737_s4 + $0x40] ss:$0 sps:$4 sm:$0x11]   ;;  %v330_v1 = vshrl.u32 %v1757_v57, 16  ;;  %v354_v5 = vsel %vm349_vm1, %v351_v50, %v353_v61 }
  0x3c   : > { %685 = vmatprep.subr.bf16.mxu0 %v1517_v15  ;;  %v276_v52 = vor.u32 %v275_v47, %v271_v42  ;;  %v352_v55 = vsel %vm349_vm1, %v350_v49, %v351_v50  ;;  %v1557_v63 = vld [vmem:[#allocation2 + $0xb0] ss:$8 sps:$4 sm:$0xff]   ;;  %v1559_v2 = vld [vmem:[#allocation2 + $0xa4] ss:$8 sps:$4 sm:$0xff]   ;;  %v1766_v3 = vrot.slane %v326_v62, 1  ;;  %v334_v4 = vshll.u32 %v1760_v60, 16 }
  0x3d   : > { %v1771_v6 = vld [vmem:[%s1737_s4 + $0x18] sm:$0xff]   ;;  %v1563_v9 = vld [vmem:[#allocation2 + $0xa0] ss:$8 sps:$4 sm:$0xff]   ;;  %v1571_v14 = vld [vmem:[#allocation2 + $0x84] ss:$8 sps:$4 sm:$0xff]   ;;  %v282_v15 = vshrl.u32 %v1745_v39, 16 }
  0x3e   : > { %797 = vmatpush1.bf16.msra.mxu1 %v1552_v25  ;;  %v281_v54 = vsel %vm269_vm0, %v276_v52, %v280_v48  ;;  %v332_v7 = vor.u32 %v330_v1, %v1766_v3  ;;  %v336_v8 = vrot.slane %v334_v4, 1  ;;  %v1565_v10 = vld [vmem:[#allocation2 + $0x94] ss:$8 sps:$4 sm:$0xff]   ;;  %v355_v12 = vrot.slane %v1771_v6, 1  ;;  %v1569_v13 = vld [vmem:[#allocation2 + $0x90] ss:$8 sps:$4 sm:$0xff]  }
  0x3f   : > { %686 = vmatpush1.bf16.msra.mxu0 %v1519_v18  ;;  %798 = vmatprep.subr.bf16.mxu1 %v1555_v27  ;;  %v286_v16 = vshll.u32 %v1754_v56, 16  ;;  %v1579_v18 = vld [vmem:[%s1737_s4 + $0x20] sm:$0xff]   ;;  %v294_v25 = vshll.u32 %v1771_v6, 16  ;;  %v1580_v27 = vld [vmem:[%s1737_s4 + $0x28] sm:$0xff]   ;;  %v365_v52 = vrot.slane %v1760_v60, 1  ;;  %s1469_s5 = smul.u32 136, %s2017_s13 }
  0x40   : > { %687 = vmatprep.subr.bf16.mxu0 %v1520_v20  ;;  %707 = vmatprep.mubr.bf16.mxu0 %v281_v54  ;;  %v1775_v11 = vsel %vm269_vm0, %v332_v7, %v336_v8  ;;  %v356_v17 = vsel %vm349_vm1, %v353_v61, %v355_v12  ;;  %v1576_v19 = vld [vmem:[#allocation2 + $0x80] ss:$8 sps:$4 sm:$0xff]   ;;  %v284_v20 = vor.u32 %v282_v15, %v280_v48  ;;  %v357_v22 = vrot.slane %v1579_v18, 1 }
  0x41   : > { %v302_v33 = vshll.u32 %v1579_v18, 16  ;;  %v306_v41 = vshrl.u32 %v1579_v18, 16  ;;  %v310_v42 = vshll.u32 %v1580_v27, 16  ;;  %v314_v47 = vshrl.u32 %v1580_v27, 16  ;;  %s1817_s8 = scalar_lea.vmem %s2007_s3, %s1469_s5  ;;  %v423_v8 = vld [vmem:[#allocation4] sm:$0x3] }
  0x42   : > { %799 = vmatpush1.bf16.msra.mxu1 %v1558_v31  ;;  %vm989_vm3 = vsmask.f32 256  ;;  %vm1152_vm5 = vcmask 1043456   ;;  %vm1153_vm6 = vsmask.f32 7938 }
  0x43   : > { %688 = vmatpush1.bf16.msra.mxu0 %v1522_v21  ;;  %800 = vmatprep.subr.bf16.mxu1 %v1561_v32  ;;  %v288_v21 = vrot.slane %v286_v16, 1  ;;  %v298_v32 = vshrl.u32 %v1771_v6, 16  ;;  %v304_v37 = vrot.slane %v302_v33, 1  ;;  %v312_v44 = vrot.slane %v310_v42, 1  ;;  %vm1820_vm4 = vmand %vm1173_vm2, %vm989_vm3 }
  0x44   : > { %689 = vmatprep.subr.bf16.mxu0 %v1523_v24  ;;  %v290_v24 = vshrl.u32 %v1754_v56, 16  ;;  %vm1864_vm7 = vmand %vm1152_vm5, %vm1153_vm6  ;;  %vm990_vm8 = vsmask.f32 4368 }
  0x45   : > { %v289_v23 = vsel %vm269_vm0, %v284_v20, %v288_v21  ;;  %v316_v50 = vor.u32 %v314_v47, %v312_v44  ;;  %vm1879_vm9 = vmor %vm989_vm3, %vm990_vm8 }
  0x46   : > { %801 = vmatpush1.bf16.msra.mxu1 %v1564_v36 }
  0x47   : > { %690 = vmatpush1.bf16.msra.mxu0 %v1527_v26  ;;  %802 = vmatprep.subr.bf16.mxu1 %v1567_v40  ;;  %v358_v26 = vsel %vm349_vm1, %v355_v12, %v357_v22 }
  0x48   : > { %691 = vmatprep.subr.bf16.mxu0 %v1529_v28  ;;  %v292_v28 = vor.u32 %v290_v24, %v288_v21 }
  0x4a   : > { %803 = vmatpush1.bf16.msra.mxu1 %v1570_v46 }
  0x4b   : > { %692 = vmatpush2.bf16.msra.mxu0 %v1533_v29  ;;  %v296_v29 = vrot.slane %v294_v25, 1 }
  0x4c   : > { %693 = vmatprep.subr.bf16.mxu0 %v1535_v30  ;;  %v359_v30 = vrot.slane %v1580_v27, 1 }
  0x4d   : > { %821 = vmatmul.mubr.bf16.vlgmr.msra.gmra.mxu1 %v352_v55  ;;  %v297_v31 = vsel %vm269_vm0, %v292_v28, %v296_v29  ;;  %v300_v36 = vor.u32 %v298_v32, %v296_v29 }
  0x4e   : > { %830 = vmatprep.mubr.bf16.mxu1 %v1656_v0  ;;  %v360_v34 = vsel %vm349_vm1, %v357_v22, %v359_v30 }
  0x4f   : > { %694 = vmatpush2.bf16.msra.mxu0 %v1539_v35  ;;  %v1581_v35 = vld [vmem:[%s1737_s4 + $0x30] sm:$0xff]   ;;  %v305_v40 = vsel %vm269_vm0, %v300_v36, %v304_v37 }
  0x50   : > { %695 = vmatprep.subr.bf16.mxu0 %v1541_v45  ;;  %v363_v45 = vrot.slane %v1757_v57, 1  ;;  %v318_v48 = vshll.u32 %v1581_v35, 16  ;;  %v322_v54 = vshrl.u32 %v1581_v35, 16 }
  0x52   : > { %v366_v55 = vsel %vm349_vm1, %v363_v45, %v365_v52 }
  0x53   : > { %696 = vmatpush2.bf16.msra.mxu0 %v1545_v51  ;;  %v320_v51 = vrot.slane %v318_v48, 1 }
  0x54   : > { %697 = vmatprep.subr.bf16.mxu0 %v1547_v53 }
  0x55   : > { %831 = vmatmul.mubr.bf16.gmra.mxu1 %v354_v5  ;;  %v321_v53 = vsel %vm269_vm0, %v316_v50, %v320_v51 }
  0x56   : > { %840 = vmatprep.mubr.bf16.mxu1 %v1656_v0 }
  0x57   : > { %698 = vmatpush2.bf16.msra.mxu0 %v1551_v58 }
  0x58   : > { %699 = vmatprep.subr.bf16.mxu0 %v1553_v59  ;;  %v1253_v59 = vld [vmem:[%s1817_s8 + $0x84] sm:$0x1] }
  0x59   : > { %v1254_v60 = vsel %vm1820_vm4, 0, %v1253_v59 }
  0x5a   : > { %1255 = vst [vmem:[%s1817_s8 + $0x84] sm:$0x1] %v1254_v60 }
  0x5b   : > { %700 = vmatpush2.bf16.msra.mxu0 %v1557_v63  ;;  %v425_v63 = vlaneseq }
  0x5c   : > { %701 = vmatprep.subr.bf16.mxu0 %v1559_v2 }
  0x5d   : > { %841 = vmatmul.mubr.bf16.gmra.mxu1 %v356_v17 }
  0x5e   : > { %850 = vmatprep.mubr.bf16.mxu1 %v1656_v0 }
  0x5f   : > { %702 = vmatpush2.bf16.msra.mxu0 %v1563_v9 }
  0x60   : > { %703 = vmatprep.subr.bf16.mxu0 %v1565_v10 }
  0x63   : > { %704 = vmatpush2.bf16.msra.mxu0 %v1569_v13 }
  0x64   : > { %705 = vmatprep.subr.bf16.mxu0 %v1571_v14 }
  0x65   : > { %851 = vmatmul.mubr.bf16.gmra.mxu1 %v358_v26 }
  0x66   : > { %860 = vmatprep.mubr.bf16.mxu1 %v1656_v0 }
  0x67   : > { %706 = vmatpush2.bf16.msra.mxu0 %v1576_v19 }
  0x6a   : > { %708 = vmatmul.mubr.bf16.vlgmr.msra.gmra.mxu0 %v1742_v38  ;;  %v361_v38 = vrot.slane %v1581_v35, 1 }
  0x6b   : > { %717 = vmatprep.mubr.bf16.mxu0 %v289_v23 }
  0x6c   : > { %v362_v43 = vsel %vm349_vm1, %v359_v30, %v361_v38  ;;  %v364_v49 = vsel %vm349_vm1, %v361_v38, %v363_v45 }
  0x6d   : > { %861 = vmatmul.mubr.bf16.gmra.mxu1 %v360_v34 }
  0x6e   : > { %870 = vmatprep.mubr.bf16.mxu1 %v1656_v0 }
  0x72   : > { %718 = vmatmul.mubr.bf16.gmra.mxu0 %v1745_v39  ;;  %v308_v39 = vor.u32 %v306_v41, %v304_v37 }
  0x73   : > { %727 = vmatprep.mubr.bf16.mxu0 %v297_v31 }
  0x74   : > { %v313_v46 = vsel %vm269_vm0, %v308_v39, %v312_v44 }
  0x75   : > { %871 = vmatmul.mubr.bf16.gmra.mxu1 %v362_v43 }
  0x76   : > { %880 = vmatprep.mubr.bf16.mxu1 %v1656_v0 }
  0x7a   : > { %728 = vmatmul.mubr.bf16.gmra.mxu0 %v1754_v56  ;;  %v324_v56 = vor.u32 %v322_v54, %v320_v51 }
  0x7b   : > { %737 = vmatprep.mubr.bf16.mxu0 %v305_v40 }
  0x7c   : > { %v329_v58 = vsel %vm269_vm0, %v324_v56, %v1766_v3  ;;  %v426_v3 = vshrl.u32 %v425_v63, 7 }
  0x7d   : > { %881 = vmatmul.mubr.bf16.gmra.mxu1 %v364_v49 }
  0x7e   : > { %890 = vmatprep.mubr.bf16.mxu1 %v1656_v0  ;;  %v431_v9 = vsub.s32 1, %v426_v3 }
  0x80   : > { %v1836_v13 = vrot.slane %v423_v8, %v431_v9 }
  0x82   : > { %738 = vmatmul.mubr.bf16.gmra.mxu0 %v1771_v6  ;;  %v427_v6 = vsub.s32 0, %v426_v3 }
  0x83   : > { %747 = vmatprep.mubr.bf16.mxu0 %v313_v46 }
  0x85   : > { %891 = vmatmul.mubr.bf16.gmra.mxu1 %v366_v55 }
  0x8a   : > { %748 = vmatmul.mubr.bf16.gmra.mxu0 %v1579_v18 }
  0x8b   : > { %757 = vmatprep.mubr.bf16.mxu0 %v321_v53  ;;  %v1155_v53 = vld [vmem:[%s1817_s8] sm:$0xf] }
  0x92   : > { %758 = vmatmul.mubr.bf16.gmra.mxu0 %v1580_v27 }
  0x93   : > { %767 = vmatprep.mubr.bf16.mxu0 %v329_v58 }
  0x9a   : > { %768 = vmatmul.mubr.bf16.gmra.mxu0 %v1581_v35 }
  0x9b   : > { %777 = vmatprep.mubr.bf16.mxu0 %v1775_v11  ;;  %v1832_v11 = vrot.slane %v423_v8, %v427_v6 }
  0xa2   : > { %778 = vmatmul.mubr.bf16.gmra.mxu0 %v1757_v57 }
 0x10d   : > { %v822_v57 = vpop.f32.mrf.mxu1 }
 0x10f   : > { %v824_v61 = vpop.f32.mrf.mxu1 }
 0x111   : > { %v826_v62 = vpop.f32.mrf.mxu1 }
 0x113   : > { %v828_v1 = vpop.f32.mrf.mxu1 }
 0x115   : > { %v832_v2 = vpop.f32.mrf.mxu1 }
 0x117   : > { %v834_v4 = vpop.f32.mrf.mxu1 }
 0x119   : > { %v836_v5 = vpop.f32.mrf.mxu1 }
 0x11b   : > { %v1828_v7 = vpop.f32.mrf.mxu1 }
 0x11d   : > { %v1830_v10 = vpop.f32.mrf.mxu1 }
 0x11f   : > { %v1834_v12 = vpop.f32.mrf.mxu1 }
 0x121   : > { %v1838_v14 = vpop.f32.mrf.mxu1 }
 0x123   : > { %v1841_v17 = vpop.f32.mrf.mxu1 }
 0x125   : > { %v1844_v21 = vpop.f32.mrf.mxu1 }
 0x127   : > { %v1847_v26 = vpop.f32.mrf.mxu1 }
 0x129   : > { %v1850_v32 = vpop.f32.mrf.mxu1 }
 0x12a   : > { %v709_v15 = vpop.f32.mrf.mxu0 }
 0x12b   : > { %v710_v16 = vadd.f32 %v709_v15, %v1832_v11  ;;  %v1854_v38 = vpop.f32.mrf.mxu1 }
 0x12c   : > { %v711_v18 = vpop.f32.mrf.mxu0 }
 0x12d   : > { %v823_v19 = vadd.f32 %v822_v57, %v710_v16  ;;  %v712_v20 = vadd.f32 %v711_v18, %v1836_v13  ;;  %v1856_v39 = vpop.f32.mrf.mxu1 }
 0x12e   : > { %v713_v22 = vpop.f32.mrf.mxu0 }
 0x12f   : > { %v901_v23 = vmax.f32 %v823_v19, 0.0  ;;  %v825_v24 = vadd.f32 %v824_v61, %v712_v20  ;;  %v714_v25 = vadd.f32 %v713_v22, %v1832_v11  ;;  %v1861_v51 = vpop.f32.mrf.mxu1 }
 0x130   : > { %v715_v27 = vpop.f32.mrf.mxu0 }
 0x131   : > { %v1452_v28 = vpack.c.bf16 %v901_v23, %v901_v23  ;;  %v902_v29 = vmax.f32 %v825_v24, 0.0  ;;  %v827_v30 = vadd.f32 %v826_v62, %v714_v25  ;;  %v716_v31 = vadd.f32 %v715_v27, %v1836_v13  ;;  %v1869_v60 = vpop.f32.mrf.mxu1 }
 0x132   : > { %v719_v33 = vpop.f32.mrf.mxu0 }
 0x133   : > { %1234 = vst [vmem:[%s1817_s8 + $0x4] sm:$0xf] %v1452_v28  ;;  %v1436_v34 = vpack.c.bf16 %v902_v29, %v902_v29  ;;  %v903_v35 = vmax.f32 %v827_v30, 0.0  ;;  %v829_v36 = vadd.f32 %v828_v1, %v716_v31  ;;  %v720_v37 = vadd.f32 %v719_v33, %v1832_v11  ;;  %v1875_v8 = vpop.f32.mrf.mxu1 }
 0x134   : > { %v721_v40 = vpop.f32.mrf.mxu0 }
 0x135   : > { %v993_v41 = vshrl.u32 %v1436_v34, 16  ;;  %v1453_v42 = vpack.c.bf16 %v903_v35, %v903_v35  ;;  %v904_v43 = vmax.f32 %v829_v36, 0.0  ;;  %v833_v44 = vadd.f32 %v832_v2, %v720_v37  ;;  %v1891_v33 = vpop.f32.mrf.mxu1 }
 0x136   : > { %v722_v45 = vadd.f32 %v721_v40, %v1836_v13  ;;  %v723_v46 = vpop.f32.mrf.mxu0  ;;  %v996_v48 = vshll.u32 %v1436_v34, 16 }
 0x137   : > { %v995_v47 = vrot.slane %v993_v41, 7  ;;  %1235 = vst [vmem:[%s1817_s8 + $0xc] sm:$0xf] %v1453_v42  ;;  %v1437_v49 = vpack.c.bf16 %v904_v43, %v904_v43  ;;  %v724_v50 = vadd.f32 %v723_v46, %v1832_v11  ;;  %v905_v54 = vmax.f32 %v833_v44, 0.0 }
 0x138   : > { %v835_v55 = vadd.f32 %v834_v4, %v722_v45  ;;  %v725_v56 = vpop.f32.mrf.mxu0 }
 0x139   : > { %v998_v58 = vor.u32 %v996_v48, %v995_v47  ;;  %v1001_v59 = vshrl.u32 %v1437_v49, 16  ;;  %v1454_v57 = vpack.c.bf16 %v905_v54, %v905_v54  ;;  %v837_v62 = vadd.f32 %v836_v5, %v724_v50  ;;  %v1900_v50 = vpop.f32.mrf.mxu1 }
 0x13a   : > { %v906_v61 = vmax.f32 %v835_v55, 0.0  ;;  %v726_v63 = vadd.f32 %v725_v56, %v1836_v13  ;;  %v729_v1 = vpop.f32.mrf.mxu0  ;;  %v1004_v6 = vshll.u32 %v1437_v49, 16  ;;  %v999_v19 = vrot.slane %v995_v47, 4 }
 0x13b   : > { %v1156_v2 = vsel %vm1864_vm7, %v998_v58, %v1155_v53  ;;  %v1003_v3 = vrot.slane %v1001_v59, 7  ;;  %v730_v4 = vadd.f32 %v729_v1, %v1832_v11  ;;  %1236 = vst [vmem:[%s1817_s8 + $0x14] sm:$0xf] %v1454_v57  ;;  %v907_v15 = vmax.f32 %v837_v62, 0.0 }
 0x13c   : > { %1157 = vst [vmem:[%s1817_s8] sm:$0xf] %v1156_v2  ;;  %v1438_v5 = vpack.c.bf16 %v906_v61, %v906_v61  ;;  %v839_v16 = vadd.f32 %v1828_v7, %v726_v63  ;;  %v731_v18 = vpop.f32.mrf.mxu0 }
 0x13d   : > { %v1006_v20 = vor.u32 %v1004_v6, %v1003_v3  ;;  %v843_v22 = vadd.f32 %v1830_v10, %v730_v4  ;;  %v732_v23 = vadd.f32 %v731_v18, %v1836_v13  ;;  %v1455_v25 = vpack.c.bf16 %v907_v15, %v907_v15 }
 0x13e   : > { %v1010_v24 = vshrl.u32 %v1438_v5, 16  ;;  %v908_v27 = vmax.f32 %v839_v16, 0.0  ;;  %v733_v28 = vpop.f32.mrf.mxu0  ;;  %v1013_v10 = vshll.u32 %v1438_v5, 16  ;;  %v1008_v43 = vrot.slane %v1003_v3, 4  ;;  %v1913_v5 = vpop.f32.mrf.mxu1 }
 0x13f   : > { %v1007_v29 = vsel %vm1879_vm9, %v999_v19, %v1006_v20  ;;  %v909_v30 = vmax.f32 %v843_v22, 0.0  ;;  %v845_v31 = vadd.f32 %v1834_v12, %v732_v23  ;;  %v734_v7 = vadd.f32 %v733_v28, %v1832_v11  ;;  %1237 = vst [vmem:[%s1817_s8 + $0x1c] sm:$0xf] %v1455_v25 }
 0x140   : > { %1158 = vst [vmem:[%s1817_s8 + $0x8] sm:$0xf] %v1007_v29  ;;  %v1012_v34 = vrot.slane %v1010_v24, 7  ;;  %v1439_v35 = vpack.c.bf16 %v908_v27, %v908_v27  ;;  %v735_v36 = vpop.f32.mrf.mxu0 }
 0x141   : > { %v1456_v37 = vpack.c.bf16 %v909_v30, %v909_v30  ;;  %v910_v40 = vmax.f32 %v845_v31, 0.0  ;;  %v847_v41 = vadd.f32 %v1838_v14, %v734_v7  ;;  %v736_v42 = vadd.f32 %v735_v36, %v1836_v13  ;;  %v1924_v7 = vpop.f32.mrf.mxu1 }
 0x142   : > { %v1015_v12 = vor.u32 %v1013_v10, %v1012_v34  ;;  %v1019_v44 = vshrl.u32 %v1439_v35, 16  ;;  %v739_v45 = vpop.f32.mrf.mxu0  ;;  %v1022_v54 = vshll.u32 %v1439_v35, 16 }
 0x143   : > { %1238 = vst [vmem:[%s1817_s8 + $0x24] sm:$0xf] %v1456_v37  ;;  %v1440_v46 = vpack.c.bf16 %v910_v40, %v910_v40  ;;  %v911_v47 = vmax.f32 %v847_v41, 0.0  ;;  %v849_v48 = vadd.f32 %v1841_v17, %v736_v42  ;;  %v740_v49 = vadd.f32 %v739_v45, %v1832_v11  ;;  %v1250_v52 = vld [vmem:[%s1817_s8] sm:$0x1] }
 0x144   : > { %v1016_v14 = vsel %vm1879_vm9, %v1008_v43, %v1015_v12  ;;  %v1021_v53 = vrot.slane %v1019_v44, 7  ;;  %v741_v55 = vpop.f32.mrf.mxu0  ;;  %v1251_v56 = vsel %vm1820_vm4, 0, %v1250_v52  ;;  %v1017_v17 = vrot.slane %v1012_v34, 4 }
 0x145   : > { %1159 = vst [vmem:[%s1817_s8 + $0x10] sm:$0xf] %v1016_v14  ;;  %v1028_v58 = vshrl.u32 %v1440_v46, 16  ;;  %v1457_v59 = vpack.c.bf16 %v911_v47, %v911_v47  ;;  %v912_v57 = vmax.f32 %v849_v48, 0.0  ;;  %1252 = vst [vmem:[%s1817_s8] sm:$0x1] %v1251_v56  ;;  %v853_v62 = vadd.f32 %v1844_v21, %v740_v49  ;;  %v1935_v48 = vpop.f32.mrf.mxu1 }
 0x146   : > { %v1024_v61 = vor.u32 %v1022_v54, %v1021_v53  ;;  %v742_v63 = vadd.f32 %v741_v55, %v1836_v13  ;;  %v743_v1 = vpop.f32.mrf.mxu0  ;;  %v1031_v3 = vshll.u32 %v1440_v46, 16  ;;  %v1026_v21 = vrot.slane %v1021_v53, 4 }
 0x147   : > { %v1030_v2 = vrot.slane %v1028_v58, 7  ;;  %1239 = vst [vmem:[%s1817_s8 + $0x2c] sm:$0xf] %v1457_v59  ;;  %v1441_v6 = vpack.c.bf16 %v912_v57, %v912_v57  ;;  %v744_v4 = vadd.f32 %v743_v1, %v1832_v11  ;;  %v913_v16 = vmax.f32 %v853_v62, 0.0  ;;  %v884_v1 = vpop.f32.mrf.mxu1 }
 0x148   : > { %v1025_v15 = vsel %vm1879_vm9, %v1017_v17, %v1024_v61  ;;  %v855_v18 = vadd.f32 %v1847_v26, %v742_v63  ;;  %v745_v19 = vpop.f32.mrf.mxu0 }
 0x149   : > { %1160 = vst [vmem:[%s1817_s8 + $0x18] sm:$0xf] %v1025_v15  ;;  %v1033_v20 = vor.u32 %v1031_v3, %v1030_v2  ;;  %v1037_v22 = vshrl.u32 %v1441_v6, 16  ;;  %v1458_v23 = vpack.c.bf16 %v913_v16, %v913_v16  ;;  %v857_v25 = vadd.f32 %v1850_v32, %v744_v4 }
 0x14a   : > { %v914_v24 = vmax.f32 %v855_v18, 0.0  ;;  %v746_v27 = vadd.f32 %v745_v19, %v1836_v13  ;;  %v749_v28 = vpop.f32.mrf.mxu0  ;;  %v1040_v31 = vshll.u32 %v1441_v6, 16  ;;  %v1035_v36 = vrot.slane %v1030_v2, 4 }
 0x14b   : > { %v1034_v29 = vsel %vm1879_vm9, %v1026_v21, %v1033_v20  ;;  %v1039_v30 = vrot.slane %v1037_v22, 7  ;;  %v750_v26 = vadd.f32 %v749_v28, %v1832_v11  ;;  %1240 = vst [vmem:[%s1817_s8 + $0x34] sm:$0xf] %v1458_v23  ;;  %v915_v10 = vmax.f32 %v857_v25, 0.0 }
 0x14c   : > { %1161 = vst [vmem:[%s1817_s8 + $0x20] sm:$0xf] %v1034_v29  ;;  %v1442_v34 = vpack.c.bf16 %v914_v24, %v914_v24  ;;  %v859_v35 = vadd.f32 %v1854_v38, %v746_v27  ;;  %v751_v32 = vpop.f32.mrf.mxu0  ;;  %v886_v27 = vpop.f32.mrf.mxu1 }
 0x14d   : > { %v1042_v37 = vor.u32 %v1040_v31, %v1039_v30  ;;  %v863_v40 = vadd.f32 %v1856_v39, %v750_v26  ;;  %v752_v41 = vadd.f32 %v751_v32, %v1836_v13  ;;  %v1459_v43 = vpack.c.bf16 %v915_v10, %v915_v10 }
 0x14e   : > { %v1046_v42 = vshrl.u32 %v1442_v34, 16  ;;  %v916_v12 = vmax.f32 %v859_v35, 0.0  ;;  %v753_v44 = vpop.f32.mrf.mxu0  ;;  %v1049_v39 = vshll.u32 %v1442_v34, 16  ;;  %v1044_v58 = vrot.slane %v1039_v30, 4 }
 0x14f   : > { %v1043_v45 = vsel %vm1879_vm9, %v1035_v36, %v1042_v37  ;;  %v917_v46 = vmax.f32 %v863_v40, 0.0  ;;  %v865_v47 = vadd.f32 %v1861_v51, %v752_v41  ;;  %v754_v38 = vadd.f32 %v753_v44, %v1832_v11  ;;  %1241 = vst [vmem:[%s1817_s8 + $0x3c] sm:$0xf] %v1459_v43  ;;  %v888_v43 = vpop.f32.mrf.mxu1 }
 0x150   : > { %1162 = vst [vmem:[%s1817_s8 + $0x28] sm:$0xf] %v1043_v45  ;;  %v1048_v49 = vrot.slane %v1046_v42, 7  ;;  %v1443_v52 = vpack.c.bf16 %v916_v12, %v916_v12  ;;  %v755_v14 = vpop.f32.mrf.mxu0 }
 0x151   : > { %v1460_v53 = vpack.c.bf16 %v917_v46, %v917_v46  ;;  %v918_v54 = vmax.f32 %v865_v47, 0.0  ;;  %v867_v55 = vadd.f32 %v1869_v60, %v754_v38  ;;  %v756_v56 = vadd.f32 %v755_v14, %v1836_v13 }
 0x152   : > { %v1051_v51 = vor.u32 %v1049_v39, %v1048_v49  ;;  %v1055_v59 = vshrl.u32 %v1443_v52, 16  ;;  %v759_v57 = vpop.f32.mrf.mxu0  ;;  %v1058_v3 = vshll.u32 %v1443_v52, 16  ;;  %v1053_v18 = vrot.slane %v1048_v49, 4 }
 0x153   : > { %1242 = vst [vmem:[%s1817_s8 + $0x44] sm:$0xf] %v1460_v53  ;;  %v1444_v17 = vpack.c.bf16 %v918_v54, %v918_v54  ;;  %v919_v61 = vmax.f32 %v867_v55, 0.0  ;;  %v869_v62 = vadd.f32 %v1875_v8, %v756_v56  ;;  %v760_v63 = vadd.f32 %v759_v57, %v1832_v11 }
 0x154   : > { %v1052_v2 = vsel %vm1879_vm9, %v1044_v58, %v1051_v51  ;;  %v1057_v60 = vrot.slane %v1055_v59, 7  ;;  %v761_v6 = vpop.f32.mrf.mxu0 }
 0x155   : > { %1163 = vst [vmem:[%s1817_s8 + $0x30] sm:$0xf] %v1052_v2  ;;  %v1064_v4 = vshrl.u32 %v1444_v17, 16  ;;  %v1461_v15 = vpack.c.bf16 %v919_v61, %v919_v61  ;;  %v920_v16 = vmax.f32 %v869_v62, 0.0  ;;  %v873_v21 = vadd.f32 %v1891_v33, %v760_v63 }
 0x156   : > { %v1060_v19 = vor.u32 %v1058_v3, %v1057_v60  ;;  %v762_v8 = vadd.f32 %v761_v6, %v1836_v13  ;;  %v763_v20 = vpop.f32.mrf.mxu0  ;;  %v1067_v23 = vshll.u32 %v1444_v17, 16  ;;  %v1062_v33 = vrot.slane %v1057_v60, 4 }
 0x157   : > { %v1066_v22 = vrot.slane %v1064_v4, 7  ;;  %1243 = vst [vmem:[%s1817_s8 + $0x4c] sm:$0xf] %v1461_v15  ;;  %v1445_v24 = vpack.c.bf16 %v920_v16, %v920_v16  ;;  %v764_v25 = vadd.f32 %v763_v20, %v1832_v11  ;;  %v921_v29 = vmax.f32 %v873_v21, 0.0 }
 0x158   : > { %v1061_v28 = vsel %vm1879_vm9, %v1053_v18, %v1060_v19  ;;  %v875_v30 = vadd.f32 %v1900_v50, %v762_v8  ;;  %v765_v31 = vpop.f32.mrf.mxu0 }
 0x159   : > { %1164 = vst [vmem:[%s1817_s8 + $0x38] sm:$0xf] %v1061_v28  ;;  %v1069_v26 = vor.u32 %v1067_v23, %v1066_v22  ;;  %v1073_v34 = vshrl.u32 %v1445_v24, 16  ;;  %v1462_v10 = vpack.c.bf16 %v921_v29, %v921_v29  ;;  %v877_v32 = vadd.f32 %v1913_v5, %v764_v25 }
 0x15a   : > { %v922_v35 = vmax.f32 %v875_v30, 0.0  ;;  %v766_v36 = vadd.f32 %v765_v31, %v1836_v13  ;;  %v769_v37 = vpop.f32.mrf.mxu0  ;;  %v1076_v42 = vshll.u32 %v1445_v24, 16  ;;  %v1071_v5 = vrot.slane %v1066_v22, 4 }
 0x15b   : > { %v1070_v40 = vsel %vm1879_vm9, %v1062_v33, %v1069_v26  ;;  %v1075_v41 = vrot.slane %v1073_v34, 7  ;;  %v770_v50 = vadd.f32 %v769_v37, %v1832_v11  ;;  %1244 = vst [vmem:[%s1817_s8 + $0x54] sm:$0xf] %v1462_v10  ;;  %v923_v44 = vmax.f32 %v877_v32, 0.0 }
 0x15c   : > { %1165 = vst [vmem:[%s1817_s8 + $0x40] sm:$0xf] %v1070_v40  ;;  %v1446_v12 = vpack.c.bf16 %v922_v35, %v922_v35  ;;  %v879_v45 = vadd.f32 %v1924_v7, %v766_v36  ;;  %v771_v46 = vpop.f32.mrf.mxu0  ;;  %v892_v7 = vpop.f32.mrf.mxu1 }
 0x15d   : > { %v1078_v47 = vor.u32 %v1076_v42, %v1075_v41  ;;  %v883_v38 = vadd.f32 %v1935_v48, %v770_v50  ;;  %v772_v49 = vadd.f32 %v771_v46, %v1836_v13  ;;  %v1463_v52 = vpack.c.bf16 %v923_v44, %v923_v44 }
 0x15e   : > { %v1082_v39 = vshrl.u32 %v1446_v12, 16  ;;  %v924_v14 = vmax.f32 %v879_v45, 0.0  ;;  %v773_v53 = vpop.f32.mrf.mxu0  ;;  %v1085_v59 = vshll.u32 %v1446_v12, 16  ;;  %v1080_v2 = vrot.slane %v1075_v41, 4  ;;  %v894_v16 = vpop.f32.mrf.mxu1 }
 0x15f   : > { %v1079_v54 = vsel %vm1879_vm9, %v1071_v5, %v1078_v47  ;;  %v925_v55 = vmax.f32 %v883_v38, 0.0  ;;  %v885_v56 = vadd.f32 %v884_v1, %v772_v49  ;;  %v774_v58 = vadd.f32 %v773_v53, %v1832_v11  ;;  %1245 = vst [vmem:[%s1817_s8 + $0x5c] sm:$0xf] %v1463_v52 }
 0x160   : > { %1166 = vst [vmem:[%s1817_s8 + $0x48] sm:$0xf] %v1079_v54  ;;  %v1084_v51 = vrot.slane %v1082_v39, 7  ;;  %v1447_v48 = vpack.c.bf16 %v924_v14, %v924_v14  ;;  %v775_v57 = vpop.f32.mrf.mxu0  ;;  %v896_v34 = vpop.f32.mrf.mxu1 }
 0x161   : > { %v1464_v17 = vpack.c.bf16 %v925_v55, %v925_v55  ;;  %v926_v61 = vmax.f32 %v885_v56, 0.0  ;;  %v887_v62 = vadd.f32 %v886_v27, %v774_v58  ;;  %v776_v63 = vadd.f32 %v775_v57, %v1836_v13 }
 0x162   : > { %v1087_v60 = vor.u32 %v1085_v59, %v1084_v51  ;;  %v1091_v3 = vshrl.u32 %v1447_v48, 16  ;;  %v779_v1 = vpop.f32.mrf.mxu0  ;;  %v1094_v8 = vshll.u32 %v1447_v48, 16  ;;  %v1089_v25 = vrot.slane %v1084_v51, 4  ;;  %v898_v5 = vpop.f32.mrf.mxu1 }
 0x163   : > { %1246 = vst [vmem:[%s1817_s8 + $0x64] sm:$0xf] %v1464_v17  ;;  %v1448_v6 = vpack.c.bf16 %v926_v61, %v926_v61  ;;  %v927_v4 = vmax.f32 %v887_v62, 0.0  ;;  %v889_v15 = vadd.f32 %v888_v43, %v776_v63  ;;  %v780_v18 = vadd.f32 %v779_v1, %v1832_v11  ;;  %v1175_v61 = vld [vmem:[%s1817_s8 + $0x80] sm:$0x1] }
 0x164   : > { %v1088_v19 = vsel %vm1879_vm9, %v1080_v2, %v1087_v60  ;;  %v1093_v21 = vrot.slane %v1091_v3, 7  ;;  %v781_v20 = vpop.f32.mrf.mxu0 }
 0x165   : > { %1167 = vst [vmem:[%s1817_s8 + $0x50] sm:$0xf] %v1088_v19  ;;  %v1100_v22 = vshrl.u32 %v1448_v6, 16  ;;  %v1465_v23 = vpack.c.bf16 %v927_v4, %v927_v4  ;;  %v928_v24 = vmax.f32 %v889_v15, 0.0  ;;  %v893_v28 = vadd.f32 %v892_v7, %v780_v18 }
 0x166   : > { %v1096_v27 = vor.u32 %v1094_v8, %v1093_v21  ;;  %v782_v29 = vadd.f32 %v781_v20, %v1836_v13  ;;  %v783_v30 = vpop.f32.mrf.mxu0  ;;  %v1103_v33 = vshll.u32 %v1448_v6, 16  ;;  %v1098_v40 = vrot.slane %v1093_v21, 4 }
 0x167   : > { %v1102_v31 = vrot.slane %v1100_v22, 7  ;;  %1247 = vst [vmem:[%s1817_s8 + $0x6c] sm:$0xf] %v1465_v23  ;;  %v1449_v26 = vpack.c.bf16 %v928_v24, %v928_v24  ;;  %v784_v10 = vadd.f32 %v783_v30, %v1832_v11  ;;  %v929_v32 = vmax.f32 %v893_v28, 0.0 }
 0x168   : > { %v1097_v35 = vsel %vm1879_vm9, %v1089_v25, %v1096_v27  ;;  %v895_v36 = vadd.f32 %v894_v16, %v782_v29  ;;  %v785_v37 = vpop.f32.mrf.mxu0 }
 0x169   : > { %1168 = vst [vmem:[%s1817_s8 + $0x58] sm:$0xf] %v1097_v35  ;;  %v1105_v41 = vor.u32 %v1103_v33, %v1102_v31  ;;  %v1109_v42 = vshrl.u32 %v1449_v26, 16  ;;  %v1466_v50 = vpack.c.bf16 %v929_v32, %v929_v32  ;;  %v897_v12 = vadd.f32 %v896_v34, %v784_v10 }
 0x16a   : > { %v930_v43 = vmax.f32 %v895_v36, 0.0  ;;  %v786_v44 = vadd.f32 %v785_v37, %v1836_v13  ;;  %v1112_v46 = vshll.u32 %v1449_v26, 16  ;;  %v1107_v39 = vrot.slane %v1102_v31, 4 }
 0x16b   : > { %v1106_v11 = vsel %vm1879_vm9, %v1098_v40, %v1105_v41  ;;  %v1111_v45 = vrot.slane %v1109_v42, 7  ;;  %1248 = vst [vmem:[%s1817_s8 + $0x74] sm:$0xf] %v1466_v50  ;;  %v931_v38 = vmax.f32 %v897_v12, 0.0 }
 0x16c   : > { %1169 = vst [vmem:[%s1817_s8 + $0x60] sm:$0xf] %v1106_v11  ;;  %v1450_v47 = vpack.c.bf16 %v930_v43, %v930_v43  ;;  %v899_v49 = vadd.f32 %v898_v5, %v786_v44 }
 0x16d   : > { %v1114_v52 = vor.u32 %v1112_v46, %v1111_v45  ;;  %v1467_v53 = vpack.c.bf16 %v931_v38, %v931_v38  ;;  %v1116_v7 = vrot.slane %v1111_v45, 4 }
 0x16e   : > { %v1118_v14 = vshrl.u32 %v1450_v47, 16  ;;  %v932_v13 = vmax.f32 %v899_v49, 0.0  ;;  %v1121_v56 = vshll.u32 %v1450_v47, 16 }
 0x16f   : > { %v1115_v54 = vsel %vm1879_vm9, %v1107_v39, %v1114_v52  ;;  %1249 = vst [vmem:[%s1817_s8 + $0x7c] sm:$0xf] %v1467_v53 }
 0x170   : > { %1170 = vst [vmem:[%s1817_s8 + $0x68] sm:$0xf] %v1115_v54  ;;  %v1120_v55 = vrot.slane %v1118_v14, 7  ;;  %v1451_v58 = vpack.c.bf16 %v932_v13, %v932_v13 }
 0x172   : > { %v1123_v51 = vor.u32 %v1121_v56, %v1120_v55  ;;  %v1127_v59 = vshrl.u32 %v1451_v58, 16  ;;  %v1130_v17 = vshll.u32 %v1451_v58, 16  ;;  %v1125_v62 = vrot.slane %v1120_v55, 4 }
 0x174   : > { %v1124_v48 = vsel %vm1879_vm9, %v1116_v7, %v1123_v51  ;;  %v1129_v57 = vrot.slane %v1127_v59, 7 }
 0x175   : > { %1171 = vst [vmem:[%s1817_s8 + $0x70] sm:$0xf] %v1124_v48 }
 0x176   : > { %v1132_v63 = vor.u32 %v1130_v17, %v1129_v57  ;;  %v1134_v2 = vrot.slane %v1129_v57, 4 }
 0x178   : > { %v1133_v60 = vsel %vm1879_vm9, %v1125_v62, %v1132_v63  ;;  %v1176_v3 = vsel %vm1820_vm4, %v1134_v2, %v1175_v61 }
 0x179   : > { %1172 = vst [vmem:[%s1817_s8 + $0x78] sm:$0xf] %v1133_v60  ;;  %1177 = vst [vmem:[%s1817_s8 + $0x80] sm:$0x1] %v1176_v3 }
 0x17a PF: > { %s15_s12 = sadd.s32 1, %s1650_s12  }
 0x17b   : > { %p12_p3 = scmp.ge.s32.totalorder %s15_s12, 4  }
 0x17d   :  { %14 = sbr.rel (!%p12_p3) target bundleno = 2 (0x2), region = 71 }
 0x182   :  { %1277 = vsyncpa [#allocation3], 1 }
 0x183   :  { %1279 = vsyncpa [#allocation3 + $0x1], 1 }
 0x184   :  { %1280 = vsyncpa [#allocation5], 1 }

// kernel: generator_img_v_forward.9
= control target key start
LH: loop header
LB: loop body
LE: loop exit
PB: predicated region body
PF: predicated region fallthrough
CT: control target
= control target key end

     0   :  { %8 = vsyncpa [#allocation3], 0  ;;  %s1569_s0 = inlined_call_operand.vmem [shape: bf16[2,258,128], index: 0, kind: input, shape index: {}]   ;;  %s1570_s1 = inlined_call_operand.hbm [shape: bf16[384,256], index: 1, kind: input, shape index: {}]   ;;  %s1571_s2 = inlined_call_operand.hbm [shape: f32[1,256], index: 2, kind: input, shape index: {}]   ;;  %s1572_s3 = inlined_call_operand.vmem [shape: f32[2,128,256], index: 3, kind: output, shape index: {}]  }
   0x1   :  { %9 = vsyncpa [#allocation5], 0  ;;  %s1323_s12 = smov 0  }
   0x2 LB: > { %s1329_s13 = sadd.s32 4294967295, %s1296_s12   ;;  %p1044_p0 = scmp.ge.s32.totalorder %s1296_s12, 1  ;;  %s1296_s12 = sphi %s1323_s12, %s15_s12  }
   0x3   : > { %p114_p1 = scmp.lt.s32.totalorder %s1296_s12, 3  ;;  %s1298_s14 = smov [#allocation2]  }
   0x4   : > { %s126_s15 = sshll.u32 %s1298_s14, 4  ;;  %p1131_p3 = scmp.eq.s32.totalorder %s1329_s13, 0  ;;  %s127_s15 = int_to_ptr.vmem [resolvable:$true] %s126_s15 }
   0x5   : > { %p1333_p2 = pnand %p1044_p0, %p114_p1  ;;  %s1299_s17 = smov [#allocation4]  }
   0x6   : > { %s140_s18 = sshll.u32 %s1299_s17, 4  ;;  %s1241_s20 = scalar_lea.vmem %s127_s15, 6144  ;;  %s141_s18 = int_to_ptr.vmem [resolvable:$true] %s140_s18 }
   0x7   : > { %p1124_p4 = pneg %p1333_p2  ;;  %p1242_p7 = scmp.ne.s32.totalorder %s127_s15, %s1241_s20 }
   0x8   : > { %p1249_p10 = scmp.lt.s32.totalorder %s127_s15, %s127_s15  ;;  %p1250_p11 = scmp.lt.s32.totalorder %s1241_s20, %s1241_s20 }
   0x9   : > { %p1342_p5 = pnand %p1131_p3, %p1124_p4 }
   0xa   : > { %p1251_p12 = por %p1250_p11, %p1249_p10 }
   0xb   : > { %p1232_p6 = pneg %p1342_p5 }
   0xd   : > { %p1244_p8 = pnand %p1242_p7, %p1232_p6 }
   0xf   : > { %p1245_p9 = pneg %p1244_p8 }
  0x11   : > { %p1252_p13 = pnand %p1251_p12, %p1245_p9 }
  0x13   : > { %1255 = shalt.err (!%p1252_p13)
}
  0x14   : > { %s1300_s21 = smov 128   ;;  %s1301_s22 = smov 8  }
  0x15   : > { %1127 = dma.hbm_to_vmem [thread:$0]  (!%p1342_p5), %s1570_s1, 6144, %s127_s15, [#allocation3], %s1300_s21, %s1300_s21, %s1301_s22  }
  0x16   : > { %s1267_s25 = scalar_lea.vmem %s141_s18, 32  ;;  %p1275_p7 = scmp.lt.s32.totalorder %s141_s18, %s141_s18 }
  0x17   : > { %p1268_p0 = scmp.ne.s32.totalorder %s141_s18, %s1267_s25  ;;  %p1276_p8 = scmp.lt.s32.totalorder %s1267_s25, %s1267_s25 }
  0x19   : > { %p1270_p1 = pnand %p1268_p0, %p1232_p6  ;;  %p1277_p10 = por %p1276_p8, %p1275_p7 }
  0x1b   : > { %p1271_p4 = pneg %p1270_p1 }
  0x1d   : > { %p1278_p9 = pnand %p1277_p10, %p1271_p4 }
  0x1f   : > { %1281 = shalt.err (!%p1278_p9)
}
  0x20   : > { %1130 = dma.hbm_to_vmem [thread:$0]  (!%p1342_p5), %s1571_s2, 32, %s141_s18, [#allocation5]  }
  0x21   : > { %161 = sbr.rel (%p1333_p2) target bundleno = 368 (0x170), region = 32 }
  0x26   : > { %1287 = dma.done.wait (%p1131_p3), [#allocation3], 6144  }
  0x27   : > { %1289 = vsyncadd (%p1131_p3), [#allocation3], 4294961152 }
  0x28   : > { %1291 = dma.done.wait (%p1131_p3), [#allocation5], 32  }
  0x29   : > { %1293 = vsyncadd (%p1131_p3), [#allocation5], 4294967264  ;;  %v1302_v0 = vmov 0   ;;  %v1148_v1 = vld [vmem:[#allocation2 + $0x74] ss:$8 sps:$4 sm:$0xff]   ;;  %p189_p2 = scmp.lt.s32.totalorder %s1329_s13, 1 }
  0x2a   : > { %820 = vmatprep.mubr.bf16.mxu1 %v1302_v0  ;;  %v1150_v2 = vld [vmem:[#allocation2 + $0x70] ss:$8 sps:$4 sm:$0xff]   ;;  %675 = vmatprep.subr.bf16.mxu0 %v1148_v1  ;;  %v1151_v3 = vld [vmem:[#allocation2 + $0x64] ss:$8 sps:$4 sm:$0xff]   ;;  %v1153_v4 = vld [vmem:[#allocation2 + $0x60] ss:$8 sps:$4 sm:$0xff]  }
  0x2b   : > { %676 = vmatpush1.bf16.msra.mxu0 %v1150_v2  ;;  %v1154_v5 = vld [vmem:[#allocation2 + $0x54] ss:$8 sps:$4 sm:$0xff]   ;;  %v1156_v6 = vld [vmem:[#allocation2 + $0x50] ss:$8 sps:$4 sm:$0xff]   ;;  %v1157_v7 = vld [vmem:[#allocation2 + $0x44] ss:$8 sps:$4 sm:$0xff]  }
  0x2c   : > { %677 = vmatprep.subr.bf16.mxu0 %v1151_v3  ;;  %v1159_v8 = vld [vmem:[#allocation2 + $0x40] ss:$8 sps:$4 sm:$0xff]   ;;  %v1171_v9 = vld [vmem:[#allocation2 + $0x174] ss:$8 sps:$4 sm:$0xff]   ;;  %v1174_v10 = vld [vmem:[#allocation2 + $0x170] ss:$8 sps:$4 sm:$0xff]  }
  0x2d   : > { %v1160_v11 = vld [vmem:[#allocation2 + $0x34] ss:$8 sps:$4 sm:$0xff]   ;;  %788 = vmatprep.subr.bf16.mxu1 %v1171_v9  ;;  %v1177_v12 = vld [vmem:[#allocation2 + $0x164] ss:$8 sps:$4 sm:$0xff]   ;;  %v1180_v13 = vld [vmem:[#allocation2 + $0x160] ss:$8 sps:$4 sm:$0xff]  }
  0x2e   : > { %789 = vmatpush1.bf16.msra.mxu1 %v1174_v10  ;;  %v1162_v14 = vld [vmem:[#allocation2 + $0x30] ss:$8 sps:$4 sm:$0xff]   ;;  %v1163_v15 = vld [vmem:[#allocation2 + $0x24] ss:$8 sps:$4 sm:$0xff]   ;;  %v1183_v16 = vld [vmem:[#allocation2 + $0x154] ss:$8 sps:$4 sm:$0xff]  }
  0x2f   : > { %678 = vmatpush1.bf16.msra.mxu0 %v1153_v4  ;;  %790 = vmatprep.subr.bf16.mxu1 %v1177_v12  ;;  %v1186_v17 = vld [vmem:[#allocation2 + $0x150] ss:$8 sps:$4 sm:$0xff]   ;;  %v1165_v18 = vld [vmem:[#allocation2 + $0x20] ss:$8 sps:$4 sm:$0xff]   ;;  %v1189_v19 = vld [vmem:[#allocation2 + $0x144] ss:$8 sps:$4 sm:$0xff]  }
  0x30   : > { %679 = vmatprep.subr.bf16.mxu0 %v1154_v5  ;;  %v1166_v20 = vld [vmem:[#allocation2 + $0x14] ss:$8 sps:$4 sm:$0xff]   ;;  %s1576_s13 = smov (!%p189_p2, %s1329_s13), 1  ;;  %v1168_v21 = vld [vmem:[#allocation2 + $0x10] ss:$8 sps:$4 sm:$0xff]   ;;  %vm349_vm1 = vcmask 1046528  }
  0x31   : > { %v1192_v22 = vld [vmem:[#allocation2 + $0x140] ss:$8 sps:$4 sm:$0xff]   ;;  %v1195_v23 = vld [vmem:[#allocation2 + $0x134] ss:$8 sps:$4 sm:$0xff]   ;;  %v1169_v24 = vld [vmem:[#allocation2 + $0x4] ss:$8 sps:$4 sm:$0xff]  }
  0x32   : > { %791 = vmatpush1.bf16.msra.mxu1 %v1180_v13  ;;  %s1115_s28 = smul.u32 132, %s1576_s13  ;;  %v1198_v25 = vld [vmem:[#allocation2 + $0x130] ss:$8 sps:$4 sm:$0xff]   ;;  %v1173_v26 = vld [vmem:[#allocation2] ss:$8 sps:$4 sm:$0xff]   ;;  %s1114_s5 = sshll.u32 %s1576_s13, 8 }
  0x33   : > { %680 = vmatpush1.bf16.msra.mxu0 %v1156_v6  ;;  %792 = vmatprep.subr.bf16.mxu1 %v1183_v16  ;;  %v1201_v27 = vld [vmem:[#allocation2 + $0x124] ss:$8 sps:$4 sm:$0xff]   ;;  %v1175_v28 = vld [vmem:[#allocation2 + $0xf4] ss:$8 sps:$4 sm:$0xff]   ;;  %v1179_v29 = vld [vmem:[#allocation2 + $0xf0] ss:$8 sps:$4 sm:$0xff]   ;;  %s1475_s8 = scalar_lea.vmem %s1572_s3, %s1114_s5 }
  0x34   : > { %681 = vmatprep.subr.bf16.mxu0 %v1157_v7  ;;  %s1383_s4 = scalar_lea.vmem %s1569_s0, %s1115_s28  ;;  %v1181_v30 = vld [vmem:[#allocation2 + $0xe4] ss:$8 sps:$4 sm:$0xff]   ;;  %v1204_v31 = vld [vmem:[#allocation2 + $0x120] ss:$8 sps:$4 sm:$0xff]   ;;  %v1207_v32 = vld [vmem:[#allocation2 + $0x114] ss:$8 sps:$4 sm:$0xff]  }
  0x35   : > { %v200_v33 = vld [vmem:[%s1383_s4 + $0x20] sm:$0xf]  ;;  %v201_v34 = vld [vmem:[%s1383_s4 + $0x24] sm:$0xf]  ;;  %v1210_v36 = vld [vmem:[#allocation2 + $0x110] ss:$8 sps:$4 sm:$0xff]  }
  0x36   : > { %793 = vmatpush1.bf16.msra.mxu1 %v1186_v17  ;;  %v1185_v35 = vld [vmem:[#allocation2 + $0xe0] ss:$8 sps:$4 sm:$0xff]   ;;  %v1388_v38 = vcombine.low %v200_v33, %v201_v34  ;;  %v1213_v40 = vld [vmem:[#allocation2 + $0x104] ss:$8 sps:$4 sm:$0xff]   ;;  %v1187_v45 = vld [vmem:[#allocation2 + $0xd4] ss:$8 sps:$4 sm:$0xff]  }
  0x37   : > { %682 = vmatpush1.bf16.msra.mxu0 %v1159_v8  ;;  %794 = vmatprep.subr.bf16.mxu1 %v1189_v19  ;;  %v217_v37 = vld [vmem:[%s1383_s4 + $0x20] sm:$0xe]  ;;  %v1391_v39 = vld [vmem:[%s1383_s4 + $0x28] sm:$0xff]   ;;  %vm269_vm0 = vsmask.f32 7424  ;;  %v1400_v56 = vld [vmem:[%s1383_s4 + $0x30] sm:$0xff]  }
  0x38   : > { %683 = vmatprep.subr.bf16.mxu0 %v1160_v11  ;;  %v1063_v41 = vcombine.low %v217_v37, %v201_v34  ;;  %v271_v42 = vshrl.u32 %v1388_v38, 16  ;;  %v273_v43 = vshll.u32 %v1388_v38, 16  ;;  %v278_v44 = vshll.u32 %v1391_v39, 16  ;;  %v1216_v46 = vld [vmem:[#allocation2 + $0x100] ss:$8 sps:$4 sm:$0xff]   ;;  %v1403_v57 = vld [vmem:[%s1383_s4 + $0x58] sm:$0xff]  }
  0x39   : > { %v351_v50 = vrot.slane %v1391_v39, 1  ;;  %v1191_v51 = vld [vmem:[#allocation2 + $0xd0] ss:$8 sps:$4 sm:$0xff]   ;;  %v1193_v53 = vld [vmem:[#allocation2 + $0xc4] ss:$8 sps:$4 sm:$0xff]   ;;  %v353_v61 = vrot.slane %v1400_v56, 1 }
  0x3a   : > { %795 = vmatpush1.bf16.msra.mxu1 %v1192_v22  ;;  %v275_v47 = vrot.slane %v273_v43, 1  ;;  %v280_v48 = vrot.slane %v278_v44, 1  ;;  %v350_v49 = vrot.slane %v1063_v41, 1  ;;  %v1197_v58 = vld [vmem:[#allocation2 + $0xc0] ss:$8 sps:$4 sm:$0xff]   ;;  %v326_v62 = vshll.u32 %v1403_v57, 16 }
  0x3b   : > { %684 = vmatpush1.bf16.msra.mxu0 %v1162_v14  ;;  %796 = vmatprep.subr.bf16.mxu1 %v1195_v23  ;;  %v1199_v59 = vld [vmem:[#allocation2 + $0xb4] ss:$8 sps:$4 sm:$0xff]   ;;  %v1406_v60 = vld [vmem:[%s1383_s4 + $0x60] ss:$0 sps:$4 sm:$0x11]   ;;  %v330_v1 = vshrl.u32 %v1403_v57, 16  ;;  %v354_v5 = vsel %vm349_vm1, %v351_v50, %v353_v61 }
  0x3c   : > { %685 = vmatprep.subr.bf16.mxu0 %v1163_v15  ;;  %v276_v52 = vor.u32 %v275_v47, %v271_v42  ;;  %v352_v55 = vsel %vm349_vm1, %v350_v49, %v351_v50  ;;  %v1203_v63 = vld [vmem:[#allocation2 + $0xb0] ss:$8 sps:$4 sm:$0xff]   ;;  %v1205_v2 = vld [vmem:[#allocation2 + $0xa4] ss:$8 sps:$4 sm:$0xff]   ;;  %v1412_v3 = vrot.slane %v326_v62, 1  ;;  %v334_v4 = vshll.u32 %v1406_v60, 16 }
  0x3d   : > { %v1417_v6 = vld [vmem:[%s1383_s4 + $0x38] sm:$0xff]   ;;  %v1209_v9 = vld [vmem:[#allocation2 + $0xa0] ss:$8 sps:$4 sm:$0xff]   ;;  %v1217_v14 = vld [vmem:[#allocation2 + $0x84] ss:$8 sps:$4 sm:$0xff]   ;;  %v282_v15 = vshrl.u32 %v1391_v39, 16 }
  0x3e   : > { %797 = vmatpush1.bf16.msra.mxu1 %v1198_v25  ;;  %v281_v54 = vsel %vm269_vm0, %v276_v52, %v280_v48  ;;  %v332_v7 = vor.u32 %v330_v1, %v1412_v3  ;;  %v336_v8 = vrot.slane %v334_v4, 1  ;;  %v1211_v10 = vld [vmem:[#allocation2 + $0x94] ss:$8 sps:$4 sm:$0xff]   ;;  %v355_v12 = vrot.slane %v1417_v6, 1  ;;  %v1215_v13 = vld [vmem:[#allocation2 + $0x90] ss:$8 sps:$4 sm:$0xff]  }
  0x3f   : > { %686 = vmatpush1.bf16.msra.mxu0 %v1165_v18  ;;  %798 = vmatprep.subr.bf16.mxu1 %v1201_v27  ;;  %v286_v16 = vshll.u32 %v1400_v56, 16  ;;  %v1225_v18 = vld [vmem:[%s1383_s4 + $0x40] sm:$0xff]   ;;  %v294_v25 = vshll.u32 %v1417_v6, 16  ;;  %v1226_v27 = vld [vmem:[%s1383_s4 + $0x48] sm:$0xff]   ;;  %v365_v52 = vrot.slane %v1406_v60, 1 }
  0x40   : > { %687 = vmatprep.subr.bf16.mxu0 %v1166_v20  ;;  %707 = vmatprep.mubr.bf16.mxu0 %v281_v54  ;;  %v1421_v11 = vsel %vm269_vm0, %v332_v7, %v336_v8  ;;  %v356_v17 = vsel %vm349_vm1, %v353_v61, %v355_v12  ;;  %v1222_v19 = vld [vmem:[#allocation2 + $0x80] ss:$8 sps:$4 sm:$0xff]   ;;  %v284_v20 = vor.u32 %v282_v15, %v280_v48  ;;  %v357_v22 = vrot.slane %v1225_v18, 1 }
  0x41   : > { %v302_v33 = vshll.u32 %v1225_v18, 16  ;;  %v306_v41 = vshrl.u32 %v1225_v18, 16  ;;  %v310_v42 = vshll.u32 %v1226_v27, 16  ;;  %v314_v47 = vshrl.u32 %v1226_v27, 16 }
  0x42   : > { %799 = vmatpush1.bf16.msra.mxu1 %v1204_v31  ;;  %v425_v61 = vlaneseq }
  0x43   : > { %688 = vmatpush1.bf16.msra.mxu0 %v1168_v21  ;;  %800 = vmatprep.subr.bf16.mxu1 %v1207_v32  ;;  %v288_v21 = vrot.slane %v286_v16, 1  ;;  %v298_v32 = vshrl.u32 %v1417_v6, 16  ;;  %v304_v37 = vrot.slane %v302_v33, 1  ;;  %v312_v44 = vrot.slane %v310_v42, 1 }
  0x44   : > { %689 = vmatprep.subr.bf16.mxu0 %v1169_v24  ;;  %v290_v24 = vshrl.u32 %v1400_v56, 16  ;;  %v426_v1 = vshrl.u32 %v425_v61, 7 }
  0x45   : > { %v289_v23 = vsel %vm269_vm0, %v284_v20, %v288_v21  ;;  %v316_v50 = vor.u32 %v314_v47, %v312_v44 }
  0x46   : > { %801 = vmatpush1.bf16.msra.mxu1 %v1210_v36  ;;  %v431_v7 = vsub.s32 1, %v426_v1 }
  0x47   : > { %690 = vmatpush1.bf16.msra.mxu0 %v1173_v26  ;;  %802 = vmatprep.subr.bf16.mxu1 %v1213_v40  ;;  %v358_v26 = vsel %vm349_vm1, %v355_v12, %v357_v22 }
  0x48   : > { %691 = vmatprep.subr.bf16.mxu0 %v1175_v28  ;;  %v292_v28 = vor.u32 %v290_v24, %v288_v21 }
  0x4a   : > { %803 = vmatpush1.bf16.msra.mxu1 %v1216_v46 }
  0x4b   : > { %692 = vmatpush2.bf16.msra.mxu0 %v1179_v29  ;;  %v296_v29 = vrot.slane %v294_v25, 1 }
  0x4c   : > { %693 = vmatprep.subr.bf16.mxu0 %v1181_v30  ;;  %v359_v30 = vrot.slane %v1226_v27, 1 }
  0x4d   : > { %821 = vmatmul.mubr.bf16.vlgmr.msra.gmra.mxu1 %v352_v55  ;;  %v297_v31 = vsel %vm269_vm0, %v292_v28, %v296_v29  ;;  %v300_v36 = vor.u32 %v298_v32, %v296_v29 }
  0x4e   : > { %830 = vmatprep.mubr.bf16.mxu1 %v1302_v0  ;;  %v360_v34 = vsel %vm349_vm1, %v357_v22, %v359_v30 }
  0x4f   : > { %694 = vmatpush2.bf16.msra.mxu0 %v1185_v35  ;;  %v1227_v35 = vld [vmem:[%s1383_s4 + $0x50] sm:$0xff]   ;;  %v305_v40 = vsel %vm269_vm0, %v300_v36, %v304_v37 }
  0x50   : > { %695 = vmatprep.subr.bf16.mxu0 %v1187_v45  ;;  %v363_v45 = vrot.slane %v1403_v57, 1  ;;  %v318_v48 = vshll.u32 %v1227_v35, 16  ;;  %v322_v54 = vshrl.u32 %v1227_v35, 16 }
  0x52   : > { %v366_v55 = vsel %vm349_vm1, %v363_v45, %v365_v52 }
  0x53   : > { %696 = vmatpush2.bf16.msra.mxu0 %v1191_v51  ;;  %v320_v51 = vrot.slane %v318_v48, 1 }
  0x54   : > { %697 = vmatprep.subr.bf16.mxu0 %v1193_v53 }
  0x55   : > { %831 = vmatmul.mubr.bf16.gmra.mxu1 %v354_v5  ;;  %v321_v53 = vsel %vm269_vm0, %v316_v50, %v320_v51  ;;  %v427_v5 = vsub.s32 0, %v426_v1 }
  0x56   : > { %840 = vmatprep.mubr.bf16.mxu1 %v1302_v0 }
  0x57   : > { %698 = vmatpush2.bf16.msra.mxu0 %v1197_v58 }
  0x58   : > { %699 = vmatprep.subr.bf16.mxu0 %v1199_v59 }
  0x5b   : > { %700 = vmatpush2.bf16.msra.mxu0 %v1203_v63 }
  0x5c   : > { %701 = vmatprep.subr.bf16.mxu0 %v1205_v2 }
  0x5d   : > { %841 = vmatmul.mubr.bf16.gmra.mxu1 %v356_v17 }
  0x5e   : > { %850 = vmatprep.mubr.bf16.mxu1 %v1302_v0 }
  0x5f   : > { %702 = vmatpush2.bf16.msra.mxu0 %v1209_v9 }
  0x60   : > { %703 = vmatprep.subr.bf16.mxu0 %v1211_v10 }
  0x63   : > { %704 = vmatpush2.bf16.msra.mxu0 %v1215_v13 }
  0x64   : > { %705 = vmatprep.subr.bf16.mxu0 %v1217_v14 }
  0x65   : > { %851 = vmatmul.mubr.bf16.gmra.mxu1 %v358_v26 }
  0x66   : > { %860 = vmatprep.mubr.bf16.mxu1 %v1302_v0 }
  0x67   : > { %706 = vmatpush2.bf16.msra.mxu0 %v1222_v19 }
  0x6a   : > { %708 = vmatmul.mubr.bf16.vlgmr.msra.gmra.mxu0 %v1388_v38  ;;  %v361_v38 = vrot.slane %v1227_v35, 1 }
  0x6b   : > { %717 = vmatprep.mubr.bf16.mxu0 %v289_v23 }
  0x6c   : > { %v362_v43 = vsel %vm349_vm1, %v359_v30, %v361_v38  ;;  %v364_v49 = vsel %vm349_vm1, %v361_v38, %v363_v45 }
  0x6d   : > { %861 = vmatmul.mubr.bf16.gmra.mxu1 %v360_v34 }
  0x6e   : > { %870 = vmatprep.mubr.bf16.mxu1 %v1302_v0 }
  0x72   : > { %718 = vmatmul.mubr.bf16.gmra.mxu0 %v1391_v39  ;;  %v308_v39 = vor.u32 %v306_v41, %v304_v37 }
  0x73   : > { %727 = vmatprep.mubr.bf16.mxu0 %v297_v31 }
  0x74   : > { %v313_v46 = vsel %vm269_vm0, %v308_v39, %v312_v44 }
  0x75   : > { %871 = vmatmul.mubr.bf16.gmra.mxu1 %v362_v43 }
  0x76   : > { %880 = vmatprep.mubr.bf16.mxu1 %v1302_v0 }
  0x7a   : > { %728 = vmatmul.mubr.bf16.gmra.mxu0 %v1400_v56  ;;  %v324_v56 = vor.u32 %v322_v54, %v320_v51 }
  0x7b   : > { %737 = vmatprep.mubr.bf16.mxu0 %v305_v40 }
  0x7c   : > { %v329_v58 = vsel %vm269_vm0, %v324_v56, %v1412_v3  ;;  %v423_v3 = vld [vmem:[#allocation4] sm:$0x3] }
  0x7d   : > { %881 = vmatmul.mubr.bf16.gmra.mxu1 %v364_v49  ;;  %v1459_v9 = vrot.slane %v423_v3, %v427_v5 }
  0x7e   : > { %890 = vmatprep.mubr.bf16.mxu1 %v1302_v0 }
  0x82   : > { %738 = vmatmul.mubr.bf16.gmra.mxu0 %v1417_v6 }
  0x83   : > { %747 = vmatprep.mubr.bf16.mxu0 %v313_v46 }
  0x85   : > { %891 = vmatmul.mubr.bf16.gmra.mxu1 %v366_v55 }
  0x8a   : > { %748 = vmatmul.mubr.bf16.gmra.mxu0 %v1225_v18 }
  0x8b   : > { %757 = vmatprep.mubr.bf16.mxu0 %v321_v53 }
  0x92   : > { %758 = vmatmul.mubr.bf16.gmra.mxu0 %v1226_v27 }
  0x93   : > { %767 = vmatprep.mubr.bf16.mxu0 %v329_v58 }
  0x9a   : > { %768 = vmatmul.mubr.bf16.gmra.mxu0 %v1227_v35 }
  0x9b   : > { %777 = vmatprep.mubr.bf16.mxu0 %v1421_v11  ;;  %v1461_v11 = vrot.slane %v423_v3, %v431_v7 }
  0xa2   : > { %778 = vmatmul.mubr.bf16.gmra.mxu0 %v1403_v57 }
 0x10d   : > { %v822_v0 = vpop.f32.mrf.mxu1 }
 0x10f   : > { %v824_v59 = vpop.f32.mrf.mxu1 }
 0x111   : > { %v826_v60 = vpop.f32.mrf.mxu1 }
 0x113   : > { %v828_v62 = vpop.f32.mrf.mxu1 }
 0x115   : > { %v832_v63 = vpop.f32.mrf.mxu1 }
 0x117   : > { %v834_v2 = vpop.f32.mrf.mxu1 }
 0x119   : > { %v836_v4 = vpop.f32.mrf.mxu1 }
 0x11b   : > { %v838_v6 = vpop.f32.mrf.mxu1 }
 0x11d   : > { %v842_v8 = vpop.f32.mrf.mxu1 }
 0x11f   : > { %v844_v10 = vpop.f32.mrf.mxu1 }
 0x121   : > { %v1463_v57 = vpop.f32.mrf.mxu1 }
 0x123   : > { %v1467_v14 = vpop.f32.mrf.mxu1 }
 0x125   : > { %v1470_v18 = vpop.f32.mrf.mxu1 }
 0x127   : > { %v1478_v23 = vpop.f32.mrf.mxu1 }
 0x129   : > { %v1482_v28 = vpop.f32.mrf.mxu1 }
 0x12a   : > { %v709_v12 = vpop.f32.mrf.mxu0 }
 0x12b   : > { %v710_v13 = vadd.f32 %v709_v12, %v1459_v9  ;;  %v1486_v33 = vpop.f32.mrf.mxu1 }
 0x12c   : > { %v711_v15 = vpop.f32.mrf.mxu0 }
 0x12d   : > { %v823_v16 = vadd.f32 %v822_v0, %v710_v13  ;;  %v712_v17 = vadd.f32 %v711_v15, %v1461_v11  ;;  %v1490_v38 = vpop.f32.mrf.mxu1 }
 0x12e   : > { %v713_v19 = vpop.f32.mrf.mxu0 }
 0x12f   : > { %v901_v20 = vmax.f32 %v823_v16, 0.0  ;;  %v825_v21 = vadd.f32 %v824_v59, %v712_v17  ;;  %v714_v22 = vadd.f32 %v713_v19, %v1459_v9  ;;  %v1494_v39 = vpop.f32.mrf.mxu1 }
 0x130   : > { %v715_v24 = vpop.f32.mrf.mxu0 }
 0x131   : > { %933 = vst [vmem:[%s1475_s8] sm:$0xff] %v901_v20  ;;  %v902_v25 = vmax.f32 %v825_v21, 0.0  ;;  %v827_v26 = vadd.f32 %v826_v60, %v714_v22  ;;  %v716_v27 = vadd.f32 %v715_v24, %v1461_v11  ;;  %v1498_v48 = vpop.f32.mrf.mxu1 }
 0x132   : > { %v719_v29 = vpop.f32.mrf.mxu0 }
 0x133   : > { %934 = vst [vmem:[%s1475_s8 + $0x8] sm:$0xff] %v902_v25  ;;  %v903_v30 = vmax.f32 %v827_v26, 0.0  ;;  %v829_v31 = vadd.f32 %v828_v62, %v716_v27  ;;  %v720_v32 = vadd.f32 %v719_v29, %v1459_v9  ;;  %v1502_v53 = vpop.f32.mrf.mxu1 }
 0x134   : > { %v721_v34 = vpop.f32.mrf.mxu0 }
 0x135   : > { %935 = vst [vmem:[%s1475_s8 + $0x10] sm:$0xff] %v903_v30  ;;  %v904_v35 = vmax.f32 %v829_v31, 0.0  ;;  %v833_v36 = vadd.f32 %v832_v63, %v720_v32  ;;  %v722_v37 = vadd.f32 %v721_v34, %v1461_v11  ;;  %v1506_v59 = vpop.f32.mrf.mxu1 }
 0x136   : > { %v723_v40 = vpop.f32.mrf.mxu0 }
 0x137   : > { %936 = vst [vmem:[%s1475_s8 + $0x18] sm:$0xff] %v904_v35  ;;  %v905_v41 = vmax.f32 %v833_v36, 0.0  ;;  %v835_v42 = vadd.f32 %v834_v2, %v722_v37  ;;  %v724_v43 = vadd.f32 %v723_v40, %v1459_v9 }
 0x138   : > { %v725_v44 = vpop.f32.mrf.mxu0 }
 0x139   : > { %937 = vst [vmem:[%s1475_s8 + $0x20] sm:$0xff] %v905_v41  ;;  %v906_v45 = vmax.f32 %v835_v42, 0.0  ;;  %v837_v46 = vadd.f32 %v836_v4, %v724_v43  ;;  %v726_v47 = vadd.f32 %v725_v44, %v1461_v11 }
 0x13a   : > { %v729_v49 = vpop.f32.mrf.mxu0 }
 0x13b   : > { %938 = vst [vmem:[%s1475_s8 + $0x28] sm:$0xff] %v906_v45  ;;  %v907_v50 = vmax.f32 %v837_v46, 0.0  ;;  %v839_v51 = vadd.f32 %v838_v6, %v726_v47  ;;  %v730_v52 = vadd.f32 %v729_v49, %v1459_v9  ;;  %v874_v6 = vpop.f32.mrf.mxu1 }
 0x13c   : > { %v731_v54 = vpop.f32.mrf.mxu0 }
 0x13d   : > { %939 = vst [vmem:[%s1475_s8 + $0x30] sm:$0xff] %v907_v50  ;;  %v908_v55 = vmax.f32 %v839_v51, 0.0  ;;  %v843_v56 = vadd.f32 %v842_v8, %v730_v52  ;;  %v732_v58 = vadd.f32 %v731_v54, %v1461_v11  ;;  %v876_v16 = vpop.f32.mrf.mxu1 }
 0x13e   : > { %v733_v0 = vpop.f32.mrf.mxu0 }
 0x13f   : > { %940 = vst [vmem:[%s1475_s8 + $0x38] sm:$0xff] %v908_v55  ;;  %v909_v60 = vmax.f32 %v843_v56, 0.0  ;;  %v845_v61 = vadd.f32 %v844_v10, %v732_v58  ;;  %v734_v62 = vadd.f32 %v733_v0, %v1459_v9  ;;  %v878_v25 = vpop.f32.mrf.mxu1 }
 0x140   : > { %v735_v63 = vpop.f32.mrf.mxu0 }
 0x141   : > { %941 = vst [vmem:[%s1475_s8 + $0x40] sm:$0xff] %v909_v60  ;;  %v910_v1 = vmax.f32 %v845_v61, 0.0  ;;  %v847_v2 = vadd.f32 %v1463_v57, %v734_v62  ;;  %v736_v4 = vadd.f32 %v735_v63, %v1461_v11  ;;  %v882_v34 = vpop.f32.mrf.mxu1 }
 0x142   : > { %v739_v5 = vpop.f32.mrf.mxu0 }
 0x143   : > { %942 = vst [vmem:[%s1475_s8 + $0x48] sm:$0xff] %v910_v1  ;;  %v911_v3 = vmax.f32 %v847_v2, 0.0  ;;  %v849_v7 = vadd.f32 %v1467_v14, %v736_v4  ;;  %v740_v8 = vadd.f32 %v739_v5, %v1459_v9  ;;  %v884_v43 = vpop.f32.mrf.mxu1 }
 0x144   : > { %v741_v10 = vpop.f32.mrf.mxu0 }
 0x145   : > { %943 = vst [vmem:[%s1475_s8 + $0x50] sm:$0xff] %v911_v3  ;;  %v912_v12 = vmax.f32 %v849_v7, 0.0  ;;  %v853_v13 = vadd.f32 %v1470_v18, %v740_v8  ;;  %v742_v15 = vadd.f32 %v741_v10, %v1461_v11  ;;  %v886_v51 = vpop.f32.mrf.mxu1 }
 0x146   : > { %v743_v57 = vpop.f32.mrf.mxu0 }
 0x147   : > { %944 = vst [vmem:[%s1475_s8 + $0x58] sm:$0xff] %v912_v12  ;;  %v913_v17 = vmax.f32 %v853_v13, 0.0  ;;  %v855_v19 = vadd.f32 %v1478_v23, %v742_v15  ;;  %v744_v20 = vadd.f32 %v743_v57, %v1459_v9  ;;  %v888_v61 = vpop.f32.mrf.mxu1 }
 0x148   : > { %v745_v14 = vpop.f32.mrf.mxu0 }
 0x149   : > { %945 = vst [vmem:[%s1475_s8 + $0x60] sm:$0xff] %v913_v17  ;;  %v914_v21 = vmax.f32 %v855_v19, 0.0  ;;  %v857_v22 = vadd.f32 %v1482_v28, %v744_v20  ;;  %v746_v24 = vadd.f32 %v745_v14, %v1461_v11  ;;  %v892_v3 = vpop.f32.mrf.mxu1 }
 0x14a   : > { %v749_v18 = vpop.f32.mrf.mxu0 }
 0x14b   : > { %946 = vst [vmem:[%s1475_s8 + $0x68] sm:$0xff] %v914_v21  ;;  %v915_v26 = vmax.f32 %v857_v22, 0.0  ;;  %v859_v27 = vadd.f32 %v1486_v33, %v746_v24  ;;  %v750_v29 = vadd.f32 %v749_v18, %v1459_v9 }
 0x14c   : > { %v751_v23 = vpop.f32.mrf.mxu0 }
 0x14d   : > { %947 = vst [vmem:[%s1475_s8 + $0x70] sm:$0xff] %v915_v26  ;;  %v916_v30 = vmax.f32 %v859_v27, 0.0  ;;  %v863_v31 = vadd.f32 %v1490_v38, %v750_v29  ;;  %v752_v32 = vadd.f32 %v751_v23, %v1461_v11 }
 0x14e   : > { %v753_v28 = vpop.f32.mrf.mxu0 }
 0x14f   : > { %948 = vst [vmem:[%s1475_s8 + $0x78] sm:$0xff] %v916_v30  ;;  %v917_v35 = vmax.f32 %v863_v31, 0.0  ;;  %v865_v36 = vadd.f32 %v1494_v39, %v752_v32  ;;  %v754_v37 = vadd.f32 %v753_v28, %v1459_v9 }
 0x150   : > { %v755_v33 = vpop.f32.mrf.mxu0 }
 0x151   : > { %949 = vst [vmem:[%s1475_s8 + $0x80] sm:$0xff] %v917_v35  ;;  %v918_v40 = vmax.f32 %v865_v36, 0.0  ;;  %v867_v41 = vadd.f32 %v1498_v48, %v754_v37  ;;  %v756_v42 = vadd.f32 %v755_v33, %v1461_v11 }
 0x152   : > { %v759_v38 = vpop.f32.mrf.mxu0 }
 0x153   : > { %950 = vst [vmem:[%s1475_s8 + $0x88] sm:$0xff] %v918_v40  ;;  %v919_v44 = vmax.f32 %v867_v41, 0.0  ;;  %v869_v45 = vadd.f32 %v1502_v53, %v756_v42  ;;  %v760_v46 = vadd.f32 %v759_v38, %v1459_v9 }
 0x154   : > { %v761_v39 = vpop.f32.mrf.mxu0 }
 0x155   : > { %951 = vst [vmem:[%s1475_s8 + $0x90] sm:$0xff] %v919_v44  ;;  %v920_v47 = vmax.f32 %v869_v45, 0.0  ;;  %v873_v49 = vadd.f32 %v1506_v59, %v760_v46  ;;  %v762_v50 = vadd.f32 %v761_v39, %v1461_v11 }
 0x156   : > { %v763_v48 = vpop.f32.mrf.mxu0 }
 0x157   : > { %952 = vst [vmem:[%s1475_s8 + $0x98] sm:$0xff] %v920_v47  ;;  %v921_v52 = vmax.f32 %v873_v49, 0.0  ;;  %v875_v54 = vadd.f32 %v874_v6, %v762_v50  ;;  %v764_v55 = vadd.f32 %v763_v48, %v1459_v9 }
 0x158   : > { %v765_v56 = vpop.f32.mrf.mxu0 }
 0x159   : > { %953 = vst [vmem:[%s1475_s8 + $0xa0] sm:$0xff] %v921_v52  ;;  %v922_v53 = vmax.f32 %v875_v54, 0.0  ;;  %v877_v58 = vadd.f32 %v876_v16, %v764_v55  ;;  %v766_v0 = vadd.f32 %v765_v56, %v1461_v11  ;;  %v894_v16 = vpop.f32.mrf.mxu1 }
 0x15a   : > { %v769_v60 = vpop.f32.mrf.mxu0 }
 0x15b   : > { %954 = vst [vmem:[%s1475_s8 + $0xa8] sm:$0xff] %v922_v53  ;;  %v923_v59 = vmax.f32 %v877_v58, 0.0  ;;  %v879_v62 = vadd.f32 %v878_v25, %v766_v0  ;;  %v770_v63 = vadd.f32 %v769_v60, %v1459_v9  ;;  %v896_v25 = vpop.f32.mrf.mxu1 }
 0x15c   : > { %v771_v1 = vpop.f32.mrf.mxu0 }
 0x15d   : > { %955 = vst [vmem:[%s1475_s8 + $0xb0] sm:$0xff] %v923_v59  ;;  %v924_v2 = vmax.f32 %v879_v62, 0.0  ;;  %v883_v4 = vadd.f32 %v882_v34, %v770_v63  ;;  %v772_v5 = vadd.f32 %v771_v1, %v1461_v11  ;;  %v898_v34 = vpop.f32.mrf.mxu1 }
 0x15e   : > { %v773_v6 = vpop.f32.mrf.mxu0 }
 0x15f   : > { %956 = vst [vmem:[%s1475_s8 + $0xb8] sm:$0xff] %v924_v2  ;;  %v925_v7 = vmax.f32 %v883_v4, 0.0  ;;  %v885_v8 = vadd.f32 %v884_v43, %v772_v5  ;;  %v774_v10 = vadd.f32 %v773_v6, %v1459_v9 }
 0x160   : > { %v775_v12 = vpop.f32.mrf.mxu0 }
 0x161   : > { %957 = vst [vmem:[%s1475_s8 + $0xc0] sm:$0xff] %v925_v7  ;;  %v926_v13 = vmax.f32 %v885_v8, 0.0  ;;  %v887_v15 = vadd.f32 %v886_v51, %v774_v10  ;;  %v776_v57 = vadd.f32 %v775_v12, %v1461_v11 }
 0x162   : > { %v779_v17 = vpop.f32.mrf.mxu0 }
 0x163   : > { %958 = vst [vmem:[%s1475_s8 + $0xc8] sm:$0xff] %v926_v13  ;;  %v927_v19 = vmax.f32 %v887_v15, 0.0  ;;  %v889_v20 = vadd.f32 %v888_v61, %v776_v57  ;;  %v780_v14 = vadd.f32 %v779_v17, %v1459_v9 }
 0x164   : > { %v781_v21 = vpop.f32.mrf.mxu0 }
 0x165   : > { %959 = vst [vmem:[%s1475_s8 + $0xd0] sm:$0xff] %v927_v19  ;;  %v928_v22 = vmax.f32 %v889_v20, 0.0  ;;  %v893_v24 = vadd.f32 %v892_v3, %v780_v14  ;;  %v782_v18 = vadd.f32 %v781_v21, %v1461_v11 }
 0x166   : > { %v783_v26 = vpop.f32.mrf.mxu0 }
 0x167   : > { %960 = vst [vmem:[%s1475_s8 + $0xd8] sm:$0xff] %v928_v22  ;;  %v929_v27 = vmax.f32 %v893_v24, 0.0  ;;  %v895_v29 = vadd.f32 %v894_v16, %v782_v18  ;;  %v784_v23 = vadd.f32 %v783_v26, %v1459_v9 }
 0x168   : > { %v785_v30 = vpop.f32.mrf.mxu0 }
 0x169   : > { %961 = vst [vmem:[%s1475_s8 + $0xe0] sm:$0xff] %v929_v27  ;;  %v930_v31 = vmax.f32 %v895_v29, 0.0  ;;  %v897_v32 = vadd.f32 %v896_v25, %v784_v23  ;;  %v786_v28 = vadd.f32 %v785_v30, %v1461_v11 }
 0x16b   : > { %962 = vst [vmem:[%s1475_s8 + $0xe8] sm:$0xff] %v930_v31  ;;  %v931_v35 = vmax.f32 %v897_v32, 0.0  ;;  %v899_v36 = vadd.f32 %v898_v34, %v786_v28 }
 0x16d   : > { %963 = vst [vmem:[%s1475_s8 + $0xf0] sm:$0xff] %v931_v35  ;;  %v932_v37 = vmax.f32 %v899_v36, 0.0 }
 0x16f   : > { %964 = vst [vmem:[%s1475_s8 + $0xf8] sm:$0xff] %v932_v37 }
 0x170 PF: > { %s15_s12 = sadd.s32 1, %s1296_s12  }
 0x171   : > { %p12_p3 = scmp.ge.s32.totalorder %s15_s12, 4  }
 0x173   :  { %14 = sbr.rel (!%p12_p3) target bundleno = 2 (0x2), region = 71 }
 0x178   :  { %986 = vsyncpa [#allocation3], 1 }
 0x179   :  { %988 = vsyncpa [#allocation3 + $0x1], 1 }
 0x17a   :  { %989 = vsyncpa [#allocation5], 1 }

</bundles_post_ra>
